<compile_context>
chip_gen: v5e
topology: v5e:2x2
jax: 0.10.0
libtpu: 0.0.40
codegen_flags: <defaults>
</compile_context>

<pallas_src>
import functools

import jax
import jax.numpy as jnp
from jax import lax
from jax.experimental import pallas as pl
from jax.experimental.pallas import tpu as pltpu


def csm_kernel(H, W, x_ref, w1_ref, w2_ref, w3_ref, o_ref, rhs1_ref, rhs2_ref):
    """Whole batch per call; activations in lane-dense (Cin, B*H*W) layout."""
    C, L = x_ref.shape
    HW = H * W
    x = x_ref[...]                                        # (C, L) f32

    # Per-lane within-image pixel coordinates from an iota (no mask inputs).
    idx = lax.broadcasted_iota(jnp.int32, (1, L), 1)
    if (HW & (HW - 1)) == 0 and (W & (W - 1)) == 0:
        q = idx & (HW - 1)                                # pixel index in image
        w_idx = q & (W - 1)
        h_idx = q >> (int(W).bit_length() - 1)
    else:
        q = idx % HW
        w_idx = q % W
        h_idx = q // W

    def conv(inp, w_ref, rhs_ref, k):
        """k x k SAME conv + bias as ONE MXU dot.

        RHS row tap*Cin+ci = input channel ci shifted by tap (dy,dx), masked
        where the source pixel falls outside the image; last RHS row = ones
        (bias column folded into the stacked weights).
        """
        r = k // 2
        cin = inp.shape[0]
        for dy in range(k):
            for dx in range(k):
                tap = dy * k + dx
                off = (dy - r) * W + (dx - r)             # flattened lane shift
                if off == 0:
                    t = inp                               # center tap: identity
                else:
                    t = pltpu.roll(inp, shift=(-off) % L, axis=1)
                    valid = ((h_idx >= r - dy) & (h_idx < H + r - dy) &
                             (w_idx >= r - dx) & (w_idx < W + r - dx))
                    t = t * jnp.where(valid, 1.0, 0.0)
                rhs_ref[tap * cin:(tap + 1) * cin, :] = t
        rhs_ref[k * k * cin:k * k * cin + 1, :] = jnp.ones((1, L), jnp.float32)
        return jnp.dot(w_ref[...], rhs_ref[...],
                       preferred_element_type=jnp.float32)

    # conv1: 5x5 C->C (pad=2) + ReLU  -- one (C, 25C+1)@(25C+1, L) dot
    h1 = jnp.maximum(conv(x, w1_ref, rhs1_ref, 5), 0.0)
    # conv2: 3x3 C->C (pad=1) + ReLU  -- one (C, 9C+1)@(9C+1, L) dot
    h2 = jnp.maximum(conv(h1, w2_ref, rhs2_ref, 3), 0.0)
    # conv3: 1x1 C->3 + sigmoid (bias = trailing column of w3_ref)
    a_lin = (jnp.dot(w3_ref[:, :C], h2, preferred_element_type=jnp.float32)
             + w3_ref[:, C:C + 1])
    a = 1.0 / (1.0 + jnp.exp(-a_lin))                     # (3, L)

    # curve iterations on the clamped input
    y = jnp.maximum(x, 0.0) - jnp.maximum(x - 1.0, 0.0)   # relu(x) - relu(x-1)
    for i in range(3):
        y = y + a[i:i + 1, :] * y * (1.0 - y)

    o_ref[...] = y                                        # (C, L), lane-dense


def curved_state_space_model(x_nchw, params):
    """x_nchw: (B, C, H, W) float32.  Returns (B, C, H, W)."""
    w1, b1, w2, b2, w3, b3 = params
    x = x_nchw.astype(jnp.float32)
    B, C, H, W = x.shape
    L = B * H * W

    # Lane-dense activation layout: (Cin, B*H*W).  Tiny wrapper transpose.
    xf = jnp.transpose(x, (1, 0, 2, 3)).reshape(C, L)

    # Tap-stacked weights with the bias folded in as a trailing column:
    #   w1s[co, (dy*5+dx)*Cin + ci] = w1[dy, dx, ci, co];  w1s[:, -1] = b1
    w1s = jnp.concatenate(
        [jnp.transpose(w1, (3, 0, 1, 2)).reshape(C, 25 * C), b1.reshape(C, 1)],
        axis=1)                                           # (C, 25C+1)
    w2s = jnp.concatenate(
        [jnp.transpose(w2, (3, 0, 1, 2)).reshape(C, 9 * C), b2.reshape(C, 1)],
        axis=1)                                           # (C, 9C+1)
    w3s = jnp.concatenate(
        [w3.reshape(C, 3).T, b3.reshape(3, 1)], axis=1)   # (3, C+1)

    out = pl.pallas_call(
        functools.partial(csm_kernel, H, W),
        out_shape=jax.ShapeDtypeStruct((C, L), jnp.float32),
        grid_spec=pltpu.PrefetchScalarGridSpec(
            num_scalar_prefetch=0,
            grid=(1,),
            in_specs=[
                pl.BlockSpec((C, L), lambda i: (0, 0)),
                pl.BlockSpec((C, 25 * C + 1), lambda i: (0, 0)),
                pl.BlockSpec((C, 9 * C + 1), lambda i: (0, 0)),
                pl.BlockSpec((3, C + 1), lambda i: (0, 0)),
            ],
            out_specs=pl.BlockSpec((C, L), lambda i: (0, 0)),
            scratch_shapes=[
                pltpu.VMEM((25 * C + 1, L), jnp.float32),  # conv1 stacked RHS
                pltpu.VMEM((9 * C + 1, L), jnp.float32),   # conv2 stacked RHS
            ],
        ),
        compiler_params=pltpu.CompilerParams(
            dimension_semantics=("arbitrary",)),
    )(xf, w1s, w2s, w3s)

    return jnp.transpose(out.reshape(C, B, H, W), (1, 0, 2, 3))


def reference(x_nchw, params):
    """Pure-JAX reference (mirrors the PyTorch forward)."""
    w1, b1, w2, b2, w3, b3 = params
    x = jnp.transpose(x_nchw, (0, 2, 3, 1)).astype(jnp.float32)
    dn = ('NHWC', 'HWIO', 'NHWC')
    prec = lax.Precision.HIGHEST
    h = lax.conv_general_dilated(x, w1, (1, 1), 'SAME', dimension_numbers=dn,
                                 precision=prec) + b1.reshape(1, 1, 1, -1)
    h = jax.nn.relu(h)
    h = lax.conv_general_dilated(h, w2, (1, 1), 'SAME', dimension_numbers=dn,
                                 precision=prec) + b2.reshape(1, 1, 1, -1)
    h = jax.nn.relu(h)
    a = jax.nn.sigmoid(
        lax.conv_general_dilated(h, w3, (1, 1), 'SAME', dimension_numbers=dn,
                                 precision=prec) + b3.reshape(1, 1, 1, -1))
    y = jax.nn.relu(x) - jax.nn.relu(x - 1.0)
    for i in range(3):
        y = y + a[..., i:i + 1] * y * (1.0 - y)
    return jnp.transpose(y, (0, 3, 1, 2))


def make_params(key, channel):
    """Deterministic synthetic weights (HWIO layout)."""
    k1, k2, k3, k4, k5, k6 = jax.random.split(key, 6)
    w1 = 0.1 * jax.random.normal(k1, (5, 5, channel, channel), jnp.float32)
    b1 = 0.1 * jax.random.normal(k2, (channel,), jnp.float32)
    w2 = 0.1 * jax.random.normal(k3, (3, 3, channel, channel), jnp.float32)
    b2 = 0.1 * jax.random.normal(k4, (channel,), jnp.float32)
    w3 = 0.1 * jax.random.normal(k5, (1, 1, channel, 3), jnp.float32)
    b3 = 0.1 * jax.random.normal(k6, (3,), jnp.float32)
    return (w1, b1, w2, b2, w3, b3)


if __name__ == "__main__":
    key = jax.random.PRNGKey(0)
    kx, kp = jax.random.split(key)

    B, C, H, W = 2, 4, 16, 16
    x = jax.random.normal(kx, (B, C, H, W), jnp.float32)
    params = make_params(kp, C)

    out = jax.block_until_ready(curved_state_space_model(x, params))
    ref = jax.block_until_ready(reference(x, params))

    assert out.shape == (B, C, H, W)
    max_err = float(jnp.max(jnp.abs(out - ref)))
    assert max_err < 2e-3, f"max abs err = {max_err}"

    print("KERNEL_OK")
</pallas_src>

<mosaic_0001>
module attributes {stable_mosaic.version = 11 : i64} {
  func.func @csm_kernel(%arg0: i32, %arg1: memref<4x512xf32, #tpu.memory_space<vmem>>, %arg2: memref<4x101xf32, #tpu.memory_space<vmem>>, %arg3: memref<4x37xf32, #tpu.memory_space<vmem>>, %arg4: memref<3x5xf32, #tpu.memory_space<vmem>>, %arg5: memref<4x512xf32, #tpu.memory_space<vmem>>, %arg6: memref<101x512xf32, #tpu.memory_space<vmem>>, %arg7: memref<37x512xf32, #tpu.memory_space<vmem>>) attributes {dimension_semantics = [#tpu.dimension_semantics<arbitrary>], iteration_bounds = array<i64: 1>, scalar_prefetch = 0 : i64, scratch_operands = 2 : i64, tpu.core_type = #tpu.core_type<tc>, window_params = [{pipeline_mode = #tpu.pipeline_mode<synchronous>, transform_indices = @transform_0, window_bounds = array<i64: 4, 512>}, {pipeline_mode = #tpu.pipeline_mode<synchronous>, transform_indices = @transform_1, window_bounds = array<i64: 4, 101>}, {pipeline_mode = #tpu.pipeline_mode<synchronous>, transform_indices = @transform_2, window_bounds = array<i64: 4, 37>}, {pipeline_mode = #tpu.pipeline_mode<synchronous>, transform_indices = @transform_3, window_bounds = array<i64: 3, 5>}, {pipeline_mode = #tpu.pipeline_mode<synchronous>, transform_indices = @transform_4, window_bounds = array<i64: 4, 512>}]} {
    %c0 = arith.constant 0 : index
    %c0_0 = arith.constant 0 : index
    %0 = vector.load %arg1[%c0, %c0_0] : memref<4x512xf32, #tpu.memory_space<vmem>>, vector<4x512xf32>
    %1 = tpu.iota {dimensions = array<i32: 1>} : vector<1x512xi32>
    %c255_i32 = arith.constant 255 : i32
    %2 = vector.broadcast %c255_i32 : i32 to vector<1x512xi32>
    %3 = arith.andi %1, %2 : vector<1x512xi32>
    %c15_i32 = arith.constant 15 : i32
    %4 = vector.broadcast %c15_i32 : i32 to vector<1x512xi32>
    %5 = arith.andi %3, %4 : vector<1x512xi32>
    %c4_i32 = arith.constant 4 : i32
    %6 = vector.broadcast %c4_i32 : i32 to vector<1x512xi32>
    %7 = arith.shrsi %3, %6 : vector<1x512xi32>
    %c34_i32 = arith.constant 34 : i32
    %8 = tpu.dynamic_rotate %0 by %c34_i32 dim 1 : vector<4x512xf32>, i32 -> vector<4x512xf32>
    %c2_i32 = arith.constant 2 : i32
    %9 = vector.broadcast %c2_i32 : i32 to vector<1x512xi32>
    %10 = arith.cmpi sge, %7, %9 : vector<1x512xi32>
    %c18_i32 = arith.constant 18 : i32
    %11 = vector.broadcast %c18_i32 : i32 to vector<1x512xi32>
    %12 = arith.cmpi slt, %7, %11 : vector<1x512xi32>
    %13 = arith.andi %10, %12 : vector<1x512xi1>
    %c2_i32_1 = arith.constant 2 : i32
    %14 = vector.broadcast %c2_i32_1 : i32 to vector<1x512xi32>
    %15 = arith.cmpi sge, %5, %14 : vector<1x512xi32>
    %16 = arith.andi %13, %15 : vector<1x512xi1>
    %c18_i32_2 = arith.constant 18 : i32
    %17 = vector.broadcast %c18_i32_2 : i32 to vector<1x512xi32>
    %18 = arith.cmpi slt, %5, %17 : vector<1x512xi32>
    %19 = arith.andi %16, %18 : vector<1x512xi1>
    %cst = arith.constant 1.000000e+00 : f32
    %cst_3 = arith.constant 0.000000e+00 : f32
    %20 = vector.broadcast %cst : f32 to vector<1x512xf32>
    %21 = vector.broadcast %cst_3 : f32 to vector<1x512xf32>
    %22 = arith.select %19, %20, %21 : vector<1x512xi1>, vector<1x512xf32>
    %23 = vector.broadcast %22 : vector<1x512xf32> to vector<4x512xf32>
    %24 = arith.mulf %8, %23 : vector<4x512xf32>
    %c0_4 = arith.constant 0 : index
    %c0_5 = arith.constant 0 : index
    %25 = vector.load %arg6[%c0_4, %c0_5] : memref<101x512xf32, #tpu.memory_space<vmem>>, vector<4x512xf32>
    tpu.vector_store %arg6[%c0_4, %c0_5], %24 {strides = array<i32>} : memref<101x512xf32, #tpu.memory_space<vmem>>, vector<4x512xf32>,
    %c33_i32 = arith.constant 33 : i32
    %26 = tpu.dynamic_rotate %0 by %c33_i32 dim 1 : vector<4x512xf32>, i32 -> vector<4x512xf32>
    %c2_i32_6 = arith.constant 2 : i32
    %27 = vector.broadcast %c2_i32_6 : i32 to vector<1x512xi32>
    %28 = arith.cmpi sge, %7, %27 : vector<1x512xi32>
    %c18_i32_7 = arith.constant 18 : i32
    %29 = vector.broadcast %c18_i32_7 : i32 to vector<1x512xi32>
    %30 = arith.cmpi slt, %7, %29 : vector<1x512xi32>
    %31 = arith.andi %28, %30 : vector<1x512xi1>
    %c1_i32 = arith.constant 1 : i32
    %32 = vector.broadcast %c1_i32 : i32 to vector<1x512xi32>
    %33 = arith.cmpi sge, %5, %32 : vector<1x512xi32>
    %34 = arith.andi %31, %33 : vector<1x512xi1>
    %c17_i32 = arith.constant 17 : i32
    %35 = vector.broadcast %c17_i32 : i32 to vector<1x512xi32>
    %36 = arith.cmpi slt, %5, %35 : vector<1x512xi32>
    %37 = arith.andi %34, %36 : vector<1x512xi1>
    %cst_8 = arith.constant 1.000000e+00 : f32
    %cst_9 = arith.constant 0.000000e+00 : f32
    %38 = vector.broadcast %cst_8 : f32 to vector<1x512xf32>
    %39 = vector.broadcast %cst_9 : f32 to vector<1x512xf32>
    %40 = arith.select %37, %38, %39 : vector<1x512xi1>, vector<1x512xf32>
    %41 = vector.broadcast %40 : vector<1x512xf32> to vector<4x512xf32>
    %42 = arith.mulf %26, %41 : vector<4x512xf32>
    %c4 = arith.constant 4 : index
    %c0_10 = arith.constant 0 : index
    %43 = vector.load %arg6[%c4, %c0_10] : memref<101x512xf32, #tpu.memory_space<vmem>>, vector<4x512xf32>
    tpu.vector_store %arg6[%c4, %c0_10], %42 {strides = array<i32>} : memref<101x512xf32, #tpu.memory_space<vmem>>, vector<4x512xf32>,
    %c32_i32 = arith.constant 32 : i32
    %44 = tpu.dynamic_rotate %0 by %c32_i32 dim 1 : vector<4x512xf32>, i32 -> vector<4x512xf32>
    %c2_i32_11 = arith.constant 2 : i32
    %45 = vector.broadcast %c2_i32_11 : i32 to vector<1x512xi32>
    %46 = arith.cmpi sge, %7, %45 : vector<1x512xi32>
    %c18_i32_12 = arith.constant 18 : i32
    %47 = vector.broadcast %c18_i32_12 : i32 to vector<1x512xi32>
    %48 = arith.cmpi slt, %7, %47 : vector<1x512xi32>
    %49 = arith.andi %46, %48 : vector<1x512xi1>
    %c0_i32 = arith.constant 0 : i32
    %50 = vector.broadcast %c0_i32 : i32 to vector<1x512xi32>
    %51 = arith.cmpi sge, %5, %50 : vector<1x512xi32>
    %52 = arith.andi %49, %51 : vector<1x512xi1>
    %c16_i32 = arith.constant 16 : i32
    %53 = vector.broadcast %c16_i32 : i32 to vector<1x512xi32>
    %54 = arith.cmpi slt, %5, %53 : vector<1x512xi32>
    %55 = arith.andi %52, %54 : vector<1x512xi1>
    %cst_13 = arith.constant 1.000000e+00 : f32
    %cst_14 = arith.constant 0.000000e+00 : f32
    %56 = vector.broadcast %cst_13 : f32 to vector<1x512xf32>
    %57 = vector.broadcast %cst_14 : f32 to vector<1x512xf32>
    %58 = arith.select %55, %56, %57 : vector<1x512xi1>, vector<1x512xf32>
    %59 = vector.broadcast %58 : vector<1x512xf32> to vector<4x512xf32>
    %60 = arith.mulf %44, %59 : vector<4x512xf32>
    %c8 = arith.constant 8 : index
    %c0_15 = arith.constant 0 : index
    %61 = vector.load %arg6[%c8, %c0_15] : memref<101x512xf32, #tpu.memory_space<vmem>>, vector<4x512xf32>
    tpu.vector_store %arg6[%c8, %c0_15], %60 {strides = array<i32>} : memref<101x512xf32, #tpu.memory_space<vmem>>, vector<4x512xf32>,
    %c31_i32 = arith.constant 31 : i32
    %62 = tpu.dynamic_rotate %0 by %c31_i32 dim 1 : vector<4x512xf32>, i32 -> vector<4x512xf32>
    %c2_i32_16 = arith.constant 2 : i32
    %63 = vector.broadcast %c2_i32_16 : i32 to vector<1x512xi32>
    %64 = arith.cmpi sge, %7, %63 : vector<1x512xi32>
    %c18_i32_17 = arith.constant 18 : i32
    %65 = vector.broadcast %c18_i32_17 : i32 to vector<1x512xi32>
    %66 = arith.cmpi slt, %7, %65 : vector<1x512xi32>
    %67 = arith.andi %64, %66 : vector<1x512xi1>
    %c-1_i32 = arith.constant -1 : i32
    %68 = vector.broadcast %c-1_i32 : i32 to vector<1x512xi32>
    %69 = arith.cmpi sge, %5, %68 : vector<1x512xi32>
    %70 = arith.andi %67, %69 : vector<1x512xi1>
    %c15_i32_18 = arith.constant 15 : i32
    %71 = vector.broadcast %c15_i32_18 : i32 to vector<1x512xi32>
    %72 = arith.cmpi slt, %5, %71 : vector<1x512xi32>
    %73 = arith.andi %70, %72 : vector<1x512xi1>
    %cst_19 = arith.constant 1.000000e+00 : f32
    %cst_20 = arith.constant 0.000000e+00 : f32
    %74 = vector.broadcast %cst_19 : f32 to vector<1x512xf32>
    %75 = vector.broadcast %cst_20 : f32 to vector<1x512xf32>
    %76 = arith.select %73, %74, %75 : vector<1x512xi1>, vector<1x512xf32>
    %77 = vector.broadcast %76 : vector<1x512xf32> to vector<4x512xf32>
    %78 = arith.mulf %62, %77 : vector<4x512xf32>
    %c12 = arith.constant 12 : index
    %c0_21 = arith.constant 0 : index
    %79 = vector.load %arg6[%c12, %c0_21] : memref<101x512xf32, #tpu.memory_space<vmem>>, vector<4x512xf32>
    tpu.vector_store %arg6[%c12, %c0_21], %78 {strides = array<i32>} : memref<101x512xf32, #tpu.memory_space<vmem>>, vector<4x512xf32>,
    %c30_i32 = arith.constant 30 : i32
    %80 = tpu.dynamic_rotate %0 by %c30_i32 dim 1 : vector<4x512xf32>, i32 -> vector<4x512xf32>
    %c2_i32_22 = arith.constant 2 : i32
    %81 = vector.broadcast %c2_i32_22 : i32 to vector<1x512xi32>
    %82 = arith.cmpi sge, %7, %81 : vector<1x512xi32>
    %c18_i32_23 = arith.constant 18 : i32
    %83 = vector.broadcast %c18_i32_23 : i32 to vector<1x512xi32>
    %84 = arith.cmpi slt, %7, %83 : vector<1x512xi32>
    %85 = arith.andi %82, %84 : vector<1x512xi1>
    %c-2_i32 = arith.constant -2 : i32
    %86 = vector.broadcast %c-2_i32 : i32 to vector<1x512xi32>
    %87 = arith.cmpi sge, %5, %86 : vector<1x512xi32>
    %88 = arith.andi %85, %87 : vector<1x512xi1>
    %c14_i32 = arith.constant 14 : i32
    %89 = vector.broadcast %c14_i32 : i32 to vector<1x512xi32>
    %90 = arith.cmpi slt, %5, %89 : vector<1x512xi32>
    %91 = arith.andi %88, %90 : vector<1x512xi1>
    %cst_24 = arith.constant 1.000000e+00 : f32
    %cst_25 = arith.constant 0.000000e+00 : f32
    %92 = vector.broadcast %cst_24 : f32 to vector<1x512xf32>
    %93 = vector.broadcast %cst_25 : f32 to vector<1x512xf32>
    %94 = arith.select %91, %92, %93 : vector<1x512xi1>, vector<1x512xf32>
    %95 = vector.broadcast %94 : vector<1x512xf32> to vector<4x512xf32>
    %96 = arith.mulf %80, %95 : vector<4x512xf32>
    %c16 = arith.constant 16 : index
    %c0_26 = arith.constant 0 : index
    %97 = vector.load %arg6[%c16, %c0_26] : memref<101x512xf32, #tpu.memory_space<vmem>>, vector<4x512xf32>
    tpu.vector_store %arg6[%c16, %c0_26], %96 {strides = array<i32>} : memref<101x512xf32, #tpu.memory_space<vmem>>, vector<4x512xf32>,
    %c18_i32_27 = arith.constant 18 : i32
    %98 = tpu.dynamic_rotate %0 by %c18_i32_27 dim 1 : vector<4x512xf32>, i32 -> vector<4x512xf32>
    %c1_i32_28 = arith.constant 1 : i32
    %99 = vector.broadcast %c1_i32_28 : i32 to vector<1x512xi32>
    %100 = arith.cmpi sge, %7, %99 : vector<1x512xi32>
    %c17_i32_29 = arith.constant 17 : i32
    %101 = vector.broadcast %c17_i32_29 : i32 to vector<1x512xi32>
    %102 = arith.cmpi slt, %7, %101 : vector<1x512xi32>
    %103 = arith.andi %100, %102 : vector<1x512xi1>
    %c2_i32_30 = arith.constant 2 : i32
    %104 = vector.broadcast %c2_i32_30 : i32 to vector<1x512xi32>
    %105 = arith.cmpi sge, %5, %104 : vector<1x512xi32>
    %106 = arith.andi %103, %105 : vector<1x512xi1>
    %c18_i32_31 = arith.constant 18 : i32
    %107 = vector.broadcast %c18_i32_31 : i32 to vector<1x512xi32>
    %108 = arith.cmpi slt, %5, %107 : vector<1x512xi32>
    %109 = arith.andi %106, %108 : vector<1x512xi1>
    %cst_32 = arith.constant 1.000000e+00 : f32
    %cst_33 = arith.constant 0.000000e+00 : f32
    %110 = vector.broadcast %cst_32 : f32 to vector<1x512xf32>
    %111 = vector.broadcast %cst_33 : f32 to vector<1x512xf32>
    %112 = arith.select %109, %110, %111 : vector<1x512xi1>, vector<1x512xf32>
    %113 = vector.broadcast %112 : vector<1x512xf32> to vector<4x512xf32>
    %114 = arith.mulf %98, %113 : vector<4x512xf32>
    %c20 = arith.constant 20 : index
    %c0_34 = arith.constant 0 : index
    %115 = vector.load %arg6[%c20, %c0_34] : memref<101x512xf32, #tpu.memory_space<vmem>>, vector<4x512xf32>
    tpu.vector_store %arg6[%c20, %c0_34], %114 {strides = array<i32>} : memref<101x512xf32, #tpu.memory_space<vmem>>, vector<4x512xf32>,
    %c17_i32_35 = arith.constant 17 : i32
    %116 = tpu.dynamic_rotate %0 by %c17_i32_35 dim 1 : vector<4x512xf32>, i32 -> vector<4x512xf32>
    %c1_i32_36 = arith.constant 1 : i32
    %117 = vector.broadcast %c1_i32_36 : i32 to vector<1x512xi32>
    %118 = arith.cmpi sge, %7, %117 : vector<1x512xi32>
    %c17_i32_37 = arith.constant 17 : i32
    %119 = vector.broadcast %c17_i32_37 : i32 to vector<1x512xi32>
    %120 = arith.cmpi slt, %7, %119 : vector<1x512xi32>
    %121 = arith.andi %118, %120 : vector<1x512xi1>
    %c1_i32_38 = arith.constant 1 : i32
    %122 = vector.broadcast %c1_i32_38 : i32 to vector<1x512xi32>
    %123 = arith.cmpi sge, %5, %122 : vector<1x512xi32>
    %124 = arith.andi %121, %123 : vector<1x512xi1>
    %c17_i32_39 = arith.constant 17 : i32
    %125 = vector.broadcast %c17_i32_39 : i32 to vector<1x512xi32>
    %126 = arith.cmpi slt, %5, %125 : vector<1x512xi32>
    %127 = arith.andi %124, %126 : vector<1x512xi1>
    %cst_40 = arith.constant 1.000000e+00 : f32
    %cst_41 = arith.constant 0.000000e+00 : f32
    %128 = vector.broadcast %cst_40 : f32 to vector<1x512xf32>
    %129 = vector.broadcast %cst_41 : f32 to vector<1x512xf32>
    %130 = arith.select %127, %128, %129 : vector<1x512xi1>, vector<1x512xf32>
    %131 = vector.broadcast %130 : vector<1x512xf32> to vector<4x512xf32>
    %132 = arith.mulf %116, %131 : vector<4x512xf32>
    %c24 = arith.constant 24 : index
    %c0_42 = arith.constant 0 : index
    %133 = vector.load %arg6[%c24, %c0_42] : memref<101x512xf32, #tpu.memory_space<vmem>>, vector<4x512xf32>
    tpu.vector_store %arg6[%c24, %c0_42], %132 {strides = array<i32>} : memref<101x512xf32, #tpu.memory_space<vmem>>, vector<4x512xf32>,
    %c16_i32_43 = arith.constant 16 : i32
    %134 = tpu.dynamic_rotate %0 by %c16_i32_43 dim 1 : vector<4x512xf32>, i32 -> vector<4x512xf32>
    %c1_i32_44 = arith.constant 1 : i32
    %135 = vector.broadcast %c1_i32_44 : i32 to vector<1x512xi32>
    %136 = arith.cmpi sge, %7, %135 : vector<1x512xi32>
    %c17_i32_45 = arith.constant 17 : i32
    %137 = vector.broadcast %c17_i32_45 : i32 to vector<1x512xi32>
    %138 = arith.cmpi slt, %7, %137 : vector<1x512xi32>
    %139 = arith.andi %136, %138 : vector<1x512xi1>
    %c0_i32_46 = arith.constant 0 : i32
    %140 = vector.broadcast %c0_i32_46 : i32 to vector<1x512xi32>
    %141 = arith.cmpi sge, %5, %140 : vector<1x512xi32>
    %142 = arith.andi %139, %141 : vector<1x512xi1>
    %c16_i32_47 = arith.constant 16 : i32
    %143 = vector.broadcast %c16_i32_47 : i32 to vector<1x512xi32>
    %144 = arith.cmpi slt, %5, %143 : vector<1x512xi32>
    %145 = arith.andi %142, %144 : vector<1x512xi1>
    %cst_48 = arith.constant 1.000000e+00 : f32
    %cst_49 = arith.constant 0.000000e+00 : f32
    %146 = vector.broadcast %cst_48 : f32 to vector<1x512xf32>
    %147 = vector.broadcast %cst_49 : f32 to vector<1x512xf32>
    %148 = arith.select %145, %146, %147 : vector<1x512xi1>, vector<1x512xf32>
    %149 = vector.broadcast %148 : vector<1x512xf32> to vector<4x512xf32>
    %150 = arith.mulf %134, %149 : vector<4x512xf32>
    %c28 = arith.constant 28 : index
    %c0_50 = arith.constant 0 : index
    %151 = vector.load %arg6[%c28, %c0_50] : memref<101x512xf32, #tpu.memory_space<vmem>>, vector<4x512xf32>
    tpu.vector_store %arg6[%c28, %c0_50], %150 {strides = array<i32>} : memref<101x512xf32, #tpu.memory_space<vmem>>, vector<4x512xf32>,
    %c15_i32_51 = arith.constant 15 : i32
    %152 = tpu.dynamic_rotate %0 by %c15_i32_51 dim 1 : vector<4x512xf32>, i32 -> vector<4x512xf32>
    %c1_i32_52 = arith.constant 1 : i32
    %153 = vector.broadcast %c1_i32_52 : i32 to vector<1x512xi32>
    %154 = arith.cmpi sge, %7, %153 : vector<1x512xi32>
    %c17_i32_53 = arith.constant 17 : i32
    %155 = vector.broadcast %c17_i32_53 : i32 to vector<1x512xi32>
    %156 = arith.cmpi slt, %7, %155 : vector<1x512xi32>
    %157 = arith.andi %154, %156 : vector<1x512xi1>
    %c-1_i32_54 = arith.constant -1 : i32
    %158 = vector.broadcast %c-1_i32_54 : i32 to vector<1x512xi32>
    %159 = arith.cmpi sge, %5, %158 : vector<1x512xi32>
    %160 = arith.andi %157, %159 : vector<1x512xi1>
    %c15_i32_55 = arith.constant 15 : i32
    %161 = vector.broadcast %c15_i32_55 : i32 to vector<1x512xi32>
    %162 = arith.cmpi slt, %5, %161 : vector<1x512xi32>
    %163 = arith.andi %160, %162 : vector<1x512xi1>
    %cst_56 = arith.constant 1.000000e+00 : f32
    %cst_57 = arith.constant 0.000000e+00 : f32
    %164 = vector.broadcast %cst_56 : f32 to vector<1x512xf32>
    %165 = vector.broadcast %cst_57 : f32 to vector<1x512xf32>
    %166 = arith.select %163, %164, %165 : vector<1x512xi1>, vector<1x512xf32>
    %167 = vector.broadcast %166 : vector<1x512xf32> to vector<4x512xf32>
    %168 = arith.mulf %152, %167 : vector<4x512xf32>
    %c32 = arith.constant 32 : index
    %c0_58 = arith.constant 0 : index
    %169 = vector.load %arg6[%c32, %c0_58] : memref<101x512xf32, #tpu.memory_space<vmem>>, vector<4x512xf32>
    tpu.vector_store %arg6[%c32, %c0_58], %168 {strides = array<i32>} : memref<101x512xf32, #tpu.memory_space<vmem>>, vector<4x512xf32>,
    %c14_i32_59 = arith.constant 14 : i32
    %170 = tpu.dynamic_rotate %0 by %c14_i32_59 dim 1 : vector<4x512xf32>, i32 -> vector<4x512xf32>
    %c1_i32_60 = arith.constant 1 : i32
    %171 = vector.broadcast %c1_i32_60 : i32 to vector<1x512xi32>
    %172 = arith.cmpi sge, %7, %171 : vector<1x512xi32>
    %c17_i32_61 = arith.constant 17 : i32
    %173 = vector.broadcast %c17_i32_61 : i32 to vector<1x512xi32>
    %174 = arith.cmpi slt, %7, %173 : vector<1x512xi32>
    %175 = arith.andi %172, %174 : vector<1x512xi1>
    %c-2_i32_62 = arith.constant -2 : i32
    %176 = vector.broadcast %c-2_i32_62 : i32 to vector<1x512xi32>
    %177 = arith.cmpi sge, %5, %176 : vector<1x512xi32>
    %178 = arith.andi %175, %177 : vector<1x512xi1>
    %c14_i32_63 = arith.constant 14 : i32
    %179 = vector.broadcast %c14_i32_63 : i32 to vector<1x512xi32>
    %180 = arith.cmpi slt, %5, %179 : vector<1x512xi32>
    %181 = arith.andi %178, %180 : vector<1x512xi1>
    %cst_64 = arith.constant 1.000000e+00 : f32
    %cst_65 = arith.constant 0.000000e+00 : f32
    %182 = vector.broadcast %cst_64 : f32 to vector<1x512xf32>
    %183 = vector.broadcast %cst_65 : f32 to vector<1x512xf32>
    %184 = arith.select %181, %182, %183 : vector<1x512xi1>, vector<1x512xf32>
    %185 = vector.broadcast %184 : vector<1x512xf32> to vector<4x512xf32>
    %186 = arith.mulf %170, %185 : vector<4x512xf32>
    %c36 = arith.constant 36 : index
    %c0_66 = arith.constant 0 : index
    %187 = vector.load %arg6[%c36, %c0_66] : memref<101x512xf32, #tpu.memory_space<vmem>>, vector<4x512xf32>
    tpu.vector_store %arg6[%c36, %c0_66], %186 {strides = array<i32>} : memref<101x512xf32, #tpu.memory_space<vmem>>, vector<4x512xf32>,
    %c2_i32_67 = arith.constant 2 : i32
    %188 = tpu.dynamic_rotate %0 by %c2_i32_67 dim 1 : vector<4x512xf32>, i32 -> vector<4x512xf32>
    %c0_i32_68 = arith.constant 0 : i32
    %189 = vector.broadcast %c0_i32_68 : i32 to vector<1x512xi32>
    %190 = arith.cmpi sge, %7, %189 : vector<1x512xi32>
    %c16_i32_69 = arith.constant 16 : i32
    %191 = vector.broadcast %c16_i32_69 : i32 to vector<1x512xi32>
    %192 = arith.cmpi slt, %7, %191 : vector<1x512xi32>
    %193 = arith.andi %190, %192 : vector<1x512xi1>
    %c2_i32_70 = arith.constant 2 : i32
    %194 = vector.broadcast %c2_i32_70 : i32 to vector<1x512xi32>
    %195 = arith.cmpi sge, %5, %194 : vector<1x512xi32>
    %196 = arith.andi %193, %195 : vector<1x512xi1>
    %c18_i32_71 = arith.constant 18 : i32
    %197 = vector.broadcast %c18_i32_71 : i32 to vector<1x512xi32>
    %198 = arith.cmpi slt, %5, %197 : vector<1x512xi32>
    %199 = arith.andi %196, %198 : vector<1x512xi1>
    %cst_72 = arith.constant 1.000000e+00 : f32
    %cst_73 = arith.constant 0.000000e+00 : f32
    %200 = vector.broadcast %cst_72 : f32 to vector<1x512xf32>
    %201 = vector.broadcast %cst_73 : f32 to vector<1x512xf32>
    %202 = arith.select %199, %200, %201 : vector<1x512xi1>, vector<1x512xf32>
    %203 = vector.broadcast %202 : vector<1x512xf32> to vector<4x512xf32>
    %204 = arith.mulf %188, %203 : vector<4x512xf32>
    %c40 = arith.constant 40 : index
    %c0_74 = arith.constant 0 : index
    %205 = vector.load %arg6[%c40, %c0_74] : memref<101x512xf32, #tpu.memory_space<vmem>>, vector<4x512xf32>
    tpu.vector_store %arg6[%c40, %c0_74], %204 {strides = array<i32>} : memref<101x512xf32, #tpu.memory_space<vmem>>, vector<4x512xf32>,
    %c1_i32_75 = arith.constant 1 : i32
    %206 = tpu.dynamic_rotate %0 by %c1_i32_75 dim 1 : vector<4x512xf32>, i32 -> vector<4x512xf32>
    %c0_i32_76 = arith.constant 0 : i32
    %207 = vector.broadcast %c0_i32_76 : i32 to vector<1x512xi32>
    %208 = arith.cmpi sge, %7, %207 : vector<1x512xi32>
    %c16_i32_77 = arith.constant 16 : i32
    %209 = vector.broadcast %c16_i32_77 : i32 to vector<1x512xi32>
    %210 = arith.cmpi slt, %7, %209 : vector<1x512xi32>
    %211 = arith.andi %208, %210 : vector<1x512xi1>
    %c1_i32_78 = arith.constant 1 : i32
    %212 = vector.broadcast %c1_i32_78 : i32 to vector<1x512xi32>
    %213 = arith.cmpi sge, %5, %212 : vector<1x512xi32>
    %214 = arith.andi %211, %213 : vector<1x512xi1>
    %c17_i32_79 = arith.constant 17 : i32
    %215 = vector.broadcast %c17_i32_79 : i32 to vector<1x512xi32>
    %216 = arith.cmpi slt, %5, %215 : vector<1x512xi32>
    %217 = arith.andi %214, %216 : vector<1x512xi1>
    %cst_80 = arith.constant 1.000000e+00 : f32
    %cst_81 = arith.constant 0.000000e+00 : f32
    %218 = vector.broadcast %cst_80 : f32 to vector<1x512xf32>
    %219 = vector.broadcast %cst_81 : f32 to vector<1x512xf32>
    %220 = arith.select %217, %218, %219 : vector<1x512xi1>, vector<1x512xf32>
    %221 = vector.broadcast %220 : vector<1x512xf32> to vector<4x512xf32>
    %222 = arith.mulf %206, %221 : vector<4x512xf32>
    %c44 = arith.constant 44 : index
    %c0_82 = arith.constant 0 : index
    %223 = vector.load %arg6[%c44, %c0_82] : memref<101x512xf32, #tpu.memory_space<vmem>>, vector<4x512xf32>
    tpu.vector_store %arg6[%c44, %c0_82], %222 {strides = array<i32>} : memref<101x512xf32, #tpu.memory_space<vmem>>, vector<4x512xf32>,
    %c48 = arith.constant 48 : index
    %c0_83 = arith.constant 0 : index
    %224 = vector.load %arg6[%c48, %c0_83] : memref<101x512xf32, #tpu.memory_space<vmem>>, vector<4x512xf32>
    tpu.vector_store %arg6[%c48, %c0_83], %0 {strides = array<i32>} : memref<101x512xf32, #tpu.memory_space<vmem>>, vector<4x512xf32>,
    %c511_i32 = arith.constant 511 : i32
    %225 = tpu.dynamic_rotate %0 by %c511_i32 dim 1 : vector<4x512xf32>, i32 -> vector<4x512xf32>
    %c0_i32_84 = arith.constant 0 : i32
    %226 = vector.broadcast %c0_i32_84 : i32 to vector<1x512xi32>
    %227 = arith.cmpi sge, %7, %226 : vector<1x512xi32>
    %c16_i32_85 = arith.constant 16 : i32
    %228 = vector.broadcast %c16_i32_85 : i32 to vector<1x512xi32>
    %229 = arith.cmpi slt, %7, %228 : vector<1x512xi32>
    %230 = arith.andi %227, %229 : vector<1x512xi1>
    %c-1_i32_86 = arith.constant -1 : i32
    %231 = vector.broadcast %c-1_i32_86 : i32 to vector<1x512xi32>
    %232 = arith.cmpi sge, %5, %231 : vector<1x512xi32>
    %233 = arith.andi %230, %232 : vector<1x512xi1>
    %c15_i32_87 = arith.constant 15 : i32
    %234 = vector.broadcast %c15_i32_87 : i32 to vector<1x512xi32>
    %235 = arith.cmpi slt, %5, %234 : vector<1x512xi32>
    %236 = arith.andi %233, %235 : vector<1x512xi1>
    %cst_88 = arith.constant 1.000000e+00 : f32
    %cst_89 = arith.constant 0.000000e+00 : f32
    %237 = vector.broadcast %cst_88 : f32 to vector<1x512xf32>
    %238 = vector.broadcast %cst_89 : f32 to vector<1x512xf32>
    %239 = arith.select %236, %237, %238 : vector<1x512xi1>, vector<1x512xf32>
    %240 = vector.broadcast %239 : vector<1x512xf32> to vector<4x512xf32>
    %241 = arith.mulf %225, %240 : vector<4x512xf32>
    %c52 = arith.constant 52 : index
    %c0_90 = arith.constant 0 : index
    %242 = vector.load %arg6[%c52, %c0_90] : memref<101x512xf32, #tpu.memory_space<vmem>>, vector<4x512xf32>
    tpu.vector_store %arg6[%c52, %c0_90], %241 {strides = array<i32>} : memref<101x512xf32, #tpu.memory_space<vmem>>, vector<4x512xf32>,
    %c510_i32 = arith.constant 510 : i32
    %243 = tpu.dynamic_rotate %0 by %c510_i32 dim 1 : vector<4x512xf32>, i32 -> vector<4x512xf32>
    %c0_i32_91 = arith.constant 0 : i32
    %244 = vector.broadcast %c0_i32_91 : i32 to vector<1x512xi32>
    %245 = arith.cmpi sge, %7, %244 : vector<1x512xi32>
    %c16_i32_92 = arith.constant 16 : i32
    %246 = vector.broadcast %c16_i32_92 : i32 to vector<1x512xi32>
    %247 = arith.cmpi slt, %7, %246 : vector<1x512xi32>
    %248 = arith.andi %245, %247 : vector<1x512xi1>
    %c-2_i32_93 = arith.constant -2 : i32
    %249 = vector.broadcast %c-2_i32_93 : i32 to vector<1x512xi32>
    %250 = arith.cmpi sge, %5, %249 : vector<1x512xi32>
    %251 = arith.andi %248, %250 : vector<1x512xi1>
    %c14_i32_94 = arith.constant 14 : i32
    %252 = vector.broadcast %c14_i32_94 : i32 to vector<1x512xi32>
    %253 = arith.cmpi slt, %5, %252 : vector<1x512xi32>
    %254 = arith.andi %251, %253 : vector<1x512xi1>
    %cst_95 = arith.constant 1.000000e+00 : f32
    %cst_96 = arith.constant 0.000000e+00 : f32
    %255 = vector.broadcast %cst_95 : f32 to vector<1x512xf32>
    %256 = vector.broadcast %cst_96 : f32 to vector<1x512xf32>
    %257 = arith.select %254, %255, %256 : vector<1x512xi1>, vector<1x512xf32>
    %258 = vector.broadcast %257 : vector<1x512xf32> to vector<4x512xf32>
    %259 = arith.mulf %243, %258 : vector<4x512xf32>
    %c56 = arith.constant 56 : index
    %c0_97 = arith.constant 0 : index
    %260 = vector.load %arg6[%c56, %c0_97] : memref<101x512xf32, #tpu.memory_space<vmem>>, vector<4x512xf32>
    tpu.vector_store %arg6[%c56, %c0_97], %259 {strides = array<i32>} : memref<101x512xf32, #tpu.memory_space<vmem>>, vector<4x512xf32>,
    %c498_i32 = arith.constant 498 : i32
    %261 = tpu.dynamic_rotate %0 by %c498_i32 dim 1 : vector<4x512xf32>, i32 -> vector<4x512xf32>
    %c-1_i32_98 = arith.constant -1 : i32
    %262 = vector.broadcast %c-1_i32_98 : i32 to vector<1x512xi32>
    %263 = arith.cmpi sge, %7, %262 : vector<1x512xi32>
    %c15_i32_99 = arith.constant 15 : i32
    %264 = vector.broadcast %c15_i32_99 : i32 to vector<1x512xi32>
    %265 = arith.cmpi slt, %7, %264 : vector<1x512xi32>
    %266 = arith.andi %263, %265 : vector<1x512xi1>
    %c2_i32_100 = arith.constant 2 : i32
    %267 = vector.broadcast %c2_i32_100 : i32 to vector<1x512xi32>
    %268 = arith.cmpi sge, %5, %267 : vector<1x512xi32>
    %269 = arith.andi %266, %268 : vector<1x512xi1>
    %c18_i32_101 = arith.constant 18 : i32
    %270 = vector.broadcast %c18_i32_101 : i32 to vector<1x512xi32>
    %271 = arith.cmpi slt, %5, %270 : vector<1x512xi32>
    %272 = arith.andi %269, %271 : vector<1x512xi1>
    %cst_102 = arith.constant 1.000000e+00 : f32
    %cst_103 = arith.constant 0.000000e+00 : f32
    %273 = vector.broadcast %cst_102 : f32 to vector<1x512xf32>
    %274 = vector.broadcast %cst_103 : f32 to vector<1x512xf32>
    %275 = arith.select %272, %273, %274 : vector<1x512xi1>, vector<1x512xf32>
    %276 = vector.broadcast %275 : vector<1x512xf32> to vector<4x512xf32>
    %277 = arith.mulf %261, %276 : vector<4x512xf32>
    %c60 = arith.constant 60 : index
    %c0_104 = arith.constant 0 : index
    %278 = vector.load %arg6[%c60, %c0_104] : memref<101x512xf32, #tpu.memory_space<vmem>>, vector<4x512xf32>
    tpu.vector_store %arg6[%c60, %c0_104], %277 {strides = array<i32>} : memref<101x512xf32, #tpu.memory_space<vmem>>, vector<4x512xf32>,
    %c497_i32 = arith.constant 497 : i32
    %279 = tpu.dynamic_rotate %0 by %c497_i32 dim 1 : vector<4x512xf32>, i32 -> vector<4x512xf32>
    %c-1_i32_105 = arith.constant -1 : i32
    %280 = vector.broadcast %c-1_i32_105 : i32 to vector<1x512xi32>
    %281 = arith.cmpi sge, %7, %280 : vector<1x512xi32>
    %c15_i32_106 = arith.constant 15 : i32
    %282 = vector.broadcast %c15_i32_106 : i32 to vector<1x512xi32>
    %283 = arith.cmpi slt, %7, %282 : vector<1x512xi32>
    %284 = arith.andi %281, %283 : vector<1x512xi1>
    %c1_i32_107 = arith.constant 1 : i32
    %285 = vector.broadcast %c1_i32_107 : i32 to vector<1x512xi32>
    %286 = arith.cmpi sge, %5, %285 : vector<1x512xi32>
    %287 = arith.andi %284, %286 : vector<1x512xi1>
    %c17_i32_108 = arith.constant 17 : i32
    %288 = vector.broadcast %c17_i32_108 : i32 to vector<1x512xi32>
    %289 = arith.cmpi slt, %5, %288 : vector<1x512xi32>
    %290 = arith.andi %287, %289 : vector<1x512xi1>
    %cst_109 = arith.constant 1.000000e+00 : f32
    %cst_110 = arith.constant 0.000000e+00 : f32
    %291 = vector.broadcast %cst_109 : f32 to vector<1x512xf32>
    %292 = vector.broadcast %cst_110 : f32 to vector<1x512xf32>
    %293 = arith.select %290, %291, %292 : vector<1x512xi1>, vector<1x512xf32>
    %294 = vector.broadcast %293 : vector<1x512xf32> to vector<4x512xf32>
    %295 = arith.mulf %279, %294 : vector<4x512xf32>
    %c64 = arith.constant 64 : index
    %c0_111 = arith.constant 0 : index
    %296 = vector.load %arg6[%c64, %c0_111] : memref<101x512xf32, #tpu.memory_space<vmem>>, vector<4x512xf32>
    tpu.vector_store %arg6[%c64, %c0_111], %295 {strides = array<i32>} : memref<101x512xf32, #tpu.memory_space<vmem>>, vector<4x512xf32>,
    %c496_i32 = arith.constant 496 : i32
    %297 = tpu.dynamic_rotate %0 by %c496_i32 dim 1 : vector<4x512xf32>, i32 -> vector<4x512xf32>
    %c-1_i32_112 = arith.constant -1 : i32
    %298 = vector.broadcast %c-1_i32_112 : i32 to vector<1x512xi32>
    %299 = arith.cmpi sge, %7, %298 : vector<1x512xi32>
    %c15_i32_113 = arith.constant 15 : i32
    %300 = vector.broadcast %c15_i32_113 : i32 to vector<1x512xi32>
    %301 = arith.cmpi slt, %7, %300 : vector<1x512xi32>
    %302 = arith.andi %299, %301 : vector<1x512xi1>
    %c0_i32_114 = arith.constant 0 : i32
    %303 = vector.broadcast %c0_i32_114 : i32 to vector<1x512xi32>
    %304 = arith.cmpi sge, %5, %303 : vector<1x512xi32>
    %305 = arith.andi %302, %304 : vector<1x512xi1>
    %c16_i32_115 = arith.constant 16 : i32
    %306 = vector.broadcast %c16_i32_115 : i32 to vector<1x512xi32>
    %307 = arith.cmpi slt, %5, %306 : vector<1x512xi32>
    %308 = arith.andi %305, %307 : vector<1x512xi1>
    %cst_116 = arith.constant 1.000000e+00 : f32
    %cst_117 = arith.constant 0.000000e+00 : f32
    %309 = vector.broadcast %cst_116 : f32 to vector<1x512xf32>
    %310 = vector.broadcast %cst_117 : f32 to vector<1x512xf32>
    %311 = arith.select %308, %309, %310 : vector<1x512xi1>, vector<1x512xf32>
    %312 = vector.broadcast %311 : vector<1x512xf32> to vector<4x512xf32>
    %313 = arith.mulf %297, %312 : vector<4x512xf32>
    %c68 = arith.constant 68 : index
    %c0_118 = arith.constant 0 : index
    %314 = vector.load %arg6[%c68, %c0_118] : memref<101x512xf32, #tpu.memory_space<vmem>>, vector<4x512xf32>
    tpu.vector_store %arg6[%c68, %c0_118], %313 {strides = array<i32>} : memref<101x512xf32, #tpu.memory_space<vmem>>, vector<4x512xf32>,
    %c495_i32 = arith.constant 495 : i32
    %315 = tpu.dynamic_rotate %0 by %c495_i32 dim 1 : vector<4x512xf32>, i32 -> vector<4x512xf32>
    %c-1_i32_119 = arith.constant -1 : i32
    %316 = vector.broadcast %c-1_i32_119 : i32 to vector<1x512xi32>
    %317 = arith.cmpi sge, %7, %316 : vector<1x512xi32>
    %c15_i32_120 = arith.constant 15 : i32
    %318 = vector.broadcast %c15_i32_120 : i32 to vector<1x512xi32>
    %319 = arith.cmpi slt, %7, %318 : vector<1x512xi32>
    %320 = arith.andi %317, %319 : vector<1x512xi1>
    %c-1_i32_121 = arith.constant -1 : i32
    %321 = vector.broadcast %c-1_i32_121 : i32 to vector<1x512xi32>
    %322 = arith.cmpi sge, %5, %321 : vector<1x512xi32>
    %323 = arith.andi %320, %322 : vector<1x512xi1>
    %c15_i32_122 = arith.constant 15 : i32
    %324 = vector.broadcast %c15_i32_122 : i32 to vector<1x512xi32>
    %325 = arith.cmpi slt, %5, %324 : vector<1x512xi32>
    %326 = arith.andi %323, %325 : vector<1x512xi1>
    %cst_123 = arith.constant 1.000000e+00 : f32
    %cst_124 = arith.constant 0.000000e+00 : f32
    %327 = vector.broadcast %cst_123 : f32 to vector<1x512xf32>
    %328 = vector.broadcast %cst_124 : f32 to vector<1x512xf32>
    %329 = arith.select %326, %327, %328 : vector<1x512xi1>, vector<1x512xf32>
    %330 = vector.broadcast %329 : vector<1x512xf32> to vector<4x512xf32>
    %331 = arith.mulf %315, %330 : vector<4x512xf32>
    %c72 = arith.constant 72 : index
    %c0_125 = arith.constant 0 : index
    %332 = vector.load %arg6[%c72, %c0_125] : memref<101x512xf32, #tpu.memory_space<vmem>>, vector<4x512xf32>
    tpu.vector_store %arg6[%c72, %c0_125], %331 {strides = array<i32>} : memref<101x512xf32, #tpu.memory_space<vmem>>, vector<4x512xf32>,
    %c494_i32 = arith.constant 494 : i32
    %333 = tpu.dynamic_rotate %0 by %c494_i32 dim 1 : vector<4x512xf32>, i32 -> vector<4x512xf32>
    %c-1_i32_126 = arith.constant -1 : i32
    %334 = vector.broadcast %c-1_i32_126 : i32 to vector<1x512xi32>
    %335 = arith.cmpi sge, %7, %334 : vector<1x512xi32>
    %c15_i32_127 = arith.constant 15 : i32
    %336 = vector.broadcast %c15_i32_127 : i32 to vector<1x512xi32>
    %337 = arith.cmpi slt, %7, %336 : vector<1x512xi32>
    %338 = arith.andi %335, %337 : vector<1x512xi1>
    %c-2_i32_128 = arith.constant -2 : i32
    %339 = vector.broadcast %c-2_i32_128 : i32 to vector<1x512xi32>
    %340 = arith.cmpi sge, %5, %339 : vector<1x512xi32>
    %341 = arith.andi %338, %340 : vector<1x512xi1>
    %c14_i32_129 = arith.constant 14 : i32
    %342 = vector.broadcast %c14_i32_129 : i32 to vector<1x512xi32>
    %343 = arith.cmpi slt, %5, %342 : vector<1x512xi32>
    %344 = arith.andi %341, %343 : vector<1x512xi1>
    %cst_130 = arith.constant 1.000000e+00 : f32
    %cst_131 = arith.constant 0.000000e+00 : f32
    %345 = vector.broadcast %cst_130 : f32 to vector<1x512xf32>
    %346 = vector.broadcast %cst_131 : f32 to vector<1x512xf32>
    %347 = arith.select %344, %345, %346 : vector<1x512xi1>, vector<1x512xf32>
    %348 = vector.broadcast %347 : vector<1x512xf32> to vector<4x512xf32>
    %349 = arith.mulf %333, %348 : vector<4x512xf32>
    %c76 = arith.constant 76 : index
    %c0_132 = arith.constant 0 : index
    %350 = vector.load %arg6[%c76, %c0_132] : memref<101x512xf32, #tpu.memory_space<vmem>>, vector<4x512xf32>
    tpu.vector_store %arg6[%c76, %c0_132], %349 {strides = array<i32>} : memref<101x512xf32, #tpu.memory_space<vmem>>, vector<4x512xf32>,
    %c482_i32 = arith.constant 482 : i32
    %351 = tpu.dynamic_rotate %0 by %c482_i32 dim 1 : vector<4x512xf32>, i32 -> vector<4x512xf32>
    %c-2_i32_133 = arith.constant -2 : i32
    %352 = vector.broadcast %c-2_i32_133 : i32 to vector<1x512xi32>
    %353 = arith.cmpi sge, %7, %352 : vector<1x512xi32>
    %c14_i32_134 = arith.constant 14 : i32
    %354 = vector.broadcast %c14_i32_134 : i32 to vector<1x512xi32>
    %355 = arith.cmpi slt, %7, %354 : vector<1x512xi32>
    %356 = arith.andi %353, %355 : vector<1x512xi1>
    %c2_i32_135 = arith.constant 2 : i32
    %357 = vector.broadcast %c2_i32_135 : i32 to vector<1x512xi32>
    %358 = arith.cmpi sge, %5, %357 : vector<1x512xi32>
    %359 = arith.andi %356, %358 : vector<1x512xi1>
    %c18_i32_136 = arith.constant 18 : i32
    %360 = vector.broadcast %c18_i32_136 : i32 to vector<1x512xi32>
    %361 = arith.cmpi slt, %5, %360 : vector<1x512xi32>
    %362 = arith.andi %359, %361 : vector<1x512xi1>
    %cst_137 = arith.constant 1.000000e+00 : f32
    %cst_138 = arith.constant 0.000000e+00 : f32
    %363 = vector.broadcast %cst_137 : f32 to vector<1x512xf32>
    %364 = vector.broadcast %cst_138 : f32 to vector<1x512xf32>
    %365 = arith.select %362, %363, %364 : vector<1x512xi1>, vector<1x512xf32>
    %366 = vector.broadcast %365 : vector<1x512xf32> to vector<4x512xf32>
    %367 = arith.mulf %351, %366 : vector<4x512xf32>
    %c80 = arith.constant 80 : index
    %c0_139 = arith.constant 0 : index
    %368 = vector.load %arg6[%c80, %c0_139] : memref<101x512xf32, #tpu.memory_space<vmem>>, vector<4x512xf32>
    tpu.vector_store %arg6[%c80, %c0_139], %367 {strides = array<i32>} : memref<101x512xf32, #tpu.memory_space<vmem>>, vector<4x512xf32>,
    %c481_i32 = arith.constant 481 : i32
    %369 = tpu.dynamic_rotate %0 by %c481_i32 dim 1 : vector<4x512xf32>, i32 -> vector<4x512xf32>
    %c-2_i32_140 = arith.constant -2 : i32
    %370 = vector.broadcast %c-2_i32_140 : i32 to vector<1x512xi32>
    %371 = arith.cmpi sge, %7, %370 : vector<1x512xi32>
    %c14_i32_141 = arith.constant 14 : i32
    %372 = vector.broadcast %c14_i32_141 : i32 to vector<1x512xi32>
    %373 = arith.cmpi slt, %7, %372 : vector<1x512xi32>
    %374 = arith.andi %371, %373 : vector<1x512xi1>
    %c1_i32_142 = arith.constant 1 : i32
    %375 = vector.broadcast %c1_i32_142 : i32 to vector<1x512xi32>
    %376 = arith.cmpi sge, %5, %375 : vector<1x512xi32>
    %377 = arith.andi %374, %376 : vector<1x512xi1>
    %c17_i32_143 = arith.constant 17 : i32
    %378 = vector.broadcast %c17_i32_143 : i32 to vector<1x512xi32>
    %379 = arith.cmpi slt, %5, %378 : vector<1x512xi32>
    %380 = arith.andi %377, %379 : vector<1x512xi1>
    %cst_144 = arith.constant 1.000000e+00 : f32
    %cst_145 = arith.constant 0.000000e+00 : f32
    %381 = vector.broadcast %cst_144 : f32 to vector<1x512xf32>
    %382 = vector.broadcast %cst_145 : f32 to vector<1x512xf32>
    %383 = arith.select %380, %381, %382 : vector<1x512xi1>, vector<1x512xf32>
    %384 = vector.broadcast %383 : vector<1x512xf32> to vector<4x512xf32>
    %385 = arith.mulf %369, %384 : vector<4x512xf32>
    %c84 = arith.constant 84 : index
    %c0_146 = arith.constant 0 : index
    %386 = vector.load %arg6[%c84, %c0_146] : memref<101x512xf32, #tpu.memory_space<vmem>>, vector<4x512xf32>
    tpu.vector_store %arg6[%c84, %c0_146], %385 {strides = array<i32>} : memref<101x512xf32, #tpu.memory_space<vmem>>, vector<4x512xf32>,
    %c480_i32 = arith.constant 480 : i32
    %387 = tpu.dynamic_rotate %0 by %c480_i32 dim 1 : vector<4x512xf32>, i32 -> vector<4x512xf32>
    %c-2_i32_147 = arith.constant -2 : i32
    %388 = vector.broadcast %c-2_i32_147 : i32 to vector<1x512xi32>
    %389 = arith.cmpi sge, %7, %388 : vector<1x512xi32>
    %c14_i32_148 = arith.constant 14 : i32
    %390 = vector.broadcast %c14_i32_148 : i32 to vector<1x512xi32>
    %391 = arith.cmpi slt, %7, %390 : vector<1x512xi32>
    %392 = arith.andi %389, %391 : vector<1x512xi1>
    %c0_i32_149 = arith.constant 0 : i32
    %393 = vector.broadcast %c0_i32_149 : i32 to vector<1x512xi32>
    %394 = arith.cmpi sge, %5, %393 : vector<1x512xi32>
    %395 = arith.andi %392, %394 : vector<1x512xi1>
    %c16_i32_150 = arith.constant 16 : i32
    %396 = vector.broadcast %c16_i32_150 : i32 to vector<1x512xi32>
    %397 = arith.cmpi slt, %5, %396 : vector<1x512xi32>
    %398 = arith.andi %395, %397 : vector<1x512xi1>
    %cst_151 = arith.constant 1.000000e+00 : f32
    %cst_152 = arith.constant 0.000000e+00 : f32
    %399 = vector.broadcast %cst_151 : f32 to vector<1x512xf32>
    %400 = vector.broadcast %cst_152 : f32 to vector<1x512xf32>
    %401 = arith.select %398, %399, %400 : vector<1x512xi1>, vector<1x512xf32>
    %402 = vector.broadcast %401 : vector<1x512xf32> to vector<4x512xf32>
    %403 = arith.mulf %387, %402 : vector<4x512xf32>
    %c88 = arith.constant 88 : index
    %c0_153 = arith.constant 0 : index
    %404 = vector.load %arg6[%c88, %c0_153] : memref<101x512xf32, #tpu.memory_space<vmem>>, vector<4x512xf32>
    tpu.vector_store %arg6[%c88, %c0_153], %403 {strides = array<i32>} : memref<101x512xf32, #tpu.memory_space<vmem>>, vector<4x512xf32>,
    %c479_i32 = arith.constant 479 : i32
    %405 = tpu.dynamic_rotate %0 by %c479_i32 dim 1 : vector<4x512xf32>, i32 -> vector<4x512xf32>
    %c-2_i32_154 = arith.constant -2 : i32
    %406 = vector.broadcast %c-2_i32_154 : i32 to vector<1x512xi32>
    %407 = arith.cmpi sge, %7, %406 : vector<1x512xi32>
    %c14_i32_155 = arith.constant 14 : i32
    %408 = vector.broadcast %c14_i32_155 : i32 to vector<1x512xi32>
    %409 = arith.cmpi slt, %7, %408 : vector<1x512xi32>
    %410 = arith.andi %407, %409 : vector<1x512xi1>
    %c-1_i32_156 = arith.constant -1 : i32
    %411 = vector.broadcast %c-1_i32_156 : i32 to vector<1x512xi32>
    %412 = arith.cmpi sge, %5, %411 : vector<1x512xi32>
    %413 = arith.andi %410, %412 : vector<1x512xi1>
    %c15_i32_157 = arith.constant 15 : i32
    %414 = vector.broadcast %c15_i32_157 : i32 to vector<1x512xi32>
    %415 = arith.cmpi slt, %5, %414 : vector<1x512xi32>
    %416 = arith.andi %413, %415 : vector<1x512xi1>
    %cst_158 = arith.constant 1.000000e+00 : f32
    %cst_159 = arith.constant 0.000000e+00 : f32
    %417 = vector.broadcast %cst_158 : f32 to vector<1x512xf32>
    %418 = vector.broadcast %cst_159 : f32 to vector<1x512xf32>
    %419 = arith.select %416, %417, %418 : vector<1x512xi1>, vector<1x512xf32>
    %420 = vector.broadcast %419 : vector<1x512xf32> to vector<4x512xf32>
    %421 = arith.mulf %405, %420 : vector<4x512xf32>
    %c92 = arith.constant 92 : index
    %c0_160 = arith.constant 0 : index
    %422 = vector.load %arg6[%c92, %c0_160] : memref<101x512xf32, #tpu.memory_space<vmem>>, vector<4x512xf32>
    tpu.vector_store %arg6[%c92, %c0_160], %421 {strides = array<i32>} : memref<101x512xf32, #tpu.memory_space<vmem>>, vector<4x512xf32>,
    %c478_i32 = arith.constant 478 : i32
    %423 = tpu.dynamic_rotate %0 by %c478_i32 dim 1 : vector<4x512xf32>, i32 -> vector<4x512xf32>
    %c-2_i32_161 = arith.constant -2 : i32
    %424 = vector.broadcast %c-2_i32_161 : i32 to vector<1x512xi32>
    %425 = arith.cmpi sge, %7, %424 : vector<1x512xi32>
    %c14_i32_162 = arith.constant 14 : i32
    %426 = vector.broadcast %c14_i32_162 : i32 to vector<1x512xi32>
    %427 = arith.cmpi slt, %7, %426 : vector<1x512xi32>
    %428 = arith.andi %425, %427 : vector<1x512xi1>
    %c-2_i32_163 = arith.constant -2 : i32
    %429 = vector.broadcast %c-2_i32_163 : i32 to vector<1x512xi32>
    %430 = arith.cmpi sge, %5, %429 : vector<1x512xi32>
    %431 = arith.andi %428, %430 : vector<1x512xi1>
    %c14_i32_164 = arith.constant 14 : i32
    %432 = vector.broadcast %c14_i32_164 : i32 to vector<1x512xi32>
    %433 = arith.cmpi slt, %5, %432 : vector<1x512xi32>
    %434 = arith.andi %431, %433 : vector<1x512xi1>
    %cst_165 = arith.constant 1.000000e+00 : f32
    %cst_166 = arith.constant 0.000000e+00 : f32
    %435 = vector.broadcast %cst_165 : f32 to vector<1x512xf32>
    %436 = vector.broadcast %cst_166 : f32 to vector<1x512xf32>
    %437 = arith.select %434, %435, %436 : vector<1x512xi1>, vector<1x512xf32>
    %438 = vector.broadcast %437 : vector<1x512xf32> to vector<4x512xf32>
    %439 = arith.mulf %423, %438 : vector<4x512xf32>
    %c96 = arith.constant 96 : index
    %c0_167 = arith.constant 0 : index
    %440 = vector.load %arg6[%c96, %c0_167] : memref<101x512xf32, #tpu.memory_space<vmem>>, vector<4x512xf32>
    tpu.vector_store %arg6[%c96, %c0_167], %439 {strides = array<i32>} : memref<101x512xf32, #tpu.memory_space<vmem>>, vector<4x512xf32>,
    %cst_168 = arith.constant 1.000000e+00 : f32
    %441 = vector.broadcast %cst_168 : f32 to vector<1x512xf32>
    %c100 = arith.constant 100 : index
    %c0_169 = arith.constant 0 : index
    %442 = vector.load %arg6[%c100, %c0_169] : memref<101x512xf32, #tpu.memory_space<vmem>>, vector<1x512xf32>
    tpu.vector_store %arg6[%c100, %c0_169], %441 {strides = array<i32>} : memref<101x512xf32, #tpu.memory_space<vmem>>, vector<1x512xf32>,
    %c0_170 = arith.constant 0 : index
    %c0_171 = arith.constant 0 : index
    %443 = vector.load %arg2[%c0_170, %c0_171] : memref<4x101xf32, #tpu.memory_space<vmem>>, vector<4x101xf32>
    %c0_172 = arith.constant 0 : index
    %c0_173 = arith.constant 0 : index
    %444 = vector.load %arg6[%c0_172, %c0_173] : memref<101x512xf32, #tpu.memory_space<vmem>>, vector<101x512xf32>
    %cst_174 = arith.constant dense<0.000000e+00> : vector<4x512xf32>
    %445 = tpu.matmul %443, %444, %cst_174 {dimension_numbers = #tpu.dot_dimension_numbers<[1], [0], [0], [1], [0, 0, 1, 1], [], []>} : vector<4x101xf32>, vector<101x512xf32>, vector<4x512xf32> -> vector<4x512xf32>
    %cst_175 = arith.constant 0.000000e+00 : f32
    %446 = vector.broadcast %cst_175 : f32 to vector<4x512xf32>
    %447 = arith.maximumf %445, %446 : vector<4x512xf32>
    %c17_i32_176 = arith.constant 17 : i32
    %448 = tpu.dynamic_rotate %447 by %c17_i32_176 dim 1 : vector<4x512xf32>, i32 -> vector<4x512xf32>
    %c1_i32_177 = arith.constant 1 : i32
    %449 = vector.broadcast %c1_i32_177 : i32 to vector<1x512xi32>
    %450 = arith.cmpi sge, %7, %449 : vector<1x512xi32>
    %c17_i32_178 = arith.constant 17 : i32
    %451 = vector.broadcast %c17_i32_178 : i32 to vector<1x512xi32>
    %452 = arith.cmpi slt, %7, %451 : vector<1x512xi32>
    %453 = arith.andi %450, %452 : vector<1x512xi1>
    %c1_i32_179 = arith.constant 1 : i32
    %454 = vector.broadcast %c1_i32_179 : i32 to vector<1x512xi32>
    %455 = arith.cmpi sge, %5, %454 : vector<1x512xi32>
    %456 = arith.andi %453, %455 : vector<1x512xi1>
    %c17_i32_180 = arith.constant 17 : i32
    %457 = vector.broadcast %c17_i32_180 : i32 to vector<1x512xi32>
    %458 = arith.cmpi slt, %5, %457 : vector<1x512xi32>
    %459 = arith.andi %456, %458 : vector<1x512xi1>
    %cst_181 = arith.constant 1.000000e+00 : f32
    %cst_182 = arith.constant 0.000000e+00 : f32
    %460 = vector.broadcast %cst_181 : f32 to vector<1x512xf32>
    %461 = vector.broadcast %cst_182 : f32 to vector<1x512xf32>
    %462 = arith.select %459, %460, %461 : vector<1x512xi1>, vector<1x512xf32>
    %463 = vector.broadcast %462 : vector<1x512xf32> to vector<4x512xf32>
    %464 = arith.mulf %448, %463 : vector<4x512xf32>
    %c0_183 = arith.constant 0 : index
    %c0_184 = arith.constant 0 : index
    %465 = vector.load %arg7[%c0_183, %c0_184] : memref<37x512xf32, #tpu.memory_space<vmem>>, vector<4x512xf32>
    tpu.vector_store %arg7[%c0_183, %c0_184], %464 {strides = array<i32>} : memref<37x512xf32, #tpu.memory_space<vmem>>, vector<4x512xf32>,
    %c16_i32_185 = arith.constant 16 : i32
    %466 = tpu.dynamic_rotate %447 by %c16_i32_185 dim 1 : vector<4x512xf32>, i32 -> vector<4x512xf32>
    %c1_i32_186 = arith.constant 1 : i32
    %467 = vector.broadcast %c1_i32_186 : i32 to vector<1x512xi32>
    %468 = arith.cmpi sge, %7, %467 : vector<1x512xi32>
    %c17_i32_187 = arith.constant 17 : i32
    %469 = vector.broadcast %c17_i32_187 : i32 to vector<1x512xi32>
    %470 = arith.cmpi slt, %7, %469 : vector<1x512xi32>
    %471 = arith.andi %468, %470 : vector<1x512xi1>
    %c0_i32_188 = arith.constant 0 : i32
    %472 = vector.broadcast %c0_i32_188 : i32 to vector<1x512xi32>
    %473 = arith.cmpi sge, %5, %472 : vector<1x512xi32>
    %474 = arith.andi %471, %473 : vector<1x512xi1>
    %c16_i32_189 = arith.constant 16 : i32
    %475 = vector.broadcast %c16_i32_189 : i32 to vector<1x512xi32>
    %476 = arith.cmpi slt, %5, %475 : vector<1x512xi32>
    %477 = arith.andi %474, %476 : vector<1x512xi1>
    %cst_190 = arith.constant 1.000000e+00 : f32
    %cst_191 = arith.constant 0.000000e+00 : f32
    %478 = vector.broadcast %cst_190 : f32 to vector<1x512xf32>
    %479 = vector.broadcast %cst_191 : f32 to vector<1x512xf32>
    %480 = arith.select %477, %478, %479 : vector<1x512xi1>, vector<1x512xf32>
    %481 = vector.broadcast %480 : vector<1x512xf32> to vector<4x512xf32>
    %482 = arith.mulf %466, %481 : vector<4x512xf32>
    %c4_192 = arith.constant 4 : index
    %c0_193 = arith.constant 0 : index
    %483 = vector.load %arg7[%c4_192, %c0_193] : memref<37x512xf32, #tpu.memory_space<vmem>>, vector<4x512xf32>
    tpu.vector_store %arg7[%c4_192, %c0_193], %482 {strides = array<i32>} : memref<37x512xf32, #tpu.memory_space<vmem>>, vector<4x512xf32>,
    %c15_i32_194 = arith.constant 15 : i32
    %484 = tpu.dynamic_rotate %447 by %c15_i32_194 dim 1 : vector<4x512xf32>, i32 -> vector<4x512xf32>
    %c1_i32_195 = arith.constant 1 : i32
    %485 = vector.broadcast %c1_i32_195 : i32 to vector<1x512xi32>
    %486 = arith.cmpi sge, %7, %485 : vector<1x512xi32>
    %c17_i32_196 = arith.constant 17 : i32
    %487 = vector.broadcast %c17_i32_196 : i32 to vector<1x512xi32>
    %488 = arith.cmpi slt, %7, %487 : vector<1x512xi32>
    %489 = arith.andi %486, %488 : vector<1x512xi1>
    %c-1_i32_197 = arith.constant -1 : i32
    %490 = vector.broadcast %c-1_i32_197 : i32 to vector<1x512xi32>
    %491 = arith.cmpi sge, %5, %490 : vector<1x512xi32>
    %492 = arith.andi %489, %491 : vector<1x512xi1>
    %c15_i32_198 = arith.constant 15 : i32
    %493 = vector.broadcast %c15_i32_198 : i32 to vector<1x512xi32>
    %494 = arith.cmpi slt, %5, %493 : vector<1x512xi32>
    %495 = arith.andi %492, %494 : vector<1x512xi1>
    %cst_199 = arith.constant 1.000000e+00 : f32
    %cst_200 = arith.constant 0.000000e+00 : f32
    %496 = vector.broadcast %cst_199 : f32 to vector<1x512xf32>
    %497 = vector.broadcast %cst_200 : f32 to vector<1x512xf32>
    %498 = arith.select %495, %496, %497 : vector<1x512xi1>, vector<1x512xf32>
    %499 = vector.broadcast %498 : vector<1x512xf32> to vector<4x512xf32>
    %500 = arith.mulf %484, %499 : vector<4x512xf32>
    %c8_201 = arith.constant 8 : index
    %c0_202 = arith.constant 0 : index
    %501 = vector.load %arg7[%c8_201, %c0_202] : memref<37x512xf32, #tpu.memory_space<vmem>>, vector<4x512xf32>
    tpu.vector_store %arg7[%c8_201, %c0_202], %500 {strides = array<i32>} : memref<37x512xf32, #tpu.memory_space<vmem>>, vector<4x512xf32>,
    %c1_i32_203 = arith.constant 1 : i32
    %502 = tpu.dynamic_rotate %447 by %c1_i32_203 dim 1 : vector<4x512xf32>, i32 -> vector<4x512xf32>
    %c0_i32_204 = arith.constant 0 : i32
    %503 = vector.broadcast %c0_i32_204 : i32 to vector<1x512xi32>
    %504 = arith.cmpi sge, %7, %503 : vector<1x512xi32>
    %c16_i32_205 = arith.constant 16 : i32
    %505 = vector.broadcast %c16_i32_205 : i32 to vector<1x512xi32>
    %506 = arith.cmpi slt, %7, %505 : vector<1x512xi32>
    %507 = arith.andi %504, %506 : vector<1x512xi1>
    %c1_i32_206 = arith.constant 1 : i32
    %508 = vector.broadcast %c1_i32_206 : i32 to vector<1x512xi32>
    %509 = arith.cmpi sge, %5, %508 : vector<1x512xi32>
    %510 = arith.andi %507, %509 : vector<1x512xi1>
    %c17_i32_207 = arith.constant 17 : i32
    %511 = vector.broadcast %c17_i32_207 : i32 to vector<1x512xi32>
    %512 = arith.cmpi slt, %5, %511 : vector<1x512xi32>
    %513 = arith.andi %510, %512 : vector<1x512xi1>
    %cst_208 = arith.constant 1.000000e+00 : f32
    %cst_209 = arith.constant 0.000000e+00 : f32
    %514 = vector.broadcast %cst_208 : f32 to vector<1x512xf32>
    %515 = vector.broadcast %cst_209 : f32 to vector<1x512xf32>
    %516 = arith.select %513, %514, %515 : vector<1x512xi1>, vector<1x512xf32>
    %517 = vector.broadcast %516 : vector<1x512xf32> to vector<4x512xf32>
    %518 = arith.mulf %502, %517 : vector<4x512xf32>
    %c12_210 = arith.constant 12 : index
    %c0_211 = arith.constant 0 : index
    %519 = vector.load %arg7[%c12_210, %c0_211] : memref<37x512xf32, #tpu.memory_space<vmem>>, vector<4x512xf32>
    tpu.vector_store %arg7[%c12_210, %c0_211], %518 {strides = array<i32>} : memref<37x512xf32, #tpu.memory_space<vmem>>, vector<4x512xf32>,
    %c16_212 = arith.constant 16 : index
    %c0_213 = arith.constant 0 : index
    %520 = vector.load %arg7[%c16_212, %c0_213] : memref<37x512xf32, #tpu.memory_space<vmem>>, vector<4x512xf32>
    tpu.vector_store %arg7[%c16_212, %c0_213], %447 {strides = array<i32>} : memref<37x512xf32, #tpu.memory_space<vmem>>, vector<4x512xf32>,
    %c511_i32_214 = arith.constant 511 : i32
    %521 = tpu.dynamic_rotate %447 by %c511_i32_214 dim 1 : vector<4x512xf32>, i32 -> vector<4x512xf32>
    %c0_i32_215 = arith.constant 0 : i32
    %522 = vector.broadcast %c0_i32_215 : i32 to vector<1x512xi32>
    %523 = arith.cmpi sge, %7, %522 : vector<1x512xi32>
    %c16_i32_216 = arith.constant 16 : i32
    %524 = vector.broadcast %c16_i32_216 : i32 to vector<1x512xi32>
    %525 = arith.cmpi slt, %7, %524 : vector<1x512xi32>
    %526 = arith.andi %523, %525 : vector<1x512xi1>
    %c-1_i32_217 = arith.constant -1 : i32
    %527 = vector.broadcast %c-1_i32_217 : i32 to vector<1x512xi32>
    %528 = arith.cmpi sge, %5, %527 : vector<1x512xi32>
    %529 = arith.andi %526, %528 : vector<1x512xi1>
    %c15_i32_218 = arith.constant 15 : i32
    %530 = vector.broadcast %c15_i32_218 : i32 to vector<1x512xi32>
    %531 = arith.cmpi slt, %5, %530 : vector<1x512xi32>
    %532 = arith.andi %529, %531 : vector<1x512xi1>
    %cst_219 = arith.constant 1.000000e+00 : f32
    %cst_220 = arith.constant 0.000000e+00 : f32
    %533 = vector.broadcast %cst_219 : f32 to vector<1x512xf32>
    %534 = vector.broadcast %cst_220 : f32 to vector<1x512xf32>
    %535 = arith.select %532, %533, %534 : vector<1x512xi1>, vector<1x512xf32>
    %536 = vector.broadcast %535 : vector<1x512xf32> to vector<4x512xf32>
    %537 = arith.mulf %521, %536 : vector<4x512xf32>
    %c20_221 = arith.constant 20 : index
    %c0_222 = arith.constant 0 : index
    %538 = vector.load %arg7[%c20_221, %c0_222] : memref<37x512xf32, #tpu.memory_space<vmem>>, vector<4x512xf32>
    tpu.vector_store %arg7[%c20_221, %c0_222], %537 {strides = array<i32>} : memref<37x512xf32, #tpu.memory_space<vmem>>, vector<4x512xf32>,
    %c497_i32_223 = arith.constant 497 : i32
    %539 = tpu.dynamic_rotate %447 by %c497_i32_223 dim 1 : vector<4x512xf32>, i32 -> vector<4x512xf32>
    %c-1_i32_224 = arith.constant -1 : i32
    %540 = vector.broadcast %c-1_i32_224 : i32 to vector<1x512xi32>
    %541 = arith.cmpi sge, %7, %540 : vector<1x512xi32>
    %c15_i32_225 = arith.constant 15 : i32
    %542 = vector.broadcast %c15_i32_225 : i32 to vector<1x512xi32>
    %543 = arith.cmpi slt, %7, %542 : vector<1x512xi32>
    %544 = arith.andi %541, %543 : vector<1x512xi1>
    %c1_i32_226 = arith.constant 1 : i32
    %545 = vector.broadcast %c1_i32_226 : i32 to vector<1x512xi32>
    %546 = arith.cmpi sge, %5, %545 : vector<1x512xi32>
    %547 = arith.andi %544, %546 : vector<1x512xi1>
    %c17_i32_227 = arith.constant 17 : i32
    %548 = vector.broadcast %c17_i32_227 : i32 to vector<1x512xi32>
    %549 = arith.cmpi slt, %5, %548 : vector<1x512xi32>
    %550 = arith.andi %547, %549 : vector<1x512xi1>
    %cst_228 = arith.constant 1.000000e+00 : f32
    %cst_229 = arith.constant 0.000000e+00 : f32
    %551 = vector.broadcast %cst_228 : f32 to vector<1x512xf32>
    %552 = vector.broadcast %cst_229 : f32 to vector<1x512xf32>
    %553 = arith.select %550, %551, %552 : vector<1x512xi1>, vector<1x512xf32>
    %554 = vector.broadcast %553 : vector<1x512xf32> to vector<4x512xf32>
    %555 = arith.mulf %539, %554 : vector<4x512xf32>
    %c24_230 = arith.constant 24 : index
    %c0_231 = arith.constant 0 : index
    %556 = vector.load %arg7[%c24_230, %c0_231] : memref<37x512xf32, #tpu.memory_space<vmem>>, vector<4x512xf32>
    tpu.vector_store %arg7[%c24_230, %c0_231], %555 {strides = array<i32>} : memref<37x512xf32, #tpu.memory_space<vmem>>, vector<4x512xf32>,
    %c496_i32_232 = arith.constant 496 : i32
    %557 = tpu.dynamic_rotate %447 by %c496_i32_232 dim 1 : vector<4x512xf32>, i32 -> vector<4x512xf32>
    %c-1_i32_233 = arith.constant -1 : i32
    %558 = vector.broadcast %c-1_i32_233 : i32 to vector<1x512xi32>
    %559 = arith.cmpi sge, %7, %558 : vector<1x512xi32>
    %c15_i32_234 = arith.constant 15 : i32
    %560 = vector.broadcast %c15_i32_234 : i32 to vector<1x512xi32>
    %561 = arith.cmpi slt, %7, %560 : vector<1x512xi32>
    %562 = arith.andi %559, %561 : vector<1x512xi1>
    %c0_i32_235 = arith.constant 0 : i32
    %563 = vector.broadcast %c0_i32_235 : i32 to vector<1x512xi32>
    %564 = arith.cmpi sge, %5, %563 : vector<1x512xi32>
    %565 = arith.andi %562, %564 : vector<1x512xi1>
    %c16_i32_236 = arith.constant 16 : i32
    %566 = vector.broadcast %c16_i32_236 : i32 to vector<1x512xi32>
    %567 = arith.cmpi slt, %5, %566 : vector<1x512xi32>
    %568 = arith.andi %565, %567 : vector<1x512xi1>
    %cst_237 = arith.constant 1.000000e+00 : f32
    %cst_238 = arith.constant 0.000000e+00 : f32
    %569 = vector.broadcast %cst_237 : f32 to vector<1x512xf32>
    %570 = vector.broadcast %cst_238 : f32 to vector<1x512xf32>
    %571 = arith.select %568, %569, %570 : vector<1x512xi1>, vector<1x512xf32>
    %572 = vector.broadcast %571 : vector<1x512xf32> to vector<4x512xf32>
    %573 = arith.mulf %557, %572 : vector<4x512xf32>
    %c28_239 = arith.constant 28 : index
    %c0_240 = arith.constant 0 : index
    %574 = vector.load %arg7[%c28_239, %c0_240] : memref<37x512xf32, #tpu.memory_space<vmem>>, vector<4x512xf32>
    tpu.vector_store %arg7[%c28_239, %c0_240], %573 {strides = array<i32>} : memref<37x512xf32, #tpu.memory_space<vmem>>, vector<4x512xf32>,
    %c495_i32_241 = arith.constant 495 : i32
    %575 = tpu.dynamic_rotate %447 by %c495_i32_241 dim 1 : vector<4x512xf32>, i32 -> vector<4x512xf32>
    %c-1_i32_242 = arith.constant -1 : i32
    %576 = vector.broadcast %c-1_i32_242 : i32 to vector<1x512xi32>
    %577 = arith.cmpi sge, %7, %576 : vector<1x512xi32>
    %c15_i32_243 = arith.constant 15 : i32
    %578 = vector.broadcast %c15_i32_243 : i32 to vector<1x512xi32>
    %579 = arith.cmpi slt, %7, %578 : vector<1x512xi32>
    %580 = arith.andi %577, %579 : vector<1x512xi1>
    %c-1_i32_244 = arith.constant -1 : i32
    %581 = vector.broadcast %c-1_i32_244 : i32 to vector<1x512xi32>
    %582 = arith.cmpi sge, %5, %581 : vector<1x512xi32>
    %583 = arith.andi %580, %582 : vector<1x512xi1>
    %c15_i32_245 = arith.constant 15 : i32
    %584 = vector.broadcast %c15_i32_245 : i32 to vector<1x512xi32>
    %585 = arith.cmpi slt, %5, %584 : vector<1x512xi32>
    %586 = arith.andi %583, %585 : vector<1x512xi1>
    %cst_246 = arith.constant 1.000000e+00 : f32
    %cst_247 = arith.constant 0.000000e+00 : f32
    %587 = vector.broadcast %cst_246 : f32 to vector<1x512xf32>
    %588 = vector.broadcast %cst_247 : f32 to vector<1x512xf32>
    %589 = arith.select %586, %587, %588 : vector<1x512xi1>, vector<1x512xf32>
    %590 = vector.broadcast %589 : vector<1x512xf32> to vector<4x512xf32>
    %591 = arith.mulf %575, %590 : vector<4x512xf32>
    %c32_248 = arith.constant 32 : index
    %c0_249 = arith.constant 0 : index
    %592 = vector.load %arg7[%c32_248, %c0_249] : memref<37x512xf32, #tpu.memory_space<vmem>>, vector<4x512xf32>
    tpu.vector_store %arg7[%c32_248, %c0_249], %591 {strides = array<i32>} : memref<37x512xf32, #tpu.memory_space<vmem>>, vector<4x512xf32>,
    %cst_250 = arith.constant 1.000000e+00 : f32
    %593 = vector.broadcast %cst_250 : f32 to vector<1x512xf32>
    %c36_251 = arith.constant 36 : index
    %c0_252 = arith.constant 0 : index
    %594 = vector.load %arg7[%c36_251, %c0_252] : memref<37x512xf32, #tpu.memory_space<vmem>>, vector<1x512xf32>
    tpu.vector_store %arg7[%c36_251, %c0_252], %593 {strides = array<i32>} : memref<37x512xf32, #tpu.memory_space<vmem>>, vector<1x512xf32>,
    %c0_253 = arith.constant 0 : index
    %c0_254 = arith.constant 0 : index
    %595 = vector.load %arg3[%c0_253, %c0_254] : memref<4x37xf32, #tpu.memory_space<vmem>>, vector<4x37xf32>
    %c0_255 = arith.constant 0 : index
    %c0_256 = arith.constant 0 : index
    %596 = vector.load %arg7[%c0_255, %c0_256] : memref<37x512xf32, #tpu.memory_space<vmem>>, vector<37x512xf32>
    %cst_257 = arith.constant dense<0.000000e+00> : vector<4x512xf32>
    %597 = tpu.matmul %595, %596, %cst_257 {dimension_numbers = #tpu.dot_dimension_numbers<[1], [0], [0], [1], [0, 0, 1, 1], [], []>} : vector<4x37xf32>, vector<37x512xf32>, vector<4x512xf32> -> vector<4x512xf32>
    %cst_258 = arith.constant 0.000000e+00 : f32
    %598 = vector.broadcast %cst_258 : f32 to vector<4x512xf32>
    %599 = arith.maximumf %597, %598 : vector<4x512xf32>
    %c0_259 = arith.constant 0 : index
    %c0_260 = arith.constant 0 : index
    %600 = vector.load %arg4[%c0_259, %c0_260] : memref<3x5xf32, #tpu.memory_space<vmem>>, vector<3x4xf32>
    %cst_261 = arith.constant dense<0.000000e+00> : vector<3x512xf32>
    %601 = tpu.matmul %600, %599, %cst_261 {dimension_numbers = #tpu.dot_dimension_numbers<[1], [0], [0], [1], [0, 0, 1, 1], [], []>} : vector<3x4xf32>, vector<4x512xf32>, vector<3x512xf32> -> vector<3x512xf32>
    %c0_262 = arith.constant 0 : index
    %c4_263 = arith.constant 4 : index
    %602 = vector.load %arg4[%c0_262, %c4_263] : memref<3x5xf32, #tpu.memory_space<vmem>>, vector<3x1xf32>
    %603 = vector.broadcast %602 : vector<3x1xf32> to vector<3x512xf32>
    %604 = arith.addf %601, %603 : vector<3x512xf32>
    %cst_264 = arith.constant 0.000000e+00 : f32
    %605 = vector.broadcast %cst_264 : f32 to vector<3x512xf32>
    %606 = arith.subf %605, %604 : vector<3x512xf32>
    %607 = math.exp %606 : vector<3x512xf32>
    %cst_265 = arith.constant 1.000000e+00 : f32
    %608 = vector.broadcast %cst_265 : f32 to vector<3x512xf32>
    %609 = arith.addf %608, %607 : vector<3x512xf32>
    %cst_266 = arith.constant 1.000000e+00 : f32
    %610 = vector.broadcast %cst_266 : f32 to vector<3x512xf32>
    %611 = arith.divf %610, %609 : vector<3x512xf32>
    %cst_267 = arith.constant 0.000000e+00 : f32
    %612 = vector.broadcast %cst_267 : f32 to vector<4x512xf32>
    %613 = arith.maximumf %0, %612 : vector<4x512xf32>
    %cst_268 = arith.constant 1.000000e+00 : f32
    %614 = vector.broadcast %cst_268 : f32 to vector<4x512xf32>
    %615 = arith.subf %0, %614 : vector<4x512xf32>
    %cst_269 = arith.constant 0.000000e+00 : f32
    %616 = vector.broadcast %cst_269 : f32 to vector<4x512xf32>
    %617 = arith.maximumf %615, %616 : vector<4x512xf32>
    %618 = arith.subf %613, %617 : vector<4x512xf32>
    %619 = vector.extract_strided_slice %611 {offsets = [0, 0], sizes = [1, 512], strides = [1, 1]} : vector<3x512xf32> to vector<1x512xf32>
    %620 = vector.broadcast %619 : vector<1x512xf32> to vector<4x512xf32>
    %621 = arith.mulf %620, %618 : vector<4x512xf32>
    %cst_270 = arith.constant 1.000000e+00 : f32
    %622 = vector.broadcast %cst_270 : f32 to vector<4x512xf32>
    %623 = arith.subf %622, %618 : vector<4x512xf32>
    %624 = arith.mulf %621, %623 : vector<4x512xf32>
    %625 = arith.addf %618, %624 : vector<4x512xf32>
    %626 = vector.extract_strided_slice %611 {offsets = [1, 0], sizes = [1, 512], strides = [1, 1]} : vector<3x512xf32> to vector<1x512xf32>
    %627 = vector.broadcast %626 : vector<1x512xf32> to vector<4x512xf32>
    %628 = arith.mulf %627, %625 : vector<4x512xf32>
    %cst_271 = arith.constant 1.000000e+00 : f32
    %629 = vector.broadcast %cst_271 : f32 to vector<4x512xf32>
    %630 = arith.subf %629, %625 : vector<4x512xf32>
    %631 = arith.mulf %628, %630 : vector<4x512xf32>
    %632 = arith.addf %625, %631 : vector<4x512xf32>
    %633 = vector.extract_strided_slice %611 {offsets = [2, 0], sizes = [1, 512], strides = [1, 1]} : vector<3x512xf32> to vector<1x512xf32>
    %634 = vector.broadcast %633 : vector<1x512xf32> to vector<4x512xf32>
    %635 = arith.mulf %634, %632 : vector<4x512xf32>
    %cst_272 = arith.constant 1.000000e+00 : f32
    %636 = vector.broadcast %cst_272 : f32 to vector<4x512xf32>
    %637 = arith.subf %636, %632 : vector<4x512xf32>
    %638 = arith.mulf %635, %637 : vector<4x512xf32>
    %639 = arith.addf %632, %638 : vector<4x512xf32>
    %c0_273 = arith.constant 0 : index
    %c0_274 = arith.constant 0 : index
    %640 = vector.load %arg5[%c0_273, %c0_274] : memref<4x512xf32, #tpu.memory_space<vmem>>, vector<4x512xf32>
    tpu.vector_store %arg5[%c0_273, %c0_274], %639 {strides = array<i32>} : memref<4x512xf32, #tpu.memory_space<vmem>>, vector<4x512xf32>,
    return
  }
  func.func @transform_0(%arg0: i32) -> (i32, i32) {
    %c0_i32 = arith.constant 0 : i32
    %c0_i32_0 = arith.constant 0 : i32
    %c0_i32_1 = arith.constant 0 : i32
    return %c0_i32, %c0_i32_0 : i32, i32
  }
  func.func @transform_1(%arg0: i32) -> (i32, i32) {
    %c0_i32 = arith.constant 0 : i32
    %c0_i32_0 = arith.constant 0 : i32
    %c0_i32_1 = arith.constant 0 : i32
    return %c0_i32, %c0_i32_0 : i32, i32
  }
  func.func @transform_2(%arg0: i32) -> (i32, i32) {
    %c0_i32 = arith.constant 0 : i32
    %c0_i32_0 = arith.constant 0 : i32
    %c0_i32_1 = arith.constant 0 : i32
    return %c0_i32, %c0_i32_0 : i32, i32
  }
  func.func @transform_3(%arg0: i32) -> (i32, i32) {
    %c0_i32 = arith.constant 0 : i32
    %c0_i32_0 = arith.constant 0 : i32
    %c0_i32_1 = arith.constant 0 : i32
    return %c0_i32, %c0_i32_0 : i32, i32
  }
  func.func @transform_4(%arg0: i32) -> (i32, i32) {
    %c0_i32 = arith.constant 0 : i32
    %c0_i32_0 = arith.constant 0 : i32
    %c0_i32_1 = arith.constant 0 : i32
    return %c0_i32, %c0_i32_0 : i32, i32
  }
}

</mosaic_0001>

<bundles_post_ra>
// kernel: tpu_custom_call.1
= control target key start
LH: loop header
LB: loop body
LE: loop exit
PB: predicated region body
PF: predicated region fallthrough
CT: control target
= control target key end

     0   :  { %9 = vsyncpa [#allocation5], 0  ;;  %s4175_s0 = inlined_call_operand.hbm [shape: f32[4,512], index: 0, kind: input, shape index: {}]   ;;  %s4176_s1 = inlined_call_operand.hbm [shape: f32[4,101], index: 1, kind: input, shape index: {}]   ;;  %s4177_s2 = inlined_call_operand.hbm [shape: f32[4,37], index: 2, kind: input, shape index: {}]   ;;  %s4178_s3 = inlined_call_operand.hbm [shape: f32[3,5], index: 3, kind: input, shape index: {}]   ;;  %s4179_s4 = inlined_call_operand.hbm [shape: f32[4,512], index: 4, kind: output, shape index: {}]  }
   0x1   :  { %10 = vsyncpa [#allocation8], 0 }
   0x2   :  { %11 = vsyncpa [#allocation11], 0  ;;  %s29_s17 = sshll.u32 %s4176_s1, 4  ;;  %s30_s17 = int_to_ptr.hbm [resolvable:$true] %s29_s17 }
   0x3   :  { %12 = vsyncpa [#allocation6], 0  ;;  %s2473_s18 = smov [#allocation7]   ;;  %s18_s22 = sshll.u32 %s4175_s0, 4  ;;  %s19_s22 = int_to_ptr.hbm [resolvable:$true] %s18_s22 }
   0x4   :  { %s31_s19 = sshll.u32 %s2473_s18, 4  ;;  %s2474_s23 = smov [#allocation4]   ;;  %s32_s19 = int_to_ptr.vmem [resolvable:$true] %s31_s19 }
   0x5   :  { %34 = dma.hbm_to_vmem [thread:$0]  %s30_s17, 64, %s32_s19, [#allocation8]  }
   0x6   :  { %s20_s24 = sshll.u32 %s2474_s23, 4  ;;  %s40_s27 = sshll.u32 %s4177_s2, 4  ;;  %s21_s24 = int_to_ptr.vmem [resolvable:$true] %s20_s24  ;;  %s41_s27 = int_to_ptr.hbm [resolvable:$true] %s40_s27 }
   0x7   :  { %23 = dma.hbm_to_vmem [thread:$0]  %s19_s22, 256, %s21_s24, [#allocation5]  }
   0x8   :  { %s51_s29 = sshll.u32 %s4178_s3, 4  ;;  %s2475_s30 = smov [#allocation9]   ;;  %s52_s29 = int_to_ptr.hbm [resolvable:$true] %s51_s29 }
   0x9   :  { %s42_s5 = sshll.u32 %s2475_s30, 4  ;;  %s2476_s0 = smov [#allocation10]   ;;  %s43_s5 = int_to_ptr.vmem [resolvable:$true] %s42_s5 }
   0xa   :  { %45 = dma.hbm_to_vmem [thread:$0]  %s41_s27, 64, %s43_s5, [#allocation8]  }
   0xb   :  { %s53_s6 = sshll.u32 %s2476_s0, 4  ;;  %s54_s6 = int_to_ptr.vmem [resolvable:$true] %s53_s6 }
   0xc   :  { %56 = dma.hbm_to_vmem [thread:$0]  %s52_s29, 64, %s54_s6, [#allocation11]  }
   0xd   :  { %2465 = dma.done.wait [#allocation5], 256  }
   0xe   :  { %2466 = vsyncadd [#allocation5], 4294967040 }
   0xf   :  { %2467 = dma.done.wait [#allocation8], 128  }
  0x10   :  { %2468 = vsyncadd [#allocation8], 4294967168 }
  0x11   :  { %2469 = dma.done.wait [#allocation11], 64  }
  0x12   :  { %2470 = vsyncadd [#allocation11], 4294967232  ;;  %v2542_v0 = vld [vmem:[#allocation4 + $0x8] sm:$0xff]  ;;  %v2544_v1 = vld [vmem:[#allocation4] sm:$0xff]  ;;  %s2477_s2 = smov 33   ;;  %s2478_s3 = smov 32   ;;  %v4184_v54 = vlaneseq }
  0x13   :  { %4234 = vst [vmem:[#allocation17_spill] sm:$0xff] %v2542_v0  ;;  %s2479_s7 = smov 31   ;;  %s2480_s8 = smov 30  }
  0x14   :  { %4235 = vst [vmem:[#allocation18_spill] sm:$0xff] %v2544_v1  ;;  %s2481_s9 = smov 18   ;;  %s2482_s10 = smov 17   ;;  %v2629_v55 = vand.u32 127, %v4184_v54 }
  0x15   :  { %96 = vst [vmem:[#allocation1 + $0x10] ss:$2 sm:$0xff] %v2542_v0  ;;  %s2483_s11 = smov 16   ;;  %s2484_s12 = smov 15  }
  0x16   :  { %94 = vst [vmem:[#allocation1] ss:$2 sm:$0xff] %v2544_v1  ;;  %s2485_s13 = smov 14   ;;  %s2486_s14 = smov 2   ;;  %v79_v59 = vadd.s32 384, %v2629_v55  ;;  %vm4183_vm5 = vcmp.lt.s32.totalorder %v2629_v55, 33 }
  0x17   :  { %s2487_s15 = smov 1   ;;  %s2488_s16 = smov 127   ;;  %vm4180_vm6 = vcmp.lt.s32.totalorder %v2629_v55, 32  ;;  %vm4188_vm9 = vcmp.lt.s32.totalorder %v2629_v55, 31  ;;  %vm4182_vm12 = vcmp.lt.s32.totalorder %v2629_v55, 30 }
  0x18   :  { %v83_v62 = vand.u32 255, %v79_v59  ;;  %s2489_s17 = smov 126   ;;  %s2491_s18 = smov 114  }
  0x19   :  { %s2492_s19 = smov 113   ;;  %s2493_s20 = smov 112  }
  0x1a   :  { %v2639_v63 = vshra.s32 %v83_v62, 4  ;;  %s2494_s21 = smov 111   ;;  %s2495_s22 = smov 110  }
  0x1b   :  { %s2496_s23 = smov 98   ;;  %s2497_s24 = smov 97  }
  0x1c   :  { %v2548_v2 = vld.sshfl [vmem:[#allocation1 + $0x10] sm:$0xff pattern:$0x75316420]  ;;  %v2550_v3 = vld.sshfl [vmem:[#allocation1 + $0x18] sm:$0xff pattern:$0x75316420] }
  0x1d   :  { %160 = vst [vmem:[#allocation1 + $0x10] ss:$2 sm:$0xff] %v2542_v0  ;;  %v2553_v4 = vld.sshfl [vmem:[#allocation1] sm:$0xff pattern:$0x75316420]  ;;  %vm121_vm0 = vcmp.ge.s32.totalorder %v2639_v63, 2 }
  0x1e   :  { %v2555_v5 = vld.sshfl [vmem:[#allocation1 + $0x8] sm:$0xff pattern:$0x75316420]  ;;  %vm125_vm1 = vcmp.lt.s32.totalorder %v2639_v63, 18  ;;  %vm417_vm13 = vcmp.ge.s32.totalorder %v2639_v63, 1  ;;  %vm421_vm14 = vcmp.lt.s32.totalorder %v2639_v63, 17 }
  0x1f   :  { %158 = vst [vmem:[#allocation1] ss:$2 sm:$0xff] %v2544_v1  ;;  %vm2651_vm3 = vmand %vm121_vm0, %vm125_vm1  ;;  %s2498_s25 = smov 96   ;;  %s2499_s26 = smov 95  }
  0x20   :  { %s2500_s27 = smov 94   ;;  %s2501_s1 = smov 34  }
  0x21   :  { %s2504_s28 = smov [#allocation12]   ;;  %s2257_s0 = sshll.u32 %s4179_s4, 4  ;;  %s2258_s0 = int_to_ptr.hbm [resolvable:$true] %s2257_s0 }
  0x22   :  { %s2255_s29 = sshll.u32 %s2504_s28, 4  ;;  %s2256_s29 = int_to_ptr.vmem [resolvable:$true] %s2255_s29 }
  0x24   :  { %v163_v6 = vld.sshfl [vmem:[#allocation1 + $0x10] sm:$0xff pattern:$0x75316420]  ;;  %v164_v7 = vld.sshfl [vmem:[#allocation1 + $0x18] sm:$0xff pattern:$0x75316420] }
  0x25   :  { %173 = vrot.lane.b32.xlu1 %v163_v6, %s2477_s2  ;;  %224 = vst [vmem:[#allocation1 + $0x10] ss:$2 sm:$0xff] %v2542_v0  ;;  %175 = vrot.lane.b32.xlu2 %v164_v7, %s2477_s2  ;;  %v2642_v6 = vand.u32 15, %v83_v62 }
  0x26   :  { %v2561_v8 = vld.sshfl [vmem:[#allocation1] sm:$0xff pattern:$0x75316420]  ;;  %v2563_v9 = vld.sshfl [vmem:[#allocation1 + $0x8] sm:$0xff pattern:$0x75316420] }
  0x27   :  { %222 = vst [vmem:[#allocation1] ss:$2 sm:$0xff] %v2544_v1  ;;  %vm4204_vm2 = vcmp.ge.s32.totalorder %v2642_v6, 1  ;;  %vm4195_vm7 = vcmp.lt.s32.totalorder %v2642_v6, 15  ;;  %vm4212_vm10 = vcmp.lt.s32.totalorder %v2642_v6, 14  ;;  %vm4210_vm1 = vcmp.ge.s32.totalorder %v2642_v6, 2 }
  0x28   :  { %vm189_vm4 = vmand %vm2651_vm3, %vm4204_vm2 }
  0x29   :  { %vm313_vm8 = vmand %vm2651_vm3, %vm4195_vm7 }
  0x2a   :  { %vm377_vm11 = vmand %vm2651_vm3, %vm4212_vm10 }
  0x2c   :  { %v227_v10 = vld.sshfl [vmem:[#allocation1 + $0x10] sm:$0xff pattern:$0x75316420]  ;;  %v228_v11 = vld.sshfl [vmem:[#allocation1 + $0x18] sm:$0xff pattern:$0x75316420] }
  0x2d   :  { %237 = vrot.lane.b32.xlu0 %v227_v10, %s2478_s3  ;;  %239 = vrot.lane.b32.xlu1 %v228_v11, %s2478_s3  ;;  %276 = vst [vmem:[#allocation1 + $0x10] ss:$2 sm:$0xff] %v2542_v0 }
  0x2e   :  { %v2569_v12 = vld.sshfl [vmem:[#allocation1] sm:$0xff pattern:$0x75316420]  ;;  %v2571_v13 = vld.sshfl [vmem:[#allocation1 + $0x8] sm:$0xff pattern:$0x75316420] }
  0x2f   :  { %274 = vst [vmem:[#allocation1] ss:$2 sm:$0xff] %v2544_v1 }
  0x34   :  { %v280_v14 = vld.sshfl [vmem:[#allocation1 + $0x18] sm:$0xff pattern:$0x75316420]  ;;  %v279_v15 = vld.sshfl [vmem:[#allocation1 + $0x10] sm:$0xff pattern:$0x75316420] }
  0x35   :  { %291 = vrot.lane.b32.xlu0 %v280_v14, %s2479_s7  ;;  %289 = vrot.lane.b32.xlu2 %v279_v15, %s2479_s7  ;;  %340 = vst [vmem:[#allocation1 + $0x10] ss:$2 sm:$0xff] %v2542_v0 }
  0x36   :  { %v2577_v16 = vld.sshfl [vmem:[#allocation1] sm:$0xff pattern:$0x75316420]  ;;  %v2579_v17 = vld.sshfl [vmem:[#allocation1 + $0x8] sm:$0xff pattern:$0x75316420] }
  0x37   :  { %338 = vst [vmem:[#allocation1] ss:$2 sm:$0xff] %v2544_v1 }
  0x3c   :  { %v343_v18 = vld.sshfl [vmem:[#allocation1 + $0x10] sm:$0xff pattern:$0x75316420]  ;;  %v344_v19 = vld.sshfl [vmem:[#allocation1 + $0x18] sm:$0xff pattern:$0x75316420] }
  0x3d   :  { %353 = vrot.lane.b32.xlu1 %v343_v18, %s2480_s8  ;;  %355 = vrot.lane.b32.xlu2 %v344_v19, %s2480_s8  ;;  %392 = vst [vmem:[#allocation1 + $0x10] ss:$2 sm:$0xff] %v2542_v0  ;;  %v4237_v18 = vmov 0  ;;  %v4185_v19 = vmov 0.0  }
  0x3e   :  { %v2585_v20 = vld.sshfl [vmem:[#allocation1] sm:$0xff pattern:$0x75316420]  ;;  %v2587_v21 = vld.sshfl [vmem:[#allocation1 + $0x8] sm:$0xff pattern:$0x75316420] }
  0x3f   :  { %390 = vst [vmem:[#allocation1] ss:$2 sm:$0xff] %v2544_v1  ;;  %v4238_v18 = vsel %vm2651_vm3, 4294967295, %v4237_v18 }
  0x40   :  { %4239 = vst [vmem:[#allocation20_spill] sm:$0xff] %v4238_v18 }
  0x44   :  { %v395_v22 = vld.sshfl [vmem:[#allocation1 + $0x10] sm:$0xff pattern:$0x75316420]  ;;  %v396_v23 = vld.sshfl [vmem:[#allocation1 + $0x18] sm:$0xff pattern:$0x75316420] }
  0x45   :  { %405 = vrot.lane.b32.xlu1 %v395_v22, %s2481_s9  ;;  %407 = vrot.lane.b32.xlu2 %v396_v23, %s2481_s9  ;;  %460 = vst [vmem:[#allocation1 + $0x10] ss:$2 sm:$0xff] %v2542_v0  ;;  %v201_v22 = vsel %vm189_vm4, 1.0, %v4185_v19  ;;  %vm2742_vm4 = vmand %vm417_vm13, %vm421_vm14  ;;  %vm4181_vm14 = vcmp.lt.s32.totalorder %v2629_v55, 18 }
  0x46   :  { %v394_v24 = vld.sshfl [vmem:[#allocation1 + $0x8] sm:$0xff pattern:$0x75316420]  ;;  %v2593_v25 = vld.sshfl [vmem:[#allocation1] sm:$0xff pattern:$0x75316420]  ;;  %vm429_vm13 = vmand %vm2742_vm4, %vm4210_vm1 }
  0x47   :  { %403 = vrot.lane.b32.xlu0 %v394_v24, %s2481_s9  ;;  %458 = vst [vmem:[#allocation1] ss:$2 sm:$0xff] %v2544_v1 }
  0x4c   :  { %v464_v26 = vld.sshfl [vmem:[#allocation1 + $0x18] sm:$0xff pattern:$0x75316420]  ;;  %v463_v27 = vld.sshfl [vmem:[#allocation1 + $0x10] sm:$0xff pattern:$0x75316420] }
  0x4d   :  { %475 = vrot.lane.b32.xlu1 %v464_v26, %s2482_s10  ;;  %504 = vst [vmem:[#allocation1 + $0x10] ss:$2 sm:$0xff] %v2542_v0 }
  0x4e   :  { %v462_v28 = vld.sshfl [vmem:[#allocation1 + $0x8] sm:$0xff pattern:$0x75316420]  ;;  %v2599_v29 = vld.sshfl [vmem:[#allocation1] sm:$0xff pattern:$0x75316420] }
  0x4f   :  { %473 = vrot.lane.b32.xlu0 %v463_v27, %s2482_s10  ;;  %502 = vst [vmem:[#allocation1] ss:$2 sm:$0xff] %v2544_v1 }
  0x54   :  { %v507_v30 = vld.sshfl [vmem:[#allocation1 + $0x10] sm:$0xff pattern:$0x75316420]  ;;  %v508_v31 = vld.sshfl [vmem:[#allocation1 + $0x18] sm:$0xff pattern:$0x75316420] }
  0x55   :  { %517 = vrot.lane.b32.xlu2 %v507_v30, %s2483_s11  ;;  %560 = vst [vmem:[#allocation1 + $0x10] ss:$2 sm:$0xff] %v2542_v0  ;;  %471 = vrot.lane.b32.xlu1 %v462_v28, %s2482_s10 }
  0x56   :  { %v506_v32 = vld.sshfl [vmem:[#allocation1 + $0x8] sm:$0xff pattern:$0x75316420]  ;;  %v2606_v33 = vld.sshfl [vmem:[#allocation1] sm:$0xff pattern:$0x75316420] }
  0x57   :  { %519 = vrot.lane.b32.xlu0 %v508_v31, %s2483_s11  ;;  %558 = vst [vmem:[#allocation1] ss:$2 sm:$0xff] %v2544_v1 }
  0x5c   :  { %v563_v34 = vld.sshfl [vmem:[#allocation1 + $0x10] sm:$0xff pattern:$0x75316420]  ;;  %v564_v35 = vld.sshfl [vmem:[#allocation1 + $0x18] sm:$0xff pattern:$0x75316420] }
  0x5d   :  { %573 = vrot.lane.b32.xlu1 %v563_v34, %s2484_s12  ;;  %604 = vst [vmem:[#allocation1 + $0x10] ss:$2 sm:$0xff] %v2542_v0  ;;  %515 = vrot.lane.b32.xlu2 %v506_v32, %s2483_s11 }
  0x5e   :  { %v562_v36 = vld.sshfl [vmem:[#allocation1 + $0x8] sm:$0xff pattern:$0x75316420]  ;;  %v2613_v37 = vld.sshfl [vmem:[#allocation1] sm:$0xff pattern:$0x75316420] }
  0x5f   :  { %571 = vrot.lane.b32.xlu0 %v562_v36, %s2484_s12  ;;  %602 = vst [vmem:[#allocation1] ss:$2 sm:$0xff] %v2544_v1 }
  0x64   :  { %v607_v38 = vld.sshfl [vmem:[#allocation1 + $0x10] sm:$0xff pattern:$0x75316420]  ;;  %v608_v39 = vld.sshfl [vmem:[#allocation1 + $0x18] sm:$0xff pattern:$0x75316420] }
  0x65   :  { %617 = vrot.lane.b32.xlu1 %v607_v38, %s2485_s13  ;;  %660 = vst [vmem:[#allocation1 + $0x10] ss:$2 sm:$0xff] %v2542_v0  ;;  %575 = vrot.lane.b32.xlu2 %v564_v35, %s2484_s12  ;;  %v265_v35 = vsel %vm2651_vm3, 1.0, %v4185_v19  ;;  %vm1172_vm3 = vcmp.lt.s32.totalorder %v2629_v55, 98 }
  0x66   :  { %v606_v40 = vld.sshfl [vmem:[#allocation1 + $0x8] sm:$0xff pattern:$0x75316420]  ;;  %v605_v41 = vld.sshfl [vmem:[#allocation1] sm:$0xff pattern:$0x75316420] }
  0x67   :  { %615 = vrot.lane.b32.xlu0 %v606_v40, %s2485_s13  ;;  %658 = vst [vmem:[#allocation1] ss:$2 sm:$0xff] %v2544_v1 }
  0x6c   :  { %v664_v42 = vld.sshfl [vmem:[#allocation1 + $0x18] sm:$0xff pattern:$0x75316420]  ;;  %v663_v43 = vld.sshfl [vmem:[#allocation1 + $0x10] sm:$0xff pattern:$0x75316420] }
  0x6d   :  { %675 = vrot.lane.b32.xlu1 %v664_v42, %s2486_s14  ;;  %619 = vrot.lane.b32.xlu2 %v608_v39, %s2485_s13  ;;  %716 = vst [vmem:[#allocation1 + $0x10] ss:$2 sm:$0xff] %v2542_v0 }
  0x6e   :  { %v662_v44 = vld.sshfl [vmem:[#allocation1 + $0x8] sm:$0xff pattern:$0x75316420]  ;;  %v661_v45 = vld.sshfl [vmem:[#allocation1] sm:$0xff pattern:$0x75316420] }
  0x6f   :  { %673 = vrot.lane.b32.xlu0 %v663_v43, %s2486_s14  ;;  %714 = vst [vmem:[#allocation1] ss:$2 sm:$0xff] %v2544_v1 }
  0x74   :  { %v720_v46 = vld.sshfl [vmem:[#allocation1 + $0x18] sm:$0xff pattern:$0x75316420]  ;;  %v719_v47 = vld.sshfl [vmem:[#allocation1 + $0x10] sm:$0xff pattern:$0x75316420] }
  0x75   :  { %613 = vrot.lane.b32.xlu2 %v605_v41, %s2485_s13  ;;  %671 = vrot.lane.b32.xlu1 %v662_v44, %s2486_s14  ;;  %772 = vst [vmem:[#allocation1 + $0x10] ss:$2 sm:$0xff] %v2542_v0 }
  0x76   :  { %v718_v48 = vld.sshfl [vmem:[#allocation1 + $0x8] sm:$0xff pattern:$0x75316420]  ;;  %v717_v49 = vld.sshfl [vmem:[#allocation1] sm:$0xff pattern:$0x75316420] }
  0x77   :  { %669 = vrot.lane.b32.xlu0 %v661_v45, %s2486_s14  ;;  %770 = vst [vmem:[#allocation1] ss:$2 sm:$0xff] %v2544_v1  ;;  %v78_v45 = vadd.s32 256, %v2629_v55 }
  0x7c   :  { %v775_v50 = vld.sshfl [vmem:[#allocation1 + $0x10] sm:$0xff pattern:$0x75316420]  ;;  %v776_v51 = vld.sshfl [vmem:[#allocation1 + $0x18] sm:$0xff pattern:$0x75316420] }
  0x7d   :  { %731 = vrot.lane.b32.xlu2 %v720_v46, %s2487_s15  ;;  %729 = vrot.lane.b32.xlu1 %v719_v47, %s2487_s15  ;;  %783 = vst [vmem:[#allocation2 + $0xd0] sm:$0xf] %v775_v50  ;;  %v317_v47 = vsel %vm313_vm8, 1.0, %v4185_v19 }
  0x7e   :  { %784 = vst [vmem:[#allocation2 + $0xd8] sm:$0xf] %v776_v51  ;;  %v773_v52 = vld.sshfl [vmem:[#allocation1] sm:$0xff pattern:$0x75316420] }
  0x7f   :  { %787 = vst [vmem:[#allocation1 + $0x10] ss:$2 sm:$0xff] %v2542_v0  ;;  %v774_v53 = vld.sshfl [vmem:[#allocation1 + $0x8] sm:$0xff pattern:$0x75316420]  ;;  %v2635_v58 = vpop.permute.xlu2 %175 }
  0x80   :  { %781 = vst [vmem:[#allocation2 + $0xc0] sm:$0xf] %v773_v52 }
  0x81   :  { %782 = vst [vmem:[#allocation2 + $0xc8] sm:$0xf] %v774_v53 }
  0x82   :  { %785 = vst [vmem:[#allocation1] ss:$2 sm:$0xff] %v2544_v1 }
  0x83   :  { %4236 = vst [vmem:[#allocation19_spill] sm:$0xff] %v2635_v58 }
  0x85   :  { %727 = vrot.lane.b32.xlu2 %v718_v48, %s2487_s15  ;;  %725 = vrot.lane.b32.xlu1 %v717_v49, %s2487_s15  ;;  %v82_v48 = vand.u32 255, %v78_v45 }
  0x86   :  { %v791_v56 = vld.sshfl [vmem:[#allocation1 + $0x18] sm:$0xff pattern:$0x75316420]  ;;  %v790_v57 = vld.sshfl [vmem:[#allocation1 + $0x10] sm:$0xff pattern:$0x75316420] }
  0x87   :  { %802 = vrot.lane.b32.xlu0 %v791_v56, %s2488_s16  ;;  %843 = vst [vmem:[#allocation1 + $0x10] ss:$2 sm:$0xff] %v2542_v0  ;;  %v2715_v59 = vshra.s32 %v82_v48, 4  ;;  %v2726_v62 = vand.u32 15, %v82_v48 }
  0x89   :  { %v788_v60 = vld.sshfl [vmem:[#allocation1] sm:$0xff pattern:$0x75316420]  ;;  %v789_v61 = vld.sshfl [vmem:[#allocation1 + $0x8] sm:$0xff pattern:$0x75316420] }
  0x8a   :  { %841 = vst [vmem:[#allocation1] ss:$2 sm:$0xff] %v2544_v1  ;;  %vm416_vm15 = vcmp.ge.s32.totalorder %v2715_v59, 1  ;;  %vm420_vm0 = vcmp.lt.s32.totalorder %v2715_v59, 17  ;;  %vm4223_vm8 = vcmp.ge.s32.totalorder %v2726_v62, 2 }
  0x8d   :  { %796 = vrot.lane.b32.xlu2 %v788_v60, %s2488_s16 }
  0x8e   :  { %v846_v7 = vld.sshfl [vmem:[#allocation1 + $0x10] sm:$0xff pattern:$0x75316420]  ;;  %v847_v10 = vld.sshfl [vmem:[#allocation1 + $0x18] sm:$0xff pattern:$0x75316420] }
  0x8f   :  { %800 = vrot.lane.b32.xlu0 %v790_v57, %s2488_s16  ;;  %887 = vst [vmem:[#allocation1 + $0x10] ss:$2 sm:$0xff] %v2542_v0  ;;  %v2649_v15 = vpop.permute.xlu2 %289 }
  0x91   :  { %v844_v11 = vld.sshfl [vmem:[#allocation1] sm:$0xff pattern:$0x75316420]  ;;  %v845_v14 = vld.sshfl [vmem:[#allocation1 + $0x8] sm:$0xff pattern:$0x75316420] }
  0x92   :  { %852 = vrot.lane.b32.xlu1 %v844_v11, %s2489_s17  ;;  %885 = vst [vmem:[#allocation1] ss:$2 sm:$0xff] %v2544_v1 }
  0x95   :  { %798 = vrot.lane.b32.xlu2 %v789_v61, %s2488_s16  ;;  %v381_v61 = vsel %vm377_vm11, 1.0, %v4185_v19  ;;  %vm2755_vm11 = vmand %vm416_vm15, %vm420_vm0  ;;  %vm4190_vm0 = vcmp.lt.s32.totalorder %v2629_v55, 16 }
  0x96   :  { %v891_v23 = vld.sshfl [vmem:[#allocation1 + $0x18] sm:$0xff pattern:$0x75316420]  ;;  %v890_v24 = vld.sshfl [vmem:[#allocation1 + $0x10] sm:$0xff pattern:$0x75316420]  ;;  %vm428_vm15 = vmand %vm2755_vm11, %vm4223_vm8 }
  0x97   :  { %854 = vrot.lane.b32.xlu0 %v845_v14, %s2489_s17  ;;  %v2663_v26 = vpop.permute.xlu1 %173  ;;  %955 = vst [vmem:[#allocation1 + $0x10] ss:$2 sm:$0xff] %v2542_v0  ;;  %v2671_v34 = vpop.permute.xlu2 %355 }
  0x98   :  { %v178_v27 = vsel %vm4183_vm5, %v2663_v26, %v2635_v58 }
  0x99   :  { %v888_v28 = vld.sshfl [vmem:[#allocation1] sm:$0xff pattern:$0x75316420]  ;;  %v205_v30 = vmul.f32 %v201_v22, %v178_v27  ;;  %v889_v31 = vld.sshfl [vmem:[#allocation1 + $0x8] sm:$0xff pattern:$0x75316420] }
  0x9a   :  { %856 = vrot.lane.b32.xlu1 %v846_v7, %s2489_s17  ;;  %953 = vst [vmem:[#allocation1] ss:$2 sm:$0xff] %v2544_v1 }
  0x9b   :  { %v213_v32 = vrot.slane %v205_v30, 4 }
  0x9d   :  { %858 = vrot.lane.b32.xlu2 %v847_v10, %s2489_s17  ;;  %221 = vst [vmem:[#allocation2 + $0x18] sm:$0xf0] %v213_v32  ;;  %v2775_v32 = vsel %vm2755_vm11, 1.0, %v4185_v19 }
  0x9e   :  { %v958_v36 = vld.sshfl [vmem:[#allocation1 + $0x10] sm:$0xff pattern:$0x75316420]  ;;  %v2677_v38 = vld.sshfl [vmem:[#allocation1 + $0x18] sm:$0xff pattern:$0x75316420] }
  0x9f   :  { %896 = vrot.lane.b32.xlu0 %v888_v28, %s2491_s18  ;;  %v2680_v39 = vpop.permute.xlu0 %237  ;;  %v2682_v40 = vpop.permute.xlu1 %239  ;;  %999 = vst [vmem:[#allocation1 + $0x10] ss:$2 sm:$0xff] %v2542_v0 }
  0xa0   :  { %4240 = vst [vmem:[#allocation21_spill] sm:$0xff] %v2680_v39  ;;  %v242_v41 = vsel %vm4180_vm6, %v2680_v39, %v2682_v40  ;;  %v2698_v46 = vpop.permute.xlu2 %407  ;;  %vm4213_vm6 = vcmp.ge.s32.totalorder %v2726_v62, 1 }
  0xa1   :  { %4241 = vst [vmem:[#allocation22_spill] sm:$0xff] %v2682_v40  ;;  %v956_v42 = vld.sshfl [vmem:[#allocation1] sm:$0xff pattern:$0x75316420]  ;;  %v269_v43 = vmul.f32 %v265_v35, %v242_v41 }
  0xa2   :  { %v957_v44 = vld.sshfl [vmem:[#allocation1 + $0x8] sm:$0xff pattern:$0x75316420]  ;;  %902 = vrot.lane.b32.xlu1 %v891_v23, %s2491_s18  ;;  %4242 = vst [vmem:[#allocation23_spill] sm:$0xff] %v2698_v46 }
  0xa3   :  { %997 = vst [vmem:[#allocation1] ss:$2 sm:$0xff] %v2544_v1 }
  0xa4   :  { %273 = vst [vmem:[#allocation2 + $0x38] sm:$0xf] %v269_v43 }
  0xa5   :  { %964 = vrot.lane.b32.xlu2 %v956_v42, %s2492_s19  ;;  %4249 = vst [vmem:[#allocation26_spill] sm:$0xff] %v2775_v32 }
  0xa6   :  { %v1003_v50 = vld.sshfl [vmem:[#allocation1 + $0x18] sm:$0xff pattern:$0x75316420]  ;;  %v2705_v51 = vld.sshfl [vmem:[#allocation1 + $0x10] sm:$0xff pattern:$0x75316420] }
  0xa7   :  { %900 = vrot.lane.b32.xlu0 %v890_v24, %s2491_s18  ;;  %v2703_v49 = vpop.permute.xlu0 %291  ;;  %1055 = vst [vmem:[#allocation1 + $0x10] ss:$2 sm:$0xff] %v2542_v0 }
  0xa8   :  { %4243 = vst [vmem:[#allocation24_spill] sm:$0xff] %v2703_v49  ;;  %v294_v52 = vsel %vm4188_vm9, %v2649_v15, %v2703_v49  ;;  %vm4196_vm9 = vcmp.lt.s32.totalorder %v2726_v62, 15 }
  0xa9   :  { %v321_v53 = vmul.f32 %v317_v47, %v294_v52 }
  0xaa   :  { %v1001_v56 = vld.sshfl [vmem:[#allocation1 + $0x8] sm:$0xff pattern:$0x75316420]  ;;  %v1000_v57 = vld.sshfl [vmem:[#allocation1] sm:$0xff pattern:$0x75316420]  ;;  %968 = vrot.lane.b32.xlu1 %v958_v36, %s2492_s19 }
  0xab   :  { %1053 = vst [vmem:[#allocation1] ss:$2 sm:$0xff] %v2544_v1  ;;  %v329_v60 = vrot.slane %v321_v53, 4 }
  0xad   :  { %337 = vst [vmem:[#allocation2 + $0x38] sm:$0xf0] %v329_v60  ;;  %1014 = vrot.lane.b32.xlu2 %v1003_v50, %s2493_s20 }
  0xae   :  { %v1058_v11 = vld.sshfl [vmem:[#allocation1 + $0x10] sm:$0xff pattern:$0x75316420]  ;;  %v2735_v14 = vld.sshfl [vmem:[#allocation1 + $0x18] sm:$0xff pattern:$0x75316420] }
  0xaf   :  { %898 = vrot.lane.b32.xlu0 %v889_v31, %s2491_s18  ;;  %v2731_v7 = vpop.permute.xlu1 %353  ;;  %v2733_v10 = vpop.permute.xlu2 %517  ;;  %1099 = vst [vmem:[#allocation1 + $0x10] ss:$2 sm:$0xff] %v2542_v0  ;;  %v437_v31 = vsel %vm429_vm13, 1.0, %v4185_v19  ;;  %vm485_vm13 = vmand %vm2742_vm4, %vm4204_vm2 }
  0xb0   :  { %4244 = vst [vmem:[#allocation25_spill] sm:$0xff] %v2731_v7  ;;  %v358_v22 = vsel %vm4182_vm12, %v2731_v7, %v2671_v34  ;;  %vm633_vm2 = vmand %vm2742_vm4, %vm4212_vm10 }
  0xb1   :  { %v385_v24 = vmul.f32 %v381_v61, %v358_v22 }
  0xb2   :  { %v1056_v27 = vld.sshfl [vmem:[#allocation1] sm:$0xff pattern:$0x75316420]  ;;  %v2747_v28 = vld.sshfl [vmem:[#allocation1 + $0x8] sm:$0xff pattern:$0x75316420]  ;;  %966 = vrot.lane.b32.xlu1 %v957_v44, %s2492_s19 }
  0xb3   :  { %1097 = vst [vmem:[#allocation1] ss:$2 sm:$0xff] %v2544_v1  ;;  %v436_v44 = vsel %vm428_vm15, 1.0, %v4185_v19  ;;  %vm4193_vm15 = vcmp.lt.s32.totalorder %v2629_v55, 17 }
  0xb4   :  { %389 = vst [vmem:[#allocation2 + $0x58] sm:$0xf] %v385_v24 }
  0xb5   :  { %1010 = vrot.lane.b32.xlu2 %v1001_v56, %s2493_s20 }
  0xb6   :  { %v1103_v41 = vld.sshfl [vmem:[#allocation1 + $0x18] sm:$0xff pattern:$0x75316420]  ;;  %v2781_v42 = vld.sshfl [vmem:[#allocation1 + $0x10] sm:$0xff pattern:$0x75316420] }
  0xb7   :  { %970 = vrot.lane.b32.xlu0 %v2677_v38, %s2492_s19  ;;  %v406_v35 = vpop.permute.xlu1 %405  ;;  %v2779_v36 = vpop.permute.xlu2 %515  ;;  %1155 = vst [vmem:[#allocation1 + $0x10] ss:$2 sm:$0xff] %v2542_v0 }
  0xb8   :  { %v410_v43 = vsel %vm4181_vm14, %v406_v35, %v2698_v46  ;;  %v523_v45 = vsel %vm4190_vm0, %v2779_v36, %v2733_v10 }
  0xb9   :  { %v441_v38 = vmul.f32 %v437_v31, %v410_v43  ;;  %v2792_v47 = vpop.permute.xlu0 %403  ;;  %v540_v48 = vmul.f32 %v2775_v32, %v523_v45 }
  0xba   :  { %4250 = vst [vmem:[#allocation27_spill] sm:$0xff] %v2792_v47  ;;  %v2795_v50 = vld.sshfl [vmem:[#allocation1] sm:$0xff pattern:$0x75316420]  ;;  %1008 = vrot.lane.b32.xlu1 %v1000_v57, %s2493_s20  ;;  %v411_v53 = vsel %vm4181_vm14, %v2792_v47, %v406_v35  ;;  %v80_v57 = vand.u32 255, %v2629_v55 }
  0xbb   :  { %v2797_v52 = vld.sshfl [vmem:[#allocation1 + $0x8] sm:$0xff pattern:$0x75316420]  ;;  %v449_v56 = vrot.slane %v441_v38, 4  ;;  %v440_v60 = vmul.f32 %v436_v44, %v411_v53  ;;  %v548_v61 = vrot.slane %v540_v48, 4 }
  0xbc   :  { %1153 = vst [vmem:[#allocation1] ss:$2 sm:$0xff] %v2544_v1  ;;  %v2824_v45 = vshra.s32 %v80_v57, 4 }
  0xbd   :  { %457 = vst [vmem:[#allocation2 + $0x58] sm:$0xf0] %v449_v56  ;;  %v448_v22 = vrot.slane %v440_v60, 4  ;;  %1068 = vrot.lane.b32.xlu2 %v1058_v11, %s2494_s21  ;;  %v2819_v11 = vsel %vm485_vm13, 1.0, %v4185_v19  ;;  %vm484_vm13 = vmand %vm2755_vm11, %vm4213_vm6  ;;  %v2839_v56 = vand.u32 15, %v80_v57  ;;  %v77_v60 = vadd.s32 128, %v2629_v55 }
  0xbe   :  { %556 = vst [vmem:[#allocation2 + $0x70] sm:$0xf0] %v548_v61  ;;  %v2816_v35 = vld.sshfl [vmem:[#allocation1 + $0x18] sm:$0xff pattern:$0x75316420]  ;;  %vm414_vm14 = vcmp.ge.s32.totalorder %v2824_v45, 1 }
  0xbf   :  { %456 = vst [vmem:[#allocation2 + $0x50] sm:$0xf0] %v448_v22  ;;  %1064 = vrot.lane.b32.xlu0 %v1056_v27, %s2494_s21  ;;  %v2811_v24 = vpop.permute.xlu1 %475  ;;  %v2814_v31 = vpop.permute.xlu2 %575  ;;  %v2822_v43 = vld.sshfl [vmem:[#allocation1 + $0x10] sm:$0xff pattern:$0x75316420]  ;;  %vm418_vm12 = vcmp.lt.s32.totalorder %v2824_v45, 17 }
  0xc0   :  { %4251 = vst [vmem:[#allocation28_spill] sm:$0xff] %v2819_v11  ;;  %v2854_v61 = vsel %vm2742_vm4, 1.0, %v4185_v19  ;;  %vm4194_vm5 = vcmp.lt.s32.totalorder %v2839_v56, 14  ;;  %vm4215_vm10 = vcmp.ge.s32.totalorder %v2839_v56, 2 }
  0xc1   :  { %v474_v44 = vpop.permute.xlu0 %473  ;;  %1211 = vst [vmem:[#allocation1 + $0x10] ss:$2 sm:$0xff] %v2542_v0 }
  0xc2   :  { %1012 = vrot.lane.b32.xlu1 %v2705_v51, %s2493_s20  ;;  %v478_v27 = vsel %vm4193_vm15, %v474_v44, %v2811_v24  ;;  %v2847_v51 = vsel %vm484_vm13, 1.0, %v4185_v19  ;;  %4253 = vst [vmem:[#allocation30_spill] sm:$0xff] %v2854_v61  ;;  %vm2864_vm13 = vmand %vm414_vm14, %vm418_vm12 }
  0xc3   :  { %v1156_v38 = vld.sshfl [vmem:[#allocation1] sm:$0xff pattern:$0x75316420]  ;;  %v2832_v48 = vld.sshfl [vmem:[#allocation1 + $0x8] sm:$0xff pattern:$0x75316420]  ;;  %v497_v53 = vmul.f32 %v2819_v11, %v478_v27  ;;  %vm589_vm12 = vmand %vm2742_vm4, %vm4195_vm7 }
  0xc4   :  { %1209 = vst [vmem:[#allocation1] ss:$2 sm:$0xff] %v2544_v1  ;;  %vm630_vm14 = vmand %vm2864_vm13, %vm4194_vm5  ;;  %vm621_vm5 = vcmp.lt.s32.totalorder %v2629_v55, 14  ;;  %vm689_vm4 = vcmp.lt.s32.totalorder %v2639_v63, 16 }
  0xc5   :  { %501 = vst [vmem:[#allocation2 + $0x78] sm:$0xf] %v497_v53  ;;  %1114 = vrot.lane.b32.xlu2 %v1103_v41, %s2495_s22  ;;  %v81_v41 = vand.u32 255, %v77_v60 }
  0xc6   :  { %4252 = vst [vmem:[#allocation29_spill] sm:$0xff] %v2847_v51 }
  0xc7   :  { %1066 = vrot.lane.b32.xlu0 %v2747_v28, %s2494_s21  ;;  %v2856_v22 = vpop.permute.xlu1 %471  ;;  %v2858_v57 = vpop.permute.xlu2 %619  ;;  %v2909_v32 = vand.u32 15, %v81_v41 }
  0xc8   :  { %v479_v27 = vsel %vm4193_vm15, %v2856_v22, %v474_v44  ;;  %v2868_v28 = vld.sshfl [vmem:[#allocation1 + $0x10] sm:$0xff pattern:$0x75316420]  ;;  %v2870_v54 = vld.sshfl [vmem:[#allocation1 + $0x18] sm:$0xff pattern:$0x75316420] }
  0xc9   :  { %v2872_v19 = vpop.permute.xlu0 %519  ;;  %v496_v11 = vmul.f32 %v2847_v51, %v479_v27  ;;  %1267 = vst [vmem:[#allocation1 + $0x10] ss:$2 sm:$0xff] %v2542_v0  ;;  %vm4205_vm15 = vcmp.lt.s32.totalorder %v2629_v55, 15 }
  0xca   :  { %1070 = vrot.lane.b32.xlu1 %v2735_v14, %s2494_s21  ;;  %v522_v44 = vsel %vm4190_vm0, %v2733_v10, %v2872_v19  ;;  %v2896_v14 = vshra.s32 %v81_v41, 4  ;;  %vm588_vm0 = vmand %vm2755_vm11, %vm4196_vm9 }
  0xcb   :  { %v2887_v60 = vld.sshfl [vmem:[#allocation1] sm:$0xff pattern:$0x75316420]  ;;  %v2889_v27 = vld.sshfl [vmem:[#allocation1 + $0x8] sm:$0xff pattern:$0x75316420]  ;;  %v541_v51 = vmul.f32 %v2854_v61, %v522_v44 }
  0xcc   :  { %500 = vst [vmem:[#allocation2 + $0x70] sm:$0xf] %v496_v11  ;;  %v4256_v44 = vmov 0.0   ;;  %vm415_vm7 = vcmp.ge.s32.totalorder %v2896_v14, 1  ;;  %vm419_vm9 = vcmp.lt.s32.totalorder %v2896_v14, 17 }
  0xcd   :  { %1265 = vst [vmem:[#allocation1] ss:$2 sm:$0xff] %v2544_v1  ;;  %v549_v10 = vrot.slane %v541_v51, 4  ;;  %1112 = vrot.lane.b32.xlu2 %v2781_v42, %s2495_s22  ;;  %v2906_v11 = vsel %vm589_vm12, 1.0, %v4256_v44  ;;  %v634_v61 = vsel %vm630_vm14, 1.0, %v4256_v44  ;;  %v2920_v41 = vsel %vm588_vm0, 1.0, %v4256_v44  ;;  %vm2939_vm14 = vmand %vm415_vm7, %vm419_vm9 }
  0xce   :  { %4257 = vst [vmem:[#allocation31_spill] sm:$0xff] %v2906_v11  ;;  %vm4209_vm12 = vcmp.lt.s32.totalorder %v2726_v62, 14  ;;  %vm4211_vm0 = vcmp.lt.s32.totalorder %v2909_v32, 14  ;;  %vm685_vm9 = vcmp.ge.s32.totalorder %v2639_v63, 0 }
  0xcf   :  { %557 = vst [vmem:[#allocation2 + $0x78] sm:$0xf0] %v549_v10  ;;  %1164 = vrot.lane.b32.xlu0 %v1156_v38, %s2496_s23  ;;  %v574_v51 = vpop.permute.xlu1 %573  ;;  %v614_v42 = vpop.permute.xlu2 %613  ;;  %vm631_vm7 = vmand %vm2939_vm14, %vm4211_vm0 }
  0xd0   :  { %v578_v58 = vsel %vm4205_vm15, %v574_v51, %v2814_v31  ;;  %4258 = vst [vmem:[#allocation32_spill] sm:$0xff] %v2920_v41  ;;  %v625_v38 = vsel %vm621_vm5, %v2858_v57, %v614_v42  ;;  %v2929_v49 = vld.sshfl [vmem:[#allocation1 + $0x18] sm:$0xff pattern:$0x75316420] }
  0xd1   :  { %v597_v10 = vmul.f32 %v2906_v11, %v578_v58  ;;  %v2927_v40 = vpop.permute.xlu0 %571  ;;  %v638_v39 = vmul.f32 %v634_v61, %v625_v38  ;;  %v2931_v18 = vld.sshfl [vmem:[#allocation1 + $0x10] sm:$0xff pattern:$0x75316420] }
  0xd2   :  { %1108 = vrot.lane.b32.xlu1 %v2795_v50, %s2495_s22  ;;  %v579_v46 = vsel %vm4205_vm15, %v2927_v40, %v574_v51  ;;  %1311 = vst [vmem:[#allocation1 + $0x10] ss:$2 sm:$0xff] %v2542_v0  ;;  %vm2953_vm15 = vmand %vm2755_vm11, %vm4209_vm12  ;;  %vm684_vm11 = vcmp.ge.s32.totalorder %v2715_v59, 0  ;;  %vm683_vm12 = vcmp.ge.s32.totalorder %v2896_v14, 0 }
  0xd3   :  { %601 = vst [vmem:[#allocation2 + $0x98] sm:$0xf] %v597_v10  ;;  %v596_v58 = vmul.f32 %v2920_v41, %v579_v46  ;;  %v646_v61 = vrot.slane %v638_v39, 4  ;;  %v637_v39 = vsel %vm633_vm2, 1.0, %v4256_v44  ;;  %v636_v10 = vsel %vm2953_vm15, 1.0, %v4256_v44  ;;  %vm2990_vm2 = vmand %vm685_vm9, %vm689_vm4 }
  0xd4   :  { %v2957_v51 = vld.sshfl [vmem:[#allocation1 + $0x8] sm:$0xff pattern:$0x75316420]  ;;  %v2959_v38 = vld.sshfl [vmem:[#allocation1] sm:$0xff pattern:$0x75316420] }
  0xd5   :  { %600 = vst [vmem:[#allocation2 + $0x90] sm:$0xf] %v596_v58  ;;  %1110 = vrot.lane.b32.xlu2 %v2797_v52, %s2495_s22  ;;  %v635_v52 = vsel %vm631_vm7, 1.0, %v4256_v44  ;;  %vm688_vm15 = vcmp.lt.s32.totalorder %v2715_v59, 16  ;;  %vm682_vm7 = vcmp.ge.s32.totalorder %v2824_v45, 0  ;;  %vm686_vm9 = vcmp.lt.s32.totalorder %v2824_v45, 16 }
  0xd6   :  { %654 = vst [vmem:[#allocation2 + $0x80] sm:$0xf0] %v646_v61  ;;  %vm677_vm4 = vcmp.lt.s32.totalorder %v2629_v55, 2  ;;  %vm3023_vm0 = vmand %vm684_vm11, %vm688_vm15  ;;  %vm4214_vm11 = vcmp.ge.s32.totalorder %v2909_v32, 2 }
  0xd7   :  { %1168 = vrot.lane.b32.xlu0 %v2822_v43, %s2496_s23  ;;  %v618_v46 = vpop.permute.xlu1 %617  ;;  %v2970_v23 = vpop.permute.xlu2 %731  ;;  %1309 = vst [vmem:[#allocation1] ss:$2 sm:$0xff] %v2544_v1  ;;  %vm3032_vm6 = vmand %vm682_vm7, %vm686_vm9  ;;  %vm4271_vm9 = vcmp.ge.s32.totalorder %v2726_v62, 1 }
  0xd8   :  { %v622_v30 = vsel %vm621_vm5, %v618_v46, %v2858_v57  ;;  %vm694_vm7 = vmand %vm3032_vm6, %vm4215_vm10 }
  0xd9   :  { %v641_v43 = vmul.f32 %v637_v39, %v622_v30  ;;  %v616_v58 = vpop.permute.xlu0 %615  ;;  %v2982_v61 = vld.sshfl [vmem:[#allocation1 + $0x10] sm:$0xff pattern:$0x75316420]  ;;  %v2994_v7 = vld.sshfl [vmem:[#allocation1 + $0x18] sm:$0xff pattern:$0x75316420] }
  0xda   :  { %1170 = vrot.lane.b32.xlu1 %v2816_v35, %s2496_s23  ;;  %v623_v11 = vsel %vm621_vm5, %v616_v58, %v618_v46  ;;  %v624_v41 = vsel %vm621_vm5, %v614_v42, %v616_v58  ;;  %1367 = vst [vmem:[#allocation1 + $0x10] ss:$2 sm:$0xff] %v2542_v0  ;;  %vm697_vm5 = vmand %vm2990_vm2, %vm4210_vm1  ;;  %vm687_vm1 = vcmp.lt.s32.totalorder %v2896_v14, 16 }
  0xdb   :  { %v649_v50 = vrot.slane %v641_v43, 4  ;;  %v639_v39 = vmul.f32 %v635_v52, %v624_v41  ;;  %v640_v30 = vmul.f32 %v636_v10, %v623_v11  ;;  %vm3042_vm15 = vmand %vm683_vm12, %vm687_vm1  ;;  %vm4216_vm12 = vcmp.lt.s32.totalorder %v2839_v56, 15 }
  0xdc   :  { %vm695_vm1 = vmand %vm3042_vm15, %vm4214_vm11  ;;  %vm4272_vm11 = vcmp.ge.s32.totalorder %v2642_v6, 1 }
  0xdd   :  { %657 = vst [vmem:[#allocation2 + $0x98] sm:$0xf0] %v649_v50  ;;  %v647_v35 = vrot.slane %v639_v39, 4  ;;  %v648_v46 = vrot.slane %v640_v30, 4  ;;  %1220 = vrot.lane.b32.xlu2 %v2887_v60, %s2497_s24  ;;  %v705_v60 = vsel %vm697_vm5, 1.0, %v4256_v44  ;;  %vm696_vm5 = vmand %vm3023_vm0, %vm4223_vm8 }
  0xde   :  { %v3007_v11 = vld.sshfl [vmem:[#allocation1 + $0x8] sm:$0xff pattern:$0x75316420]  ;;  %v3009_v42 = vld.sshfl [vmem:[#allocation1] sm:$0xff pattern:$0x75316420]  ;;  %vm741_vm10 = vmand %vm2990_vm2, %vm4272_vm11 }
  0xdf   :  { %655 = vst [vmem:[#allocation2 + $0x88] sm:$0xf0] %v647_v35  ;;  %1166 = vrot.lane.b32.xlu0 %v2832_v48, %s2496_s23  ;;  %v676_v41 = vpop.permute.xlu1 %675  ;;  %v3013_v52 = vpop.permute.xlu2 %727  ;;  %vm4227_vm11 = vcmp.ge.s32.totalorder %v2839_v56, 1 }
  0xe0   :  { %656 = vst [vmem:[#allocation2 + $0x90] sm:$0xf0] %v648_v46 }
  0xe1   :  { %v674_v48 = vpop.permute.xlu0 %673  ;;  %1365 = vst [vmem:[#allocation1] ss:$2 sm:$0xff] %v2544_v1  ;;  %v1370_v10 = vld.sshfl [vmem:[#allocation1 + $0x10] sm:$0xff pattern:$0x75316420] }
  0xe2   :  { %1282 = vrot.lane.b32.xlu1 %v2929_v49, %s2498_s25  ;;  %v678_v58 = vsel %vm677_vm4, %v674_v48, %v676_v41  ;;  %v704_v49 = vsel %vm696_vm5, 1.0, %v4256_v44  ;;  %vm740_vm5 = vmand %vm3023_vm0, %vm4271_vm9 }
  0xe3   :  { %v709_v39 = vmul.f32 %v705_v60, %v678_v58  ;;  %v702_v60 = vsel %vm694_vm7, 1.0, %v4256_v44  ;;  %vm813_vm7 = vmand %vm3032_vm6, %vm4216_vm12 }
  0xe4   :  { %vm738_vm9 = vmand %vm3032_vm6, %vm4227_vm11 }
  0xe5   :  { %1226 = vrot.lane.b32.xlu2 %v2870_v54, %s2497_s24  ;;  %713 = vst [vmem:[#allocation2 + $0xb8] sm:$0xf] %v709_v39  ;;  %v703_v54 = vsel %vm695_vm1, 1.0, %v4256_v44  ;;  %vm4221_vm1 = vcmp.lt.s32.totalorder %v2629_v55, 1 }
  0xe7   :  { %1222 = vrot.lane.b32.xlu0 %v2889_v27, %s2497_s24  ;;  %v672_v30 = vpop.permute.xlu1 %671  ;;  %v797_v35 = vpop.permute.xlu2 %796 }
  0xe8   :  { %v679_v46 = vsel %vm677_vm4, %v672_v30, %v674_v48 }
  0xe9   :  { %v708_v58 = vmul.f32 %v704_v49, %v679_v46  ;;  %v670_v39 = vpop.permute.xlu0 %669 }
  0xea   :  { %1278 = vrot.lane.b32.xlu1 %v2957_v51, %s2498_s25  ;;  %v680_v27 = vsel %vm677_vm4, %v670_v39, %v672_v30  ;;  %v681_v48 = vsel %vm677_vm4, %v676_v41, %v670_v39  ;;  %v3090_v51 = vsel %vm740_vm5, 1.0, %v4256_v44  ;;  %v3093_v30 = vsel %vm741_vm10, 1.0, %v4256_v44 }
  0xeb   :  { %712 = vst [vmem:[#allocation2 + $0xb0] sm:$0xf] %v708_v58  ;;  %v706_v49 = vmul.f32 %v702_v60, %v681_v48  ;;  %v707_v46 = vmul.f32 %v703_v54, %v680_v27  ;;  %v3096_v41 = vsel %vm813_vm7, 1.0, %v4256_v44  ;;  %vm4222_vm4 = vcmp.lt.s32.totalorder %v2629_v55, 127 }
  0xec   :  { %vm4226_vm10 = vcmp.ge.s32.totalorder %v2909_v32, 1  ;;  %vm4273_vm7 = vcmp.lt.s32.totalorder %v2642_v6, 15 }
  0xed   :  { %1224 = vrot.lane.b32.xlu2 %v2868_v28, %s2497_s24  ;;  %710 = vst [vmem:[#allocation2 + $0xa0] sm:$0xf] %v706_v49  ;;  %vm739_vm5 = vmand %vm3042_vm15, %vm4226_vm10 }
  0xee   :  { %711 = vst [vmem:[#allocation2 + $0xa8] sm:$0xf] %v707_v46  ;;  %vm816_vm12 = vmand %vm2990_vm2, %vm4273_vm7 }
  0xef   :  { %1276 = vrot.lane.b32.xlu0 %v2959_v38, %s2498_s25  ;;  %v730_v60 = vpop.permute.xlu1 %729  ;;  %v799_v28 = vpop.permute.xlu2 %798 }
  0xf0   :  { %v734_v54 = vsel %vm4221_vm1, %v730_v60, %v2970_v23  ;;  %v735_v58 = vsel %vm4221_vm1, %v3013_v52, %v730_v60  ;;  %v807_v39 = vsel %vm4222_vm4, %v797_v35, %v799_v28 }
  0xf1   :  { %v752_v38 = vmul.f32 %v3090_v51, %v735_v58  ;;  %v753_v27 = vmul.f32 %v3093_v30, %v734_v54  ;;  %v821_v48 = vmul.f32 %v3096_v41, %v807_v39  ;;  %v3134_v54 = vsel %vm739_vm5, 1.0, %v4256_v44  ;;  %v1368_v58 = vld.sshfl [vmem:[#allocation1] sm:$0xff pattern:$0x75316420] }
  0xf2   :  { %1322 = vrot.lane.b32.xlu1 %v3007_v11, %s2499_s26  ;;  %v3131_v11 = vsel %vm738_vm9, 1.0, %v4256_v44  ;;  %vm4274_vm9 = vcmp.lt.s32.totalorder %v2726_v62, 15 }
  0xf3   :  { %v760_v49 = vrot.slane %v752_v38, 4  ;;  %v761_v46 = vrot.slane %v753_v27, 4  ;;  %v829_v60 = vrot.slane %v821_v48, 4  ;;  %vm815_vm5 = vmand %vm3023_vm0, %vm4274_vm9  ;;  %vm4275_vm9 = vcmp.lt.s32.totalorder %v2642_v6, 14 }
  0xf5   :  { %768 = vst [vmem:[#allocation2 + $0xb0] sm:$0xf0] %v760_v49  ;;  %287 = vrot.lane.b32.xlu2 %v2579_v17, %s2479_s7  ;;  %v3141_v17 = vsel %vm816_vm12, 1.0, %v4256_v44  ;;  %vm4224_vm12 = vcmp.lt.s32.totalorder %v2909_v32, 15 }
  0xf6   :  { %769 = vst [vmem:[#allocation2 + $0xb8] sm:$0xf0] %v761_v46  ;;  %vm814_vm7 = vmand %vm3042_vm15, %vm4224_vm12 }
  0xf7   :  { %837 = vst [vmem:[#allocation2 + $0xc0] sm:$0xf0] %v829_v60  ;;  %1280 = vrot.lane.b32.xlu0 %v2931_v18, %s2498_s25  ;;  %v726_v39 = vpop.permute.xlu1 %725  ;;  %v3138_v38 = vpop.permute.xlu2 %858 }
  0xf8   :  { %v736_v27 = vsel %vm4221_vm1, %v726_v39, %v3013_v52  ;;  %v737_v48 = vsel %vm4221_vm1, %v2970_v23, %v726_v39  ;;  %v3171_v39 = vsel %vm814_vm7, 1.0, %v4256_v44  ;;  %vm872_vm1 = vmand %vm2990_vm2, %vm4275_vm9  ;;  %vm4276_vm2 = vcmp.lt.s32.totalorder %v2839_v56, 14 }
  0xf9   :  { %v803_v49 = vpop.permute.xlu0 %802  ;;  %v750_v46 = vmul.f32 %v3131_v11, %v737_v48  ;;  %v751_v18 = vmul.f32 %v3134_v54, %v736_v27  ;;  %v1369_v27 = vld.sshfl [vmem:[#allocation1 + $0x8] sm:$0xff pattern:$0x75316420]  ;;  %vm869_vm7 = vmand %vm3032_vm6, %vm4276_vm2  ;;  %vm916_vm2 = vcmp.lt.s32.totalorder %v2639_v63, 15 }
  0xfa   :  { %1376 = vrot.lane.b32.xlu1 %v1368_v58, %s2500_s27  ;;  %v808_v60 = vsel %vm4222_vm4, %v803_v49, %v797_v35  ;;  %v1371_v35 = vld.sshfl [vmem:[#allocation1 + $0x18] sm:$0xff pattern:$0x75316420] }
  0xfb   :  { %v824_v1 = vmul.f32 %v3141_v17, %v808_v60  ;;  %v758_v52 = vrot.slane %v750_v46, 4  ;;  %v759_v0 = vrot.slane %v751_v18, 4  ;;  %v876_v18 = vsel %vm872_vm1, 1.0, %v4256_v44 }
  0xfc   :  { %vm4277_vm1 = vcmp.lt.s32.totalorder %v2909_v32, 14 }
  0xfd   :  { %v832_v23 = vrot.slane %v824_v1, 4  ;;  %766 = vst [vmem:[#allocation2 + $0xa0] sm:$0xf0] %v758_v52  ;;  %1324 = vrot.lane.b32.xlu2 %v2982_v61, %s2499_s26  ;;  %v3174_v1 = vsel %vm815_vm5, 1.0, %v4256_v44  ;;  %vm860_vm5 = vcmp.lt.s32.totalorder %v2629_v55, 126  ;;  %vm870_vm9 = vmand %vm3042_vm15, %vm4277_vm1  ;;  %vm912_vm15 = vcmp.ge.s32.totalorder %v2639_v63, 4294967295 }
  0xfe   :  { %767 = vst [vmem:[#allocation2 + $0xa8] sm:$0xf0] %v759_v0 }
  0xff   :  { %840 = vst [vmem:[#allocation2 + $0xd8] sm:$0xf0] %v832_v23  ;;  %1320 = vrot.lane.b32.xlu0 %v3009_v42, %s2499_s26  ;;  %v3168_v58 = vpop.permute.xlu2 %964 }
 0x101   :  { %v801_v61 = vpop.permute.xlu0 %800 }
 0x102   :  { %1382 = vrot.lane.b32.xlu1 %v1371_v35, %s2500_s27  ;;  %v805_v0 = vsel %vm4222_vm4, %v801_v61, %v803_v49  ;;  %v806_v42 = vsel %vm4222_vm4, %v799_v28, %v801_v61  ;;  %v873_v35 = vsel %vm869_vm7, 1.0, %v4256_v44  ;;  %vm4278_vm4 = vcmp.lt.s32.totalorder %v2726_v62, 14 }
 0x103   :  { %v822_v48 = vmul.f32 %v3171_v39, %v806_v42  ;;  %v823_v46 = vmul.f32 %v3174_v1, %v805_v0  ;;  %vm871_vm6 = vmand %vm3023_vm0, %vm4278_vm4  ;;  %v874_v61 = vsel %vm870_vm9, 1.0, %v4256_v44  ;;  %vm911_vm4 = vcmp.ge.s32.totalorder %v2715_v59, 4294967295 }
 0x104   :  { %v853_v57 = vpop.permute.xlu1 %852  ;;  %v875_v0 = vsel %vm871_vm6, 1.0, %v4256_v44  ;;  %vm3225_vm0 = vmand %vm912_vm15, %vm916_vm2  ;;  %vm915_vm7 = vcmp.lt.s32.totalorder %v2715_v59, 15  ;;  %vm904_vm9 = vcmp.lt.s32.totalorder %v2629_v55, 114  ;;  %vm909_vm2 = vcmp.ge.s32.totalorder %v2824_v45, 4294967295  ;;  %v1437_v47 = vld [vmem:[#allocation2 + $0xa0] sm:$0xff] }
 0x105   :  { %v830_v60 = vrot.slane %v822_v48, 4  ;;  %v831_v52 = vrot.slane %v823_v46, 4  ;;  %v864_v23 = vsel %vm860_vm5, %v3138_v38, %v853_v57  ;;  %1378 = vrot.lane.b32.xlu2 %v1369_v27, %s2500_s27  ;;  %vm3241_vm6 = vmand %vm911_vm4, %vm915_vm7  ;;  %vm913_vm4 = vcmp.lt.s32.totalorder %v2824_v45, 15 }
 0x106   :  { %v880_v28 = vmul.f32 %v876_v18, %v864_v23  ;;  %vm923_vm15 = vmand %vm3241_vm6, %vm4223_vm8  ;;  %vm910_vm7 = vcmp.ge.s32.totalorder %v2896_v14, 4294967295 }
 0x107   :  { %838 = vst [vmem:[#allocation2 + $0xc8] sm:$0xf0] %v830_v60  ;;  %1326 = vrot.lane.b32.xlu0 %v2994_v7, %s2499_s26  ;;  %v3203_v49 = vpop.permute.xlu2 %1014 }
 0x108   :  { %839 = vst [vmem:[#allocation2 + $0xd0] sm:$0xf0] %v831_v52 }
 0x109   :  { %884 = vst [vmem:[#allocation2 + $0xf8] sm:$0xf] %v880_v28  ;;  %v855_v43 = vpop.permute.xlu0 %854 }
 0x10a   :  { %513 = vrot.lane.b32.xlu1 %v2606_v33, %s2483_s11  ;;  %v863_v7 = vsel %vm860_vm5, %v853_v57, %v855_v43 }
 0x10b   :  { %v877_v50 = vmul.f32 %v873_v35, %v863_v7  ;;  %v931_v35 = vsel %vm923_vm15, 1.0, %v4256_v44  ;;  %vm4288_vm15 = vcmp.ge.s32.totalorder %v2839_v56, 2 }
 0x10c   :  { %v857_v42 = vpop.permute.xlu1 %856 }
 0x10d   :  { %881 = vst [vmem:[#allocation2 + $0xe0] sm:$0xf] %v877_v50  ;;  %v861_v27 = vsel %vm860_vm5, %v857_v42, %v3138_v38  ;;  %v862_v33 = vsel %vm860_vm5, %v855_v43, %v857_v42  ;;  %569 = vrot.lane.b32.xlu2 %v2613_v37, %s2484_s12  ;;  %vm4281_vm5 = vcmp.ge.s32.totalorder %v2642_v6, 2 }
 0x10e   :  { %v878_v46 = vmul.f32 %v874_v61, %v862_v33  ;;  %v879_v18 = vmul.f32 %v875_v0, %v861_v27  ;;  %vm924_vm1 = vmand %vm3225_vm0, %vm4281_vm5  ;;  %vm914_vm5 = vcmp.lt.s32.totalorder %v2896_v14, 15 }
 0x10f   :  { %1380 = vrot.lane.b32.xlu0 %v1370_v10, %s2500_s27  ;;  %v3230_v57 = vpop.permute.xlu2 %1010  ;;  %v932_v60 = vsel %vm924_vm1, 1.0, %v4256_v44  ;;  %vm3263_vm1 = vmand %vm909_vm2, %vm913_vm4  ;;  %vm4289_vm4 = vcmp.ge.s32.totalorder %v2909_v32, 2 }
 0x110   :  { %882 = vst [vmem:[#allocation2 + $0xe8] sm:$0xf] %v878_v46  ;;  %vm3271_vm8 = vmand %vm910_vm7, %vm914_vm5 }
 0x111   :  { %883 = vst [vmem:[#allocation2 + $0xf0] sm:$0xf] %v879_v18  ;;  %v897_v37 = vpop.permute.xlu0 %896  ;;  %vm921_vm2 = vmand %vm3263_vm1, %vm4288_vm15  ;;  %vm4225_vm15 = vcmp.lt.s32.totalorder %v2629_v55, 113 }
 0x112   :  { %111 = vrot.lane.b32.xlu1 %v2550_v3, %s2501_s1  ;;  %vm922_vm12 = vmand %vm3271_vm8, %vm4289_vm4  ;;  %v929_v10 = vsel %vm921_vm2, 1.0, %v4256_v44  ;;  %vm4291_vm4 = vcmp.ge.s32.totalorder %v2726_v62, 1 }
 0x113   :  { %vm977_vm7 = vmand %vm3263_vm1, %vm4227_vm11 }
 0x114   :  { %v903_v52 = vpop.permute.xlu1 %902  ;;  %vm978_vm5 = vmand %vm3271_vm8, %vm4226_vm10  ;;  %vm4298_vm10 = vcmp.lt.s32.totalorder %v2726_v62, 15 }
 0x115   :  { %v908_v23 = vsel %vm904_vm9, %v903_v52, %v897_v37  ;;  %171 = vrot.lane.b32.xlu2 %v2563_v9, %s2477_s2  ;;  %vm1083_vm11 = vmand %vm3241_vm6, %vm4298_vm10 }
 0x116   :  { %v936_v3 = vmul.f32 %v932_v60, %v908_v23  ;;  %v3307_v60 = vsel %vm977_vm7, 1.0, %v4256_v44  ;;  %vm4292_vm7 = vcmp.ge.s32.totalorder %v2642_v6, 1 }
 0x117   :  { %351 = vrot.lane.b32.xlu0 %v2587_v21, %s2480_s8  ;;  %v3258_v28 = vpop.permute.xlu2 %1068 }
 0x118   :  { %v944_v9 = vrot.slane %v936_v3, 4 }
 0x119   :  { %v901_v43 = vpop.permute.xlu0 %900 }
 0x11a   :  { %952 = vst [vmem:[#allocation2 + $0xf8] sm:$0xf0] %v944_v9  ;;  %401 = vrot.lane.b32.xlu1 %v2593_v25, %s2481_s9  ;;  %v905_v21 = vsel %vm904_vm9, %v901_v43, %v903_v52  ;;  %v3310_v52 = vsel %vm978_vm5, 1.0, %v4256_v44  ;;  %vm980_vm5 = vmand %vm3225_vm0, %vm4292_vm7  ;;  %vm4294_vm7 = vcmp.lt.s32.totalorder %v2839_v56, 15 }
 0x11b   :  { %v935_v61 = vmul.f32 %v931_v35, %v905_v21 }
 0x11c   :  { %v969_v0 = vpop.permute.xlu1 %968 }
 0x11d   :  { %v943_v42 = vrot.slane %v935_v61, 4  ;;  %469 = vrot.lane.b32.xlu2 %v2599_v29, %s2482_s10  ;;  %v930_v29 = vsel %vm922_vm12, 1.0, %v4256_v44  ;;  %vm4290_vm12 = vcmp.lt.s32.totalorder %v2726_v62, 14 }
 0x11e   :  { %vm1127_vm2 = vmand %vm3241_vm6, %vm4290_vm12  ;;  %vm1116_vm12 = vcmp.lt.s32.totalorder %v2629_v55, 110 }
 0x11f   :  { %951 = vst [vmem:[#allocation2 + $0xf0] sm:$0xf0] %v943_v42  ;;  %109 = vrot.lane.b32.xlu0 %v2548_v2, %s2501_s1  ;;  %v3291_v25 = vpop.permute.xlu2 %1114  ;;  %v1131_v21 = vsel %vm1127_vm2, 1.0, %v4256_v44  ;;  %v3341_v42 = vsel %vm980_vm5, 1.0, %v4256_v44  ;;  %vm4228_vm2 = vcmp.lt.s32.totalorder %v2629_v55, 112  ;;  %vm3402_vm5 = vmand %vm3263_vm1, %vm4294_vm7  ;;  %vm1184_vm7 = vcmp.lt.s32.totalorder %v2639_v63, 14 }
 0x120   :  { %v3436_v50 = vsel %vm3402_vm5, 1.0, %v4256_v44  ;;  %vm1183_vm5 = vcmp.lt.s32.totalorder %v2715_v59, 14 }
 0x121   :  { %v899_v27 = vpop.permute.xlu0 %898 }
 0x122   :  { %285 = vrot.lane.b32.xlu1 %v2577_v16, %s2479_s7  ;;  %v906_v2 = vsel %vm904_vm9, %v899_v27, %v901_v43  ;;  %v907_v33 = vsel %vm904_vm9, %v897_v37, %v899_v27  ;;  %vm979_vm9 = vmand %vm3241_vm6, %vm4291_vm4  ;;  %vm4293_vm4 = vcmp.lt.s32.totalorder %v2909_v32, 14 }
 0x123   :  { %v933_v46 = vmul.f32 %v929_v10, %v907_v33  ;;  %v934_v18 = vmul.f32 %v930_v29, %v906_v2  ;;  %v3357_v33 = vsel %vm3263_vm1, 1.0, %v4256_v44 }
 0x124   :  { %v967_v16 = vpop.permute.xlu1 %966 }
 0x125   :  { %v941_v37 = vrot.slane %v933_v46, 4  ;;  %v942_v23 = vrot.slane %v934_v18, 4  ;;  %v974_v3 = vsel %vm4225_vm15, %v967_v16, %v969_v0  ;;  %v975_v9 = vsel %vm4225_vm15, %v3168_v58, %v967_v16  ;;  %349 = vrot.lane.b32.xlu2 %v2585_v20, %s2480_s8 }
 0x126   :  { %v989_v35 = vmul.f32 %v3307_v60, %v975_v9  ;;  %v990_v43 = vmul.f32 %v3310_v52, %v974_v3  ;;  %v3338_v20 = vsel %vm979_vm9, 1.0, %v4256_v44  ;;  %vm1126_vm9 = vmand %vm3271_vm8, %vm4293_vm4  ;;  %vm4297_vm4 = vcmp.lt.s32.totalorder %v2909_v32, 15 }
 0x127   :  { %949 = vst [vmem:[#allocation2 + $0xe0] sm:$0xf0] %v941_v37  ;;  %235 = vrot.lane.b32.xlu0 %v2571_v13, %s2478_s3  ;;  %v1113_v61 = vpop.permute.xlu2 %1112  ;;  %v1130_v9 = vsel %vm1126_vm9, 1.0, %v4256_v44  ;;  %vm1082_vm9 = vmand %vm3271_vm8, %vm4297_vm4 }
 0x128   :  { %950 = vst [vmem:[#allocation2 + $0xe8] sm:$0xf0] %v942_v23  ;;  %v1117_v10 = vsel %vm1116_vm12, %v1113_v61, %v3291_v25  ;;  %v3439_v38 = vsel %vm1082_vm9, 1.0, %v4256_v44  ;;  %vm1228_vm9 = vcmp.lt.s32.totalorder %v2629_v55, 97 }
 0x129   :  { %993 = vst [vmem:[#allocation2 + $0x100] sm:$0xf] %v989_v35  ;;  %v971_v29 = vpop.permute.xlu0 %970  ;;  %v1135_v27 = vmul.f32 %v1131_v21, %v1117_v10 }
 0x12a   :  { %994 = vst [vmem:[#allocation2 + $0x108] sm:$0xf] %v990_v43  ;;  %233 = vrot.lane.b32.xlu1 %v2569_v12, %s2478_s3  ;;  %v973_v13 = vsel %vm4225_vm15, %v969_v0, %v971_v29  ;;  %v976_v2 = vsel %vm4225_vm15, %v971_v29, %v3168_v58  ;;  %v3364_v12 = vsel %vm3225_vm0, 1.0, %v4256_v44  ;;  %vm1180_vm15 = vcmp.ge.s32.totalorder %v2639_v63, 4294967294 }
 0x12b   :  { %v991_v46 = vmul.f32 %v3338_v20, %v973_v13  ;;  %v992_v18 = vmul.f32 %v3341_v42, %v976_v2  ;;  %v1143_v16 = vrot.slane %v1135_v27, 4  ;;  %v3391_v27 = vsel %vm3271_vm8, 1.0, %v4256_v44  ;;  %vm3441_vm10 = vmand %vm1180_vm15, %vm1184_vm7 }
 0x12c   :  { %v1009_v58 = vpop.permute.xlu1 %1008  ;;  %vm4299_vm8 = vcmp.lt.s32.totalorder %v2642_v6, 15  ;;  %vm1179_vm15 = vcmp.ge.s32.totalorder %v2715_v59, 4294967294 }
 0x12d   :  { %995 = vst [vmem:[#allocation2 + $0x110] sm:$0xf] %v991_v46  ;;  %v1019_v0 = vsel %vm4228_vm2, %v1009_v58, %v3230_v57  ;;  %v1020_v37 = vsel %vm4228_vm2, %v3203_v49, %v1009_v58  ;;  %105 = vrot.lane.b32.xlu2 %v2553_v4, %s2501_s1  ;;  %vm1084_vm4 = vmand %vm3225_vm0, %vm4299_vm8  ;;  %vm4305_vm8 = vcmp.lt.s32.totalorder %v2839_v56, 14 }
 0x12e   :  { %996 = vst [vmem:[#allocation2 + $0x118] sm:$0xf] %v992_v18  ;;  %v1033_v23 = vmul.f32 %v3357_v33, %v1019_v0  ;;  %v1036_v3 = vmul.f32 %v3364_v12, %v1020_v37  ;;  %v3446_v37 = vsel %vm1083_vm11, 1.0, %v4256_v44  ;;  %vm3473_vm7 = vmand %vm1179_vm15, %vm1183_vm5 }
 0x12f   :  { %1151 = vst [vmem:[#allocation2 + $0x130] sm:$0xf0] %v1143_v16  ;;  %107 = vrot.lane.b32.xlu0 %v2555_v5, %s2501_s1  ;;  %v3383_v35 = vpop.permute.xlu2 %1110  ;;  %v3396_v5 = vsel %vm3241_vm6, 1.0, %v4256_v44  ;;  %vm4302_vm6 = vcmp.ge.s32.totalorder %v2642_v6, 1 }
 0x130   :  { %v1041_v43 = vrot.slane %v1033_v23, 4  ;;  %v1044_v21 = vrot.slane %v1036_v3, 4  ;;  %v1118_v10 = vsel %vm1116_vm12, %v3383_v35, %v1113_v61  ;;  %v3449_v23 = vsel %vm1084_vm4, 1.0, %v4256_v44  ;;  %vm1236_vm11 = vmand %vm3441_vm10, %vm4302_vm6 }
 0x131   :  { %v1065_v4 = vpop.permute.xlu0 %1064  ;;  %v1134_v29 = vmul.f32 %v1130_v9, %v1118_v10  ;;  %vm1125_vm4 = vmand %vm3263_vm1, %vm4305_vm8  ;;  %vm4306_vm6 = vcmp.lt.s32.totalorder %v2642_v6, 14  ;;  %vm124_vm1 = vcmp.lt.s32.totalorder %v2715_v59, 18  ;;  %vm1177_vm8 = vcmp.ge.s32.totalorder %v2824_v45, 4294967294 }
 0x132   :  { %1049 = vst [vmem:[#allocation2 + $0x100] sm:$0xf0] %v1041_v43  ;;  %v1129_v7 = vsel %vm1125_vm4, 1.0, %v4256_v44  ;;  %vm1181_vm4 = vcmp.lt.s32.totalorder %v2824_v45, 14 }
 0x133   :  { %1052 = vst [vmem:[#allocation2 + $0x118] sm:$0xf0] %v1044_v21  ;;  %v1142_v13 = vrot.slane %v1134_v29, 4 }
 0x134   :  { %v1013_v2 = vpop.permute.xlu1 %1012 }
 0x135   :  { %v1017_v46 = vsel %vm4228_vm2, %v1013_v2, %v3203_v49  ;;  %v1018_v18 = vsel %vm4228_vm2, %v3230_v57, %v1013_v2  ;;  %1150 = vst [vmem:[#allocation2 + $0x128] sm:$0xf0] %v1142_v13  ;;  %vm4229_vm2 = vcmp.lt.s32.totalorder %v2629_v55, 111 }
 0x136   :  { %v1034_v16 = vmul.f32 %v3391_v27, %v1018_v18  ;;  %v1035_v58 = vmul.f32 %v3396_v5, %v1017_v46  ;;  %v1244_v46 = vsel %vm1236_vm11, 1.0, %v4256_v44  ;;  %v4303_v18 = vmov 0 }
 0x137   :  { %169 = vrot.lane.b32.xlu0 %v2561_v8, %s2477_s2  ;;  %v3431_v63 = vpop.permute.xlu2 %1220  ;;  %v4304_v18 = vsel %vm3473_vm7, 4294967295, %v4303_v18  ;;  %vm4307_vm11 = vcmp.ge.s32.totalorder %v2726_v62, 1 }
 0x138   :  { %v1042_v49 = vrot.slane %v1034_v16, 4  ;;  %v1043_v57 = vrot.slane %v1035_v58, 4  ;;  %vm1235_vm15 = vmand %vm3473_vm7, %vm4307_vm11  ;;  %vm1178_vm11 = vcmp.ge.s32.totalorder %v2896_v14, 4294967294 }
 0x139   :  { %v1067_v0 = vpop.permute.xlu0 %1066  ;;  %v1243_v48 = vsel %vm1235_vm15, 1.0, %v4256_v44  ;;  %vm1182_vm15 = vcmp.lt.s32.totalorder %v2896_v14, 14 }
 0x13a   :  { %1050 = vst [vmem:[#allocation2 + $0x108] sm:$0xf0] %v1042_v49  ;;  %v1074_v3 = vsel %vm4229_vm2, %v1067_v0, %v3258_v28  ;;  %v1075_v9 = vsel %vm4229_vm2, %v1065_v4, %v1067_v0 }
 0x13b   :  { %1051 = vst [vmem:[#allocation2 + $0x110] sm:$0xf0] %v1043_v57  ;;  %v1089_v43 = vmul.f32 %v3436_v50, %v1075_v9  ;;  %v1090_v21 = vmul.f32 %v3439_v38, %v1074_v3 }
 0x13c   :  { %v1071_v10 = vpop.permute.xlu1 %1070 }
 0x13d   :  { %v1073_v29 = vsel %vm4229_vm2, %v3258_v28, %v1071_v10  ;;  %v1076_v13 = vsel %vm4229_vm2, %v1071_v10, %v1065_v4  ;;  %1093 = vst [vmem:[#allocation2 + $0x120] sm:$0xf] %v1089_v43  ;;  %vm1128_vm2 = vmand %vm3225_vm0, %vm4306_vm6  ;;  %vm120_vm0 = vcmp.ge.s32.totalorder %v2715_v59, 2 }
 0x13e   :  { %v1091_v2 = vmul.f32 %v3446_v37, %v1073_v29  ;;  %v1092_v61 = vmul.f32 %v3449_v23, %v1076_v13  ;;  %1094 = vst [vmem:[#allocation2 + $0x128] sm:$0xf] %v1090_v21  ;;  %v1132_v49 = vsel %vm1128_vm2, 1.0, %v4256_v44  ;;  %vm4308_vm2 = vcmp.ge.s32.totalorder %v2642_v6, 2 }
 0x13f   :  { %v1227_v28 = vpop.permute.xlu2 %1226  ;;  %vm3507_vm5 = vmand %vm3441_vm10, %vm4308_vm2 }
 0x140   :  { %1095 = vst [vmem:[#allocation2 + $0x130] sm:$0xf] %v1091_v2  ;;  %v1232_v4 = vsel %vm1228_vm9, %v1227_v28, %v3431_v63  ;;  %vm3525_vm2 = vmand %vm120_vm0, %vm124_vm1  ;;  %vm4320_vm0 = vcmp.lt.s32.totalorder %v2726_v62, 15 }
 0x141   :  { %1096 = vst [vmem:[#allocation2 + $0x138] sm:$0xf] %v1092_v61  ;;  %v1165_v16 = vpop.permute.xlu0 %1164  ;;  %v1248_v58 = vmul.f32 %v1244_v46, %v1232_v4  ;;  %vm312_vm1 = vmand %vm3525_vm2, %vm4320_vm0 }
 0x143   :  { %v1256_v57 = vrot.slane %v1248_v58, 4 }
 0x144   :  { %v1109_v0 = vpop.permute.xlu1 %1108 }
 0x145   :  { %v1119_v3 = vsel %vm1116_vm12, %v1109_v0, %v3383_v35  ;;  %v1120_v9 = vsel %vm1116_vm12, %v3291_v25, %v1109_v0  ;;  %1264 = vst [vmem:[#allocation2 + $0x158] sm:$0xf0] %v1256_v57  ;;  %vm4311_vm12 = vcmp.ge.s32.totalorder %v2726_v62, 2 }
 0x146   :  { %v1133_v43 = vmul.f32 %v1129_v7, %v1119_v3  ;;  %v1136_v21 = vmul.f32 %v1132_v49, %v1120_v9  ;;  %vm3517_vm6 = vmand %vm3473_vm7, %vm4311_vm12 }
 0x147   :  { %v1225_v25 = vpop.permute.xlu2 %1224  ;;  %vm3529_vm12 = vmand %vm1177_vm8, %vm1181_vm4  ;;  %v1199_v7 = vsel %vm3517_vm6, 1.0, %v4256_v44  ;;  %vm4321_vm8 = vcmp.ge.s32.totalorder %v2839_v56, 2 }
 0x148   :  { %v1141_v35 = vrot.slane %v1133_v43, 4  ;;  %v1144_v29 = vrot.slane %v1136_v21, 4  ;;  %v1229_v13 = vsel %vm1228_vm9, %v1225_v25, %v1227_v28  ;;  %vm3534_vm7 = vmand %vm1178_vm11, %vm1182_vm15  ;;  %v1200_v28 = vsel %vm3507_vm5, 1.0, %v4256_v44 }
 0x149   :  { %v1169_v61 = vpop.permute.xlu0 %1168  ;;  %v1247_v46 = vmul.f32 %v1243_v48, %v1229_v13  ;;  %vm1189_vm4 = vmand %vm3529_vm12, %vm4321_vm8  ;;  %vm4322_vm5 = vcmp.ge.s32.totalorder %v2909_v32, 2  ;;  %v316_v43 = vsel %vm312_vm1, 1.0, %v4256_v44  ;;  %vm4323_vm11 = vcmp.lt.s32.totalorder %v2629_v55, 31 }
 0x14a   :  { %1149 = vst [vmem:[#allocation2 + $0x120] sm:$0xf0] %v1141_v35  ;;  %vm1190_vm6 = vmand %vm3534_vm7, %vm4322_vm5  ;;  %v1197_v10 = vsel %vm1189_vm4, 1.0, %v4256_v44  ;;  %vm4324_vm15 = vcmp.ge.s32.totalorder %v2839_v56, 1  ;;  %vm4325_vm1 = vcmp.ge.s32.totalorder %v2909_v32, 1  ;;  %vm1284_vm4 = vcmp.lt.s32.totalorder %v2629_v55, 96 }
 0x14b   :  { %1152 = vst [vmem:[#allocation2 + $0x138] sm:$0xf0] %v1144_v29  ;;  %v1255_v49 = vrot.slane %v1247_v46, 4  ;;  %v1198_v59 = vsel %vm1190_vm6, 1.0, %v4256_v44  ;;  %vm1233_vm0 = vmand %vm3529_vm12, %vm4324_vm15  ;;  %vm4233_vm6 = vcmp.lt.s32.totalorder %v2629_v55, 95 }
 0x14c   :  { %v1171_v57 = vpop.permute.xlu1 %1170  ;;  %vm1234_vm8 = vmand %vm3534_vm7, %vm4325_vm1 }
 0x14d   :  { %v1176_v0 = vsel %vm1172_vm3, %v1171_v57, %v1165_v16  ;;  %v1173_v48 = vsel %vm1172_vm3, %v1169_v61, %v1171_v57  ;;  %1263 = vst [vmem:[#allocation2 + $0x150] sm:$0xf0] %v1255_v49 }
 0x14e   :  { %v1204_v3 = vmul.f32 %v1200_v28, %v1176_v0  ;;  %v1203_v9 = vmul.f32 %v1199_v7, %v1173_v48  ;;  %v4326_v48 = vlaneseq }
 0x14f   :  { %v3561_v21 = vpop.permute.xlu2 %287 }
 0x150   :  { %1208 = vst [vmem:[#allocation2 + $0x158] sm:$0xf] %v1204_v3  ;;  %v295_v35 = vsel %vm4323_vm11, %v3561_v21, %v2649_v15  ;;  %vm4328_vm11 = vcmp.lt.s32.totalorder %v2839_v56, 15 }
 0x151   :  { %1207 = vst [vmem:[#allocation2 + $0x150] sm:$0xf] %v1203_v9  ;;  %v1167_v29 = vpop.permute.xlu0 %1166  ;;  %v320_v13 = vmul.f32 %v316_v43, %v295_v35  ;;  %v2502_v9 = vmov 1.0   ;;  %vm586_vm15 = vmand %vm2864_vm13, %vm4328_vm11 }
 0x152   :  { %v1174_v46 = vsel %vm1172_vm3, %v1167_v29, %v1169_v61  ;;  %v1175_v28 = vsel %vm1172_vm3, %v1165_v16, %v1167_v29  ;;  %v1241_v16 = vsel %vm1233_vm0, 1.0, %v4256_v44  ;;  %v1242_v61 = vsel %vm1234_vm8, 1.0, %v4256_v44 }
 0x153   :  { %v1201_v7 = vmul.f32 %v1197_v10, %v1175_v28  ;;  %v1202_v49 = vmul.f32 %v1198_v59, %v1174_v46  ;;  %v328_v57 = vrot.slane %v320_v13, 4  ;;  %vm1411_vm3 = vcmp.lt.s32.totalorder %v4326_v48, 512 }
 0x154   :  { %v1283_v0 = vpop.permute.xlu1 %1282  ;;  %1414 = vst.msk [vmem:[#allocation2 + $0x184] ss:$8 sm:$0xf] %vm1411_vm3, %v2502_v9  ;;  %vm4330_vm8 = vnez %v4304_v18 }
 0x155   :  { %1205 = vst [vmem:[#allocation2 + $0x140] sm:$0xf] %v1201_v7 }
 0x156   :  { %1206 = vst [vmem:[#allocation2 + $0x148] sm:$0xf] %v1202_v49 }
 0x157   :  { %336 = vst [vmem:[#allocation2 + $0x30] sm:$0xf0] %v328_v57  ;;  %v3581_v15 = vpop.permute.xlu2 %1324 }
 0x158   :  { %1783 = vst.msk [vmem:[#allocation3 + $0x84] ss:$8 sm:$0xf] %vm1411_vm3, %v2502_v9  ;;  %vm4331_vm3 = vcmp.lt.s32.totalorder %v2629_v55, 15 }
 0x159   :  { %v1223_v3 = vpop.permute.xlu0 %1222 }
 0x15a   :  { %v1230_v43 = vsel %vm1228_vm9, %v1223_v3, %v1225_v25  ;;  %v1231_v10 = vsel %vm1228_vm9, %v3431_v63, %v1223_v3  ;;  %v1297_v25 = vsel %vm3529_vm12, 1.0, %v4256_v44  ;;  %v1300_v63 = vsel %vm3441_vm10, 1.0, %v4256_v44 }
 0x15b   :  { %v1245_v59 = vmul.f32 %v1241_v16, %v1231_v10  ;;  %v1246_v35 = vmul.f32 %v1242_v61, %v1230_v43  ;;  %vm4327_vm9 = vcmp.lt.s32.totalorder %v2909_v32, 15  ;;  %v3622_v10 = vsel %vm586_vm15, 1.0, %v4256_v44 }
 0x15c   :  { %v1279_v29 = vpop.permute.xlu1 %1278  ;;  %vm1338_vm5 = vmand %vm3534_vm7, %vm4327_vm9  ;;  %vm1384_vm15 = vcmp.lt.s32.totalorder %v2629_v55, 94 }
 0x15d   :  { %v1253_v13 = vrot.slane %v1245_v59, 4  ;;  %v1254_v46 = vrot.slane %v1246_v35, 4  ;;  %v1342_v48 = vsel %vm1338_vm5, 1.0, %v4256_v44  ;;  %vm4329_vm0 = vmmov %vm4327_vm9  ;;  %v1298_v35 = vsel %vm3534_vm7, 1.0, %v4256_v44 }
 0x15e   :  { %vm587_vm1 = vmand %vm2939_vm14, %vm4329_vm0  ;;  %vm4333_vm5 = vcmp.lt.s32.totalorder %v2839_v56, 14  ;;  %vm4334_vm0 = vcmp.ge.s32.totalorder %v2726_v62, 1 }
 0x15f   :  { %1261 = vst [vmem:[#allocation2 + $0x140] sm:$0xf0] %v1253_v13  ;;  %v3592_v28 = vpop.permute.xlu2 %1378  ;;  %v3625_v59 = vsel %vm587_vm1, 1.0, %v4256_v44  ;;  %vm4332_vm9 = vmmov %vm4331_vm3 }
 0x160   :  { %1262 = vst [vmem:[#allocation2 + $0x148] sm:$0xf0] %v1254_v46  ;;  %vm1393_vm11 = vmand %vm3529_vm12, %vm4333_vm5  ;;  %vm4337_vm5 = vcmp.lt.s32.totalorder %v2642_v6, 14 }
 0x161   :  { %v1277_v7 = vpop.permute.xlu0 %1276  ;;  %vm188_vm1 = vmand %vm3525_vm2, %vm4334_vm0 }
 0x162   :  { %v1287_v49 = vsel %vm1284_vm4, %v1277_v7, %v1279_v29  ;;  %v1288_v57 = vsel %vm1284_vm4, %v1283_v0, %v1277_v7 }
 0x163   :  { %v1301_v16 = vmul.f32 %v1297_v25, %v1287_v49  ;;  %v1304_v61 = vmul.f32 %v1300_v63, %v1288_v57  ;;  %v1299_v25 = vsel %vm4330_vm8, 1.0, %v4256_v44 }
 0x164   :  { %v1323_v3 = vpop.permute.xlu1 %1322 }
 0x165   :  { %1305 = vst [vmem:[#allocation2 + $0x160] sm:$0xf] %v1301_v16  ;;  %v1330_v9 = vsel %vm4233_vm6, %v1323_v3, %v3581_v15 }
 0x166   :  { %1308 = vst [vmem:[#allocation2 + $0x178] sm:$0xf] %v1304_v61  ;;  %v1346_v43 = vmul.f32 %v1342_v48, %v1330_v9  ;;  %v1397_v9 = vsel %vm1393_vm11, 1.0, %v4256_v44  ;;  %vm1396_vm11 = vmand %vm3441_vm10, %vm4337_vm5  ;;  %vm1473_vm5 = vcmask 1044480  }
 0x167   :  { %v570_v13 = vpop.permute.xlu2 %569 }
 0x168   :  { %v1354_v46 = vrot.slane %v1346_v43, 4  ;;  %v580_v63 = vsel %vm4331_vm3, %v570_v13, %v2927_v40  ;;  %v581_v7 = vsel %vm4332_vm9, %v2814_v31, %v570_v13  ;;  %vm4336_vm9 = vcmp.lt.s32.totalorder %v2629_v55, 33 }
 0x169   :  { %v1281_v49 = vpop.permute.xlu0 %1280  ;;  %v594_v57 = vmul.f32 %v3622_v10, %v581_v7  ;;  %v595_v16 = vmul.f32 %v3625_v59, %v580_v63 }
 0x16a   :  { %1362 = vst [vmem:[#allocation2 + $0x168] sm:$0xf0] %v1354_v46  ;;  %v1285_v61 = vsel %vm1284_vm4, %v1281_v49, %v1283_v0  ;;  %v1286_v40 = vsel %vm1284_vm4, %v1279_v29, %v1281_v49  ;;  %vm4335_vm4 = vcmp.lt.s32.totalorder %v2839_v56, 15 }
 0x16b   :  { %v1302_v31 = vmul.f32 %v1298_v35, %v1286_v40  ;;  %v1303_v48 = vmul.f32 %v1299_v25, %v1285_v61  ;;  %598 = vst [vmem:[#allocation2 + $0x80] sm:$0xf] %v594_v57  ;;  %vm1337_vm3 = vmand %vm3529_vm12, %vm4335_vm4  ;;  %v200_v35 = vsel %vm188_vm1, 1.0, %v4256_v44  ;;  %vm4338_vm12 = vcmp.ge.s32.totalorder %v2839_v56, 1 }
 0x16c   :  { %599 = vst [vmem:[#allocation2 + $0x88] sm:$0xf] %v595_v16  ;;  %v1377_v43 = vpop.permute.xlu1 %1376  ;;  %v1341_v46 = vsel %vm1337_vm3, 1.0, %v4256_v44  ;;  %vm482_vm0 = vmand %vm2864_vm13, %vm4338_vm12  ;;  %v1400_v16 = vsel %vm1396_vm11, 1.0, %v4256_v44  ;;  %vm4339_vm1 = vcmp.ge.s32.totalorder %v2909_v32, 1  ;;  %vm4340_vm3 = vcmp.lt.s32.totalorder %v2726_v62, 15 }
 0x16d   :  { %1306 = vst [vmem:[#allocation2 + $0x168] sm:$0xf] %v1302_v31  ;;  %v1387_v0 = vsel %vm1384_vm15, %v1377_v43, %v3592_v28  ;;  %vm483_vm4 = vmand %vm2939_vm14, %vm4339_vm1  ;;  %vm4341_vm11 = vcmp.lt.s32.totalorder %v2642_v6, 15  ;;  %vm118_vm1 = vcmp.ge.s32.totalorder %v2824_v45, 2  ;;  %v3701_v31 = vsel %vm482_vm0, 1.0, %v4256_v44 }
 0x16e   :  { %1307 = vst [vmem:[#allocation2 + $0x170] sm:$0xf] %v1303_v48  ;;  %v1401_v29 = vmul.f32 %v1397_v9, %v1387_v0  ;;  %vm1340_vm12 = vmand %vm3441_vm10, %vm4341_vm11  ;;  %v3704_v48 = vsel %vm483_vm4, 1.0, %v4256_v44  ;;  %vm4342_vm10 = vcmp.lt.s32.totalorder %v2629_v55, 17  ;;  %vm4346_vm4 = vcmp.lt.s32.totalorder %v2629_v55, 95 }
 0x16f   :  { %v3663_v13 = vpop.permute.xlu2 %171  ;;  %v1344_v8 = vsel %vm1340_vm12, 1.0, %v4256_v44  ;;  %vm4348_vm11 = vcmp.lt.s32.totalorder %v2909_v32, 14  ;;  %vm4351_vm12 = vcmp.lt.s32.totalorder %v2839_v56, 14 }
 0x170   :  { %1405 = vst [vmem:[#allocation2 + $0x180] sm:$0xf] %v1401_v29  ;;  %v179_v25 = vsel %vm4336_vm9, %v3663_v13, %v2663_v26  ;;  %vm1339_vm9 = vmand %vm4330_vm8, %vm4340_vm3 }
 0x171   :  { %v1321_v4 = vpop.permute.xlu0 %1320  ;;  %v204_v63 = vmul.f32 %v200_v35, %v179_v25  ;;  %vm4343_vm3 = vmmov %vm4342_vm10 }
 0x172   :  { %v1331_v7 = vsel %vm4233_vm6, %v1321_v4, %v1323_v3  ;;  %vm122_vm6 = vcmp.lt.s32.totalorder %v2824_v45, 18 }
 0x173   :  { %v1345_v49 = vmul.f32 %v1341_v46, %v1331_v7  ;;  %v212_v57 = vrot.slane %v204_v63, 4  ;;  %vm3715_vm0 = vmand %vm118_vm1, %vm122_vm6  ;;  %vm4352_vm1 = vcmp.lt.s32.totalorder %v2629_v55, 16 }
 0x174   :  { %v3685_v26 = vpop.permute.xlu1 %1382  ;;  %vm3730_vm6 = vmand %vm3534_vm7, %vm4348_vm11  ;;  %vm123_vm11 = vcmp.lt.s32.totalorder %v2896_v14, 18 }
 0x175   :  { %v1353_v3 = vrot.slane %v1345_v49, 4  ;;  %220 = vst [vmem:[#allocation2 + $0x10] sm:$0xf0] %v212_v57  ;;  %v1388_v61 = vsel %vm1384_vm15, %v3685_v26, %v1377_v43  ;;  %v1343_v43 = vsel %vm1339_vm9, 1.0, %v4256_v44  ;;  %vm4347_vm9 = vmmov %vm4346_vm4 }
 0x176   :  { %v1404_v40 = vmul.f32 %v1400_v16, %v1388_v61  ;;  %v3737_v16 = vsel %vm2864_vm13, 1.0, %v4256_v44  ;;  %vm374_vm7 = vmand %vm3715_vm0, %vm4351_vm12  ;;  %vm4358_vm12 = vcmp.ge.s32.totalorder %v2839_v56, 2 }
 0x177   :  { %1361 = vst [vmem:[#allocation2 + $0x160] sm:$0xf0] %v1353_v3  ;;  %v470_v9 = vpop.permute.xlu2 %469  ;;  %v1465_v0 = vld [vmem:[#allocation2 + $0x180] sm:$0x1f] }
 0x178   :  { %1408 = vst [vmem:[#allocation2 + $0x198] sm:$0xf] %v1404_v40  ;;  %v480_v29 = vsel %vm4342_vm10, %v470_v9, %v2856_v22  ;;  %v481_v45 = vsel %vm4343_vm3, %v2811_v24, %v470_v9  ;;  %2269 = vmatpush.msk.msra.mxu0 %vm1473_vm5, %v1465_v0  ;;  %vm4353_vm10 = vmmov %vm4352_vm1  ;;  %vm4354_vm3 = vcmp.lt.s32.totalorder %v2726_v62, 14 }
 0x179   :  { %v1327_v46 = vpop.permute.xlu0 %1326  ;;  %v494_v25 = vmul.f32 %v3701_v31, %v481_v45  ;;  %v495_v63 = vmul.f32 %v3704_v48, %v480_v29 }
 0x17a   :  { %v1329_v7 = vsel %vm4346_vm4, %v3581_v15, %v1327_v46  ;;  %v1332_v22 = vsel %vm4347_vm9, %v1327_v46, %v1321_v4  ;;  %v3742_v15 = vsel %vm2939_vm14, 1.0, %v4256_v44  ;;  %vm1395_vm4 = vmand %vm4330_vm8, %vm4354_vm3  ;;  %vm119_vm9 = vcmp.ge.s32.totalorder %v2896_v14, 2  ;;  %v1445_v14 = vld [vmem:[#allocation2 + $0xe0] sm:$0xff] }
 0x17b   :  { %v1347_v49 = vmul.f32 %v1343_v43, %v1329_v7  ;;  %v1348_v57 = vmul.f32 %v1344_v8, %v1332_v22  ;;  %498 = vst [vmem:[#allocation2 + $0x60] sm:$0xf] %v494_v25  ;;  %v1398_v8 = vsel %vm3730_vm6, 1.0, %v4256_v44  ;;  %v1399_v46 = vsel %vm1395_vm4, 1.0, %v4256_v44  ;;  %vm3781_vm6 = vmand %vm119_vm9, %vm123_vm11 }
 0x17c   :  { %499 = vst [vmem:[#allocation2 + $0x68] sm:$0xf] %v495_v63  ;;  %v514_v58 = vpop.permute.xlu1 %513  ;;  %vm4355_vm8 = vcmp.lt.s32.totalorder %v2629_v55, 30  ;;  %v1457_v63 = vld [vmem:[#allocation2 + $0x140] sm:$0xff]  ;;  %vm113_vm4 = vcmp.lt.s32.totalorder %v2629_v55, 34  ;;  %vm4361_vm9 = vmmov %vm4358_vm12 }
 0x17d   :  { %v1355_v4 = vrot.slane %v1347_v49, 4  ;;  %v1356_v3 = vrot.slane %v1348_v57, 4  ;;  %v524_v61 = vsel %vm4352_vm1, %v514_v58, %v2779_v36  ;;  %v525_v40 = vsel %vm4353_vm10, %v2872_v19, %v514_v58  ;;  %v1453_v57 = vld [vmem:[#allocation2 + $0x120] sm:$0xff]  ;;  %vm3805_vm11 = vmand %vm2864_vm13, %vm4361_vm9 }
 0x17e   :  { %v538_v9 = vmul.f32 %v3737_v16, %v525_v40  ;;  %v539_v0 = vmul.f32 %v3742_v15, %v524_v61  ;;  %v1461_v43 = vld [vmem:[#allocation2 + $0x160] sm:$0xff]  ;;  %v378_v36 = vsel %vm374_vm7, 1.0, %v4256_v44  ;;  %vm134_vm7 = vmand %vm3715_vm0, %vm4358_vm12  ;;  %vm4360_vm10 = vcmp.lt.s32.totalorder %v2909_v32, 14  ;;  %v1452_v40 = vld [vmem:[#allocation2 + $0x118] sm:$0xff] }
 0x17f   :  { %1363 = vst [vmem:[#allocation2 + $0x170] sm:$0xf0] %v1355_v4  ;;  %1490 = vmatpush.msra.mxu0 %v1461_v43  ;;  %v350_v29 = vpop.permute.xlu2 %349  ;;  %v1468_v19 = vld [vmem:[#allocation2 + $0x198] sm:$0x1f]  ;;  %vm4366_vm13 = vcmp.lt.s32.totalorder %v2629_v55, 30  ;;  %vm4377_vm9 = vcmp.lt.s32.totalorder %v2839_v56, 15 }
 0x180   :  { %1364 = vst [vmem:[#allocation2 + $0x178] sm:$0xf0] %v1356_v3  ;;  %v546_v18 = vrot.slane %v538_v9, 4  ;;  %v547_v45 = vrot.slane %v539_v0, 4  ;;  %v361_v25 = vsel %vm4355_vm8, %v2671_v34, %v350_v29  ;;  %2275 = vmatpush.msk.msra.mxu3 %vm1473_vm5, %v1468_v19  ;;  %v146_v3 = vsel %vm134_vm7, 1.0, %v4256_v44  ;;  %v1460_v19 = vld [vmem:[#allocation2 + $0x158] sm:$0xff]  ;;  %vm4367_vm7 = vmmov %vm4366_vm13 }
 0x181   :  { %v1381_v7 = vpop.permute.xlu0 %1380  ;;  %v382_v22 = vmul.f32 %v378_v36, %v361_v25  ;;  %1491 = vmatpush.msra.mxu0 %v1457_v63  ;;  %vm4364_vm8 = vcmp.ge.s32.totalorder %v2909_v32, 2 }
 0x182   :  { %554 = vst [vmem:[#allocation2 + $0x60] sm:$0xf0] %v546_v18  ;;  %v1385_v24 = vsel %vm1384_vm15, %v1381_v7, %v3685_v26  ;;  %v1386_v49 = vsel %vm1384_vm15, %v3592_v28, %v1381_v7  ;;  %v1449_v26 = vld [vmem:[#allocation2 + $0x100] sm:$0xff]  ;;  %vm4359_vm15 = vmmov %vm4354_vm3 }
 0x183   :  { %555 = vst [vmem:[#allocation2 + $0x68] sm:$0xf0] %v547_v45  ;;  %v1402_v58 = vmul.f32 %v1398_v8, %v1386_v49  ;;  %v1403_v4 = vmul.f32 %v1399_v46, %v1385_v24  ;;  %1492 = vmatpush.msra.mxu0 %v1453_v57  ;;  %vm376_vm1 = vmand %vm3525_vm2, %vm4359_vm15  ;;  %v1441_v8 = vld [vmem:[#allocation2 + $0xc0] sm:$0xff]  ;;  %v4365_v45 = vld [vmem:[#allocation25_spill] sm:$0xff] }
 0x184   :  { %386 = vst [vmem:[#allocation2 + $0x40] sm:$0xf] %v382_v22  ;;  %v3789_v28 = vpop.permute.xlu1 %111  ;;  %vm375_vm3 = vmand %vm3781_vm6, %vm4360_vm10  ;;  %v380_v43 = vsel %vm376_vm1, 1.0, %v4256_v44  ;;  %v434_v22 = vsel %vm3805_vm11, 1.0, %v4256_v44  ;;  %v1456_v49 = vld [vmem:[#allocation2 + $0x138] sm:$0xff]  ;;  %vm4372_vm1 = vcmp.ge.s32.totalorder %v2642_v6, 2 }
 0x185   :  { %1406 = vst [vmem:[#allocation2 + $0x188] sm:$0xf] %v1402_v58  ;;  %1493 = vmatpush.msra.mxu0 %v1449_v26  ;;  %v379_v0 = vsel %vm375_vm3, 1.0, %v4256_v44  ;;  %vm427_vm12 = vmand %vm2939_vm14, %vm4364_vm8  ;;  %v1433_v58 = vld [vmem:[#allocation2 + $0x80] sm:$0xff]  ;;  %vm4369_vm14 = vcmp.lt.s32.totalorder %v2629_v55, 18  ;;  %vm4380_vm8 = vcmp.lt.s32.totalorder %v2909_v32, 15 }
 0x186   :  { %1407 = vst [vmem:[#allocation2 + $0x190] sm:$0xf] %v1403_v4  ;;  %v435_v24 = vsel %vm427_vm12, 1.0, %v4256_v44  ;;  %v4368_v26 = vld [vmem:[#allocation27_spill] sm:$0xff]  ;;  %vm4371_vm15 = vmmov %vm4369_vm14 }
 0x187   :  { %1494 = vmatpush.msra.mxu0 %v1445_v14  ;;  %v1464_v61 = vld [vmem:[#allocation2 + $0x178] sm:$0xff]  ;;  %v3809_v9 = vpop.permute.xlu2 %105  ;;  %vm3850_vm11 = vmand %vm3715_vm0, %vm4377_vm9  ;;  %vm4392_vm9 = vcmp.ge.s32.totalorder %v2726_v62, 2 }
 0x188   :  { %1550 = vmatpush.msra.mxu3 %v1464_v61  ;;  %v117_v53 = vsel %vm113_vm4, %v3789_v28, %v3809_v9  ;;  %v4370_v14 = vld [vmem:[#allocation23_spill] sm:$0xff]  ;;  %vm311_vm12 = vmand %vm3781_vm6, %vm4380_vm8  ;;  %vm1469_vm8 = vcmask 826368  }
 0x189   :  { %v352_v36 = vpop.permute.xlu0 %351  ;;  %1495 = vmatpush.msra.mxu0 %v1441_v8  ;;  %v150_v18 = vmul.f32 %v146_v3, %v117_v53 }
 0x18a   :  { %v359_v46 = vsel %vm4366_vm13, %v352_v36, %v4365_v45  ;;  %v360_v25 = vsel %vm4367_vm7, %v350_v29, %v352_v36  ;;  %1551 = vmatpush.msra.mxu3 %v1460_v19  ;;  %v1429_v36 = vld [vmem:[#allocation2 + $0x60] sm:$0xff]  ;;  %v1462_v19 = vld [vmem:[#allocation2 + $0x168] sm:$0xff]  ;;  %v1448_v45 = vld [vmem:[#allocation2 + $0xf8] sm:$0xff]  ;;  %vm4381_vm13 = vcmp.lt.s32.totalorder %v2629_v55, 31 }
 0x18b   :  { %v383_v63 = vmul.f32 %v379_v0, %v360_v25  ;;  %v384_v7 = vmul.f32 %v380_v43, %v359_v46  ;;  %1496 = vmatpush.msra.mxu0 %v1437_v47  ;;  %154 = vst [vmem:[#allocation2] sm:$0xf] %v150_v18  ;;  %v4373_v0 = vld [vmem:[#allocation20_spill] sm:$0xff]  ;;  %v1463_v18 = vld [vmem:[#allocation2 + $0x170] sm:$0xff]  ;;  %vm4383_vm7 = vmmov %vm4381_vm13 }
 0x18c   :  { %v402_v57 = vpop.permute.xlu1 %401  ;;  %1552 = vmatpush.msra.mxu3 %v1456_v49  ;;  %v1466_v4 = vld [vmem:[#allocation2 + $0x188] sm:$0x1f]  ;;  %vm4374_vm10 = vnez %v4373_v0  ;;  %v1451_v43 = vld [vmem:[#allocation2 + $0x110] sm:$0xff] }
 0x18d   :  { %387 = vst [vmem:[#allocation2 + $0x48] sm:$0xf] %v383_v63  ;;  %v412_v29 = vsel %vm4369_vm14, %v402_v57, %v4368_v26  ;;  %v413_v3 = vsel %vm4371_vm15, %v4370_v14, %v402_v57  ;;  %1497 = vmatpush.msra.mxu0 %v1433_v58  ;;  %2271 = vmatpush.msk.msra.mxu1 %vm1473_vm5, %v1466_v4  ;;  %v1467_v61 = vld [vmem:[#allocation2 + $0x190] sm:$0x1f]  ;;  %vm3841_vm3 = vmand %vm4374_vm10, %vm4372_vm1  ;;  %v1458_v63 = vld [vmem:[#allocation2 + $0x148] sm:$0xff]  ;;  %v314_v4 = vsel %vm3850_vm11, 1.0, %v4256_v44 }
 0x18e   :  { %388 = vst [vmem:[#allocation2 + $0x50] sm:$0xf] %v384_v7  ;;  %v438_v8 = vmul.f32 %v434_v22, %v413_v3  ;;  %v439_v53 = vmul.f32 %v435_v24, %v412_v29  ;;  %2273 = vmatpush.msk.msra.mxu2 %vm1473_vm5, %v1467_v61  ;;  %1553 = vmatpush.msra.mxu3 %v1452_v40  ;;  %v149_v47 = vsel %vm3841_vm3, 1.0, %v4256_v44  ;;  %v1459_v22 = vld [vmem:[#allocation2 + $0x150] sm:$0xff]  ;;  %v1444_v24 = vld [vmem:[#allocation2 + $0xd8] sm:$0xff]  ;;  %v1454_v57 = vld [vmem:[#allocation2 + $0x128] sm:$0xff] }
 0x18f   :  { %1498 = vmatpush.msra.mxu0 %v1429_v36  ;;  %1510 = vmatpush.msra.mxu1 %v1462_v19  ;;  %v315_v26 = vsel %vm311_vm12, 1.0, %v4256_v44  ;;  %v1455_v29 = vld [vmem:[#allocation2 + $0x130] sm:$0xff]  ;;  %v1440_v14 = vld [vmem:[#allocation2 + $0xb8] sm:$0xff]  ;;  %v1450_v61 = vld [vmem:[#allocation2 + $0x108] sm:$0xff]  ;;  %vm4385_vm14 = vcmp.lt.s32.totalorder %v2629_v55, 32  ;;  %vm4386_vm15 = vcmp.ge.s32.totalorder %v2909_v32, 2 }
 0x190   :  { %v446_v46 = vrot.slane %v438_v8, 4  ;;  %v447_v25 = vrot.slane %v439_v53, 4  ;;  %1530 = vmatpush.msra.mxu2 %v1463_v18  ;;  %1554 = vmatpush.msra.mxu3 %v1448_v45  ;;  %v4382_v40 = vld [vmem:[#allocation24_spill] sm:$0xff]  ;;  %v1436_v8 = vld [vmem:[#allocation2 + $0x98] sm:$0xff]  ;;  %v1447_v18 = vld [vmem:[#allocation2 + $0xf0] sm:$0xff] }
 0x191   :  { %v3861_v7 = vpop.permute.xlu0 %109  ;;  %1511 = vmatpush.msra.mxu1 %v1458_v63  ;;  %v1446_v19 = vld [vmem:[#allocation2 + $0xe8] sm:$0xff]  ;;  %v1432_v45 = vld [vmem:[#allocation2 + $0x78] sm:$0xff]  ;;  %vm3893_vm1 = vmand %vm3781_vm6, %vm4386_vm15  ;;  %vm4400_vm15 = vcmp.lt.s32.totalorder %v2629_v55, 112 }
 0x192   :  { %454 = vst [vmem:[#allocation2 + $0x40] sm:$0xf0] %v446_v46  ;;  %v114_v49 = vsel %vm113_vm4, %v3861_v7, %v3789_v28  ;;  %1531 = vmatpush.msra.mxu2 %v1459_v22  ;;  %1555 = vmatpush.msra.mxu3 %v1444_v24  ;;  %v1443_v22 = vld [vmem:[#allocation2 + $0xd0] sm:$0xff]  ;;  %vm4389_vm10 = vmmov %vm4385_vm14 }
 0x193   :  { %455 = vst [vmem:[#allocation2 + $0x48] sm:$0xf0] %v447_v25  ;;  %v153_v58 = vmul.f32 %v149_v47, %v114_v49  ;;  %1512 = vmatpush.msra.mxu1 %v1454_v57  ;;  %v1442_v25 = vld [vmem:[#allocation2 + $0xc8] sm:$0xff]  ;;  %v1428_v57 = vld [vmem:[#allocation2 + $0x58] sm:$0xff]  ;;  %vm4391_vm3 = vmmov %vm4389_vm10 }
 0x194   :  { %v286_v3 = vpop.permute.xlu1 %285  ;;  %1532 = vmatpush.msra.mxu2 %v1455_v29  ;;  %1556 = vmatpush.msra.mxu3 %v1440_v14  ;;  %v4384_v24 = vld [vmem:[#allocation21_spill] sm:$0xff]  ;;  %v263_v29 = vsel %vm3781_vm6, 1.0, %v4256_v44  ;;  %vm136_vm11 = vmand %vm3525_vm2, %vm4392_vm9 }
 0x195   :  { %157 = vst [vmem:[#allocation2 + $0x18] sm:$0xf] %v153_v58  ;;  %v296_v28 = vsel %vm4381_vm13, %v286_v3, %v3561_v21  ;;  %v297_v0 = vsel %vm4383_vm7, %v4382_v40, %v286_v3  ;;  %1513 = vmatpush.msra.mxu1 %v1450_v61  ;;  %v264_v21 = vsel %vm3525_vm2, 1.0, %v4256_v44  ;;  %v1438_v58 = vld [vmem:[#allocation2 + $0xa8] sm:$0xff]  ;;  %v1439_v14 = vld [vmem:[#allocation2 + $0xb0] sm:$0xff]  ;;  %v1424_v3 = vld [vmem:[#allocation2 + $0x38] sm:$0xff] }
 0x196   :  { %v318_v53 = vmul.f32 %v314_v4, %v297_v0  ;;  %v319_v36 = vmul.f32 %v315_v26, %v296_v28  ;;  %1533 = vmatpush.msra.mxu2 %v1451_v43  ;;  %1557 = vmatpush.msra.mxu3 %v1436_v8  ;;  %v262_v26 = vsel %vm3715_vm0, 1.0, %v4256_v44  ;;  %v1434_v28 = vld [vmem:[#allocation2 + $0x88] sm:$0xff]  ;;  %v4390_v8 = vld [vmem:[#allocation22_spill] sm:$0xff]  ;;  %v148_v62 = vsel %vm136_vm11, 1.0, %v4256_v44 }
 0x197   :  { %1514 = vmatpush.msra.mxu1 %v1446_v19  ;;  %vm4393_vm2 = vcmp.ge.s32.totalorder %v2839_v56, 1  ;;  %vm4394_vm13 = vcmp.ge.s32.totalorder %v2909_v32, 1 }
 0x198   :  { %v326_v6 = vrot.slane %v318_v53, 4  ;;  %v327_v46 = vrot.slane %v319_v36, 4  ;;  %1534 = vmatpush.msra.mxu2 %v1447_v18  ;;  %1558 = vmatpush.msra.mxu3 %v1432_v45  ;;  %v1435_v36 = vld [vmem:[#allocation2 + $0x90] sm:$0xff]  ;;  %v1430_v45 = vld [vmem:[#allocation2 + $0x68] sm:$0xff]  ;;  %vm186_vm12 = vmand %vm3715_vm0, %vm4393_vm2  ;;  %vm4395_vm0 = vcmp.lt.s32.totalorder %v2629_v55, 33 }
 0x199   :  { %v1425_v47 = vld [vmem:[#allocation2 + $0x40] sm:$0xff]  ;;  %v236_v63 = vpop.permute.xlu0 %235  ;;  %1515 = vmatpush.msra.mxu1 %v1442_v25  ;;  %vm187_vm7 = vmand %vm3781_vm6, %vm4394_vm13  ;;  %vm4398_vm6 = vcmp.lt.s32.totalorder %v2629_v55, 127 }
 0x19a   :  { %334 = vst [vmem:[#allocation2 + $0x20] sm:$0xf0] %v326_v6  ;;  %1499 = vmatpush.msra.mxu0 %v1425_v47  ;;  %v243_v49 = vsel %vm4385_vm14, %v236_v63, %v4384_v24  ;;  %1535 = vmatpush.msra.mxu2 %v1443_v22  ;;  %v1431_v6 = vld [vmem:[#allocation2 + $0x70] sm:$0xff]  ;;  %v1426_v25 = vld [vmem:[#allocation2 + $0x48] sm:$0xff]  ;;  %vm4399_vm14 = vcmp.lt.s32.totalorder %v2629_v55, 111 }
 0x19b   :  { %335 = vst [vmem:[#allocation2 + $0x28] sm:$0xf0] %v327_v46  ;;  %v268_v4 = vmul.f32 %v264_v21, %v243_v49  ;;  %1559 = vmatpush.msra.mxu3 %v1428_v57  ;;  %1516 = vmatpush.msra.mxu1 %v1438_v58  ;;  %v1416_v46 = vld [vmem:[#allocation7] sm:$0xf]  ;;  %v147_v21 = vsel %vm3893_vm1, 1.0, %v4256_v44  ;;  %v198_v58 = vsel %vm186_vm12, 1.0, %v4256_v44  ;;  %vm4401_vm1 = vmmov %vm4400_vm15 }
 0x19c   :  { %v234_v61 = vpop.permute.xlu1 %233  ;;  %1536 = vmatpush.msra.mxu2 %v1439_v14  ;;  %v1420_v40 = vld [vmem:[#allocation2 + $0x18] sm:$0xff]  ;;  %v1427_v47 = vld [vmem:[#allocation2 + $0x50] sm:$0xff]  ;;  %vm4405_vm9 = vmmov %vm4401_vm1 }
 0x19d   :  { %272 = vst [vmem:[#allocation2 + $0x30] sm:$0xf] %v268_v4  ;;  %v244_v43 = vsel %vm4389_vm10, %v234_v61, %v236_v63  ;;  %v245_v53 = vsel %vm4391_vm3, %v4390_v8, %v234_v61  ;;  %1560 = vmatpush.msra.mxu3 %v1424_v3  ;;  %1517 = vmatpush.msra.mxu1 %v1434_v28  ;;  %v199_v4 = vsel %vm187_vm7, 1.0, %v4256_v44  ;;  %vm4402_vm10 = vcmp.lt.s32.totalorder %v2629_v55, 16  ;;  %vm4406_vm11 = vmmov %vm4401_vm1 }
 0x19e   :  { %v266_v19 = vmul.f32 %v262_v26, %v245_v53  ;;  %v267_v18 = vmul.f32 %v263_v29, %v244_v43  ;;  %1537 = vmatpush.msra.mxu2 %v1435_v36  ;;  %v4396_v26 = vld [vmem:[#allocation19_spill] sm:$0xff]  ;;  %vm4404_vm3 = vcmp.lt.s32.totalorder %v2629_v55, 113  ;;  %vm4409_vm12 = vmmov %vm4398_vm6 }
 0x19f   :  { %1561 = vmatpush.msra.mxu3 %v1420_v40  ;;  %1518 = vmatpush.msra.mxu1 %v1430_v45  ;;  %vm4410_vm13 = vmmov %vm4399_vm14 }
 0x1a0   :  { %270 = vst [vmem:[#allocation2 + $0x20] sm:$0xf] %v266_v19  ;;  %1538 = vmatpush.msra.mxu2 %v1431_v6  ;;  %2276 = vmatmul.msk.f32.vlgmr.msra.gmra.mxu3 %vm1469_vm8, %v1416_v46  ;;  %vm4411_vm7 = vmmov %vm4404_vm3 }
 0x1a1   :  { %271 = vst [vmem:[#allocation2 + $0x28] sm:$0xf] %v267_v18  ;;  %v108_v2 = vpop.permute.xlu0 %107  ;;  %1519 = vmatpush.msra.mxu1 %v1426_v25 }
 0x1a2   :  { %v115_v63 = vsel %vm113_vm4, %v108_v2, %v3861_v7  ;;  %v116_v22 = vsel %vm113_vm4, %v3809_v9, %v108_v2  ;;  %1539 = vmatpush.msra.mxu2 %v1427_v47  ;;  %vm4397_vm4 = vmmov %vm4395_vm0 }
 0x1a3   :  { %v151_v24 = vmul.f32 %v147_v21, %v116_v22  ;;  %v152_v49 = vmul.f32 %v148_v62, %v115_v63 }
 0x1a4   :  { %v1423_v57 = vld [vmem:[#allocation2 + $0x30] sm:$0xff] }
 0x1a5   :  { %155 = vst [vmem:[#allocation2 + $0x8] sm:$0xf] %v151_v24  ;;  %1540 = vmatpush.msra.mxu2 %v1423_v57 }
 0x1a6   :  { %156 = vst [vmem:[#allocation2 + $0x10] sm:$0xf] %v152_v49 }
 0x1a7   :  { %v1421_v7 = vld [vmem:[#allocation2 + $0x20] sm:$0xff] }
 0x1a8   :  { %1500 = vmatpush.msra.mxu0 %v1421_v7  ;;  %v1422_v9 = vld [vmem:[#allocation2 + $0x28] sm:$0xff] }
 0x1a9   :  { %1520 = vmatpush.msra.mxu1 %v1422_v9  ;;  %v170_v56 = vpop.permute.xlu0 %169 }
 0x1aa   :  { %v180_v35 = vsel %vm4395_vm0, %v170_v56, %v3663_v13  ;;  %v181_v32 = vsel %vm4397_vm4, %v4396_v26, %v170_v56  ;;  %vm4412_vm0 = vmmov %vm4402_vm10 }
 0x1ab   :  { %v202_v34 = vmul.f32 %v198_v58, %v181_v32  ;;  %v203_v29 = vmul.f32 %v199_v4, %v180_v35  ;;  %vm4413_vm4 = vmmov %vm4410_vm13 }
 0x1ad   :  { %v210_v14 = vrot.slane %v202_v34, 4  ;;  %v211_v3 = vrot.slane %v203_v29, 4  ;;  %v1419_v61 = vld [vmem:[#allocation2 + $0x10] sm:$0xff] }
 0x1ae   :  { %1541 = vmatpush.msra.mxu2 %v1419_v61 }
 0x1af   :  { %218 = vst [vmem:[#allocation2] sm:$0xf0] %v210_v14  ;;  %2274 = vmatmul.msk.f32.vlgmr.msra.gmra.mxu2 %vm1469_vm8, %v1416_v46 }
 0x1b0   :  { %219 = vst [vmem:[#allocation2 + $0x8] sm:$0xf0] %v211_v3 }
 0x1b6   :  { %v1417_v44 = vld [vmem:[#allocation2] sm:$0xff] }
 0x1b7   :  { %1501 = vmatpush.msra.mxu0 %v1417_v44  ;;  %v1418_v28 = vld [vmem:[#allocation2 + $0x8] sm:$0xff] }
 0x1b8   :  { %1521 = vmatpush.msra.mxu1 %v1418_v28  ;;  %2270 = vmatmul.msk.f32.vlgmr.msra.gmra.mxu0 %vm1469_vm8, %v1416_v46 }
 0x1b9   :  { %2272 = vmatmul.msk.f32.vlgmr.msra.gmra.mxu1 %vm1469_vm8, %v1416_v46  ;;  %vm4407_vm8 = vcmp.lt.s32.totalorder %v2629_v55, 1 }
 0x1ba   :  { %vm4408_vm2 = vmmov %vm4407_vm8 }
 0x223   :  { %v1563_v13 = vpop.f32.mrf.mxu3 }
 0x224   :  { %v1569_v40 = vmax.f32 %v1563_v13, 0.0 }
 0x226   :  { %1677 = vst [vmem:[#allocation3 + $0x58] sm:$0xf] %v1569_v40 }
 0x232   :  { %v1543_v0 = vpop.f32.mrf.mxu2 }
 0x233   :  { %v1568_v43 = vmax.f32 %v1543_v0, 0.0 }
 0x235   :  { %v1503_v8 = vpop.f32.mrf.mxu0  ;;  %1676 = vst [vmem:[#allocation3 + $0x50] sm:$0xf] %v1568_v43 }
 0x236   :  { %v1566_v53 = vmax.f32 %v1503_v8, 0.0  ;;  %v1523_v36 = vpop.f32.mrf.mxu1 }
 0x237   :  { %v1567_v19 = vmax.f32 %v1523_v36, 0.0 }
 0x238   :  { %1674 = vst [vmem:[#allocation3 + $0x40] sm:$0xf] %v1566_v53  ;;  %1678 = vrot.lane.b32.xlu1 %v1566_v53, %s2488_s16  ;;  %1762 = vrot.lane.b32.xlu2 %v1566_v53, %s2494_s21 }
 0x239   :  { %1730 = vrot.lane.b32.xlu0 %v1566_v53, %s2493_s20  ;;  %1675 = vst [vmem:[#allocation3 + $0x48] sm:$0xf] %v1567_v19 }
 0x240   :  { %1624 = vrot.lane.b32.xlu1 %v1567_v19, %s2484_s12  ;;  %1572 = vrot.lane.b32.xlu2 %v1567_v19, %s2482_s10 }
 0x241   :  { %1710 = vrot.lane.b32.xlu0 %v1566_v53, %s2492_s19 }
 0x248   :  { %1764 = vrot.lane.b32.xlu1 %v1567_v19, %s2494_s21  ;;  %1684 = vrot.lane.b32.xlu2 %v1569_v40, %s2488_s16 }
 0x249   :  { %1644 = vrot.lane.b32.xlu0 %v1567_v19, %s2487_s15 }
 0x250   :  { %1736 = vrot.lane.b32.xlu1 %v1569_v40, %s2493_s20  ;;  %1734 = vrot.lane.b32.xlu2 %v1568_v43, %s2493_s20 }
 0x251   :  { %1592 = vrot.lane.b32.xlu0 %v1567_v19, %s2483_s11 }
 0x258   :  { %1716 = vrot.lane.b32.xlu1 %v1569_v40, %s2492_s19  ;;  %1648 = vrot.lane.b32.xlu2 %v1569_v40, %s2487_s15 }
 0x259   :  { %1732 = vrot.lane.b32.xlu0 %v1567_v19, %s2493_s20 }
 0x260   :  { %1646 = vrot.lane.b32.xlu1 %v1568_v43, %s2487_s15  ;;  %1594 = vrot.lane.b32.xlu2 %v1568_v43, %s2483_s11 }
 0x261   :  { %1768 = vrot.lane.b32.xlu0 %v1569_v40, %s2494_s21 }
 0x268   :  { %1714 = vrot.lane.b32.xlu1 %v1568_v43, %s2492_s19  ;;  %1628 = vrot.lane.b32.xlu2 %v1569_v40, %s2484_s12 }
 0x269   :  { %1766 = vrot.lane.b32.xlu0 %v1568_v43, %s2494_s21 }
 0x270   :  { %1626 = vrot.lane.b32.xlu1 %v1568_v43, %s2484_s12  ;;  %1576 = vrot.lane.b32.xlu2 %v1569_v40, %s2482_s10 }
 0x271   :  { %1682 = vrot.lane.b32.xlu0 %v1568_v43, %s2488_s16 }
 0x278   :  { %1574 = vrot.lane.b32.xlu1 %v1568_v43, %s2482_s10  ;;  %1680 = vrot.lane.b32.xlu2 %v1567_v19, %s2488_s16 }
 0x279   :  { %1596 = vrot.lane.b32.xlu0 %v1569_v40, %s2483_s11 }
 0x280   :  { %1642 = vrot.lane.b32.xlu1 %v1566_v53, %s2487_s15  ;;  %1590 = vrot.lane.b32.xlu2 %v1566_v53, %s2483_s11 }
 0x281   :  { %1712 = vrot.lane.b32.xlu0 %v1567_v19, %s2492_s19 }
 0x288   :  { %1570 = vrot.lane.b32.xlu1 %v1566_v53, %s2482_s10 }
 0x289   :  { %1622 = vrot.lane.b32.xlu0 %v1566_v53, %s2484_s12 }
 0x292   :  { %v1763_v18 = vpop.permute.xlu2 %1762 }
 0x29a   :  { %v3968_v45 = vpop.permute.xlu2 %1572 }
 0x2a2   :  { %v3970_v6 = vpop.permute.xlu2 %1684 }
 0x2aa   :  { %v1679_v46 = vpop.permute.xlu1 %1678  ;;  %v1735_v21 = vpop.permute.xlu2 %1734 }
 0x2ab   :  { %v1689_v62 = vsel %vm4398_vm6, %v3970_v6, %v1679_v46  ;;  %v1731_v25 = vpop.permute.xlu0 %1730  ;;  %vm4414_vm6 = vmmov %vm4413_vm4 }
 0x2ac   :  { %v1693_v2 = vmul.f32 %v1689_v62, %v3141_v17 }
 0x2ae   :  { %v1701_v47 = vrot.slane %v1693_v2, 4 }
 0x2b0   :  { %1709 = vst [vmem:[#allocation3 + $0x58] sm:$0xf0] %v1701_v47 }
 0x2b2   :  { %v3976_v63 = vpop.permute.xlu1 %1624  ;;  %v3978_v22 = vpop.permute.xlu2 %1648 }
 0x2b3   :  { %v3980_v24 = vpop.permute.xlu0 %1710 }
 0x2ba   :  { %v3982_v49 = vpop.permute.xlu1 %1764  ;;  %v3984_v57 = vpop.permute.xlu2 %1594 }
 0x2bb   :  { %v1772_v7 = vsel %vm4399_vm14, %v1763_v18, %v3982_v49  ;;  %v3989_v9 = vpop.permute.xlu0 %1644  ;;  %vm4415_vm14 = vcmp.lt.s32.totalorder %v2629_v55, 15 }
 0x2bc   :  { %v1774_v17 = vmul.f32 %v1772_v7, %v3436_v50  ;;  %v4403_v50 = vld [vmem:[#allocation26_spill] sm:$0xff] }
 0x2be   :  { %1778 = vst [vmem:[#allocation3 + $0x80] sm:$0xf] %v1774_v17 }
 0x2c2   :  { %v1737_v58 = vpop.permute.xlu1 %1736  ;;  %v3992_v4 = vpop.permute.xlu2 %1628 }
 0x2c3   :  { %v1738_v56 = vsel %vm4400_vm15, %v1735_v21, %v1737_v58  ;;  %v1741_v35 = vsel %vm4401_vm1, %v1737_v58, %v1731_v25  ;;  %v1593_v26 = vpop.permute.xlu0 %1592  ;;  %vm4416_vm15 = vmmov %vm4415_vm14 }
 0x2c4   :  { %v1744_v32 = vmul.f32 %v1738_v56, %v3396_v5  ;;  %v1745_v34 = vmul.f32 %v1741_v35, %v3364_v12  ;;  %v1599_v29 = vsel %vm4402_vm10, %v1593_v26, %v3984_v57  ;;  %vm4419_vm1 = vmmov %vm4409_vm12 }
 0x2c5   :  { %v1604_v14 = vmul.f32 %v1599_v29, %v4403_v50  ;;  %v1802_v3 = vld [vmem:[#allocation3 + $0x80] sm:$0x1f]  ;;  %vm4420_vm10 = vmmov %vm4419_vm1 }
 0x2c6   :  { %v1752_v61 = vrot.slane %v1744_v32, 4  ;;  %v1753_v44 = vrot.slane %v1745_v34, 4  ;;  %2277 = vmatpush.msk.msrb.mxu0 %vm1473_vm5, %v1802_v3 }
 0x2c7   :  { %v1612_v28 = vrot.slane %v1604_v14, 4 }
 0x2c8   :  { %1760 = vst [vmem:[#allocation3 + $0x70] sm:$0xf0] %v1752_v61 }
 0x2c9   :  { %1761 = vst [vmem:[#allocation3 + $0x78] sm:$0xf0] %v1753_v44 }
 0x2ca   :  { %1620 = vst [vmem:[#allocation3 + $0x10] sm:$0xf0] %v1612_v28  ;;  %v1717_v13 = vpop.permute.xlu1 %1716  ;;  %v4005_v40 = vpop.permute.xlu2 %1576 }
 0x2cb   :  { %v1721_v12 = vsel %vm4404_vm3, %v1717_v13, %v3980_v24  ;;  %v1733_v5 = vpop.permute.xlu0 %1732  ;;  %vm4421_vm3 = vcmp.lt.s32.totalorder %v2629_v55, 17 }
 0x2cc   :  { %v1725_v0 = vmul.f32 %v1721_v12, %v3341_v42  ;;  %v1739_v43 = vsel %vm4405_vm9, %v1733_v5, %v1735_v21  ;;  %v1740_v8 = vsel %vm4406_vm11, %v1731_v25, %v1733_v5  ;;  %v4418_v5 = vld [vmem:[#allocation31_spill] sm:$0xff]  ;;  %vm4422_vm9 = vmmov %vm4421_vm3 }
 0x2cd   :  { %v1742_v53 = vmul.f32 %v1740_v8, %v3357_v33  ;;  %v1743_v36 = vmul.f32 %v1739_v43, %v3391_v27  ;;  %vm4426_vm11 = vmmov %vm4412_vm0 }
 0x2ce   :  { %1729 = vst [vmem:[#allocation3 + $0x78] sm:$0xf] %v1725_v0 }
 0x2cf   :  { %v1750_v19 = vrot.slane %v1742_v53, 4  ;;  %v1751_v62 = vrot.slane %v1743_v36, 4 }
 0x2d1   :  { %1758 = vst [vmem:[#allocation3 + $0x60] sm:$0xf0] %v1750_v19 }
 0x2d2   :  { %1759 = vst [vmem:[#allocation3 + $0x68] sm:$0xf0] %v1751_v62  ;;  %v1647_v2 = vpop.permute.xlu1 %1646  ;;  %v1681_v47 = vpop.permute.xlu2 %1680 }
 0x2d3   :  { %v1650_v42 = vsel %vm4407_vm8, %v1647_v2, %v3978_v22  ;;  %v1651_v21 = vsel %vm4408_vm2, %v3989_v9, %v1647_v2  ;;  %v1688_v33 = vsel %vm4409_vm12, %v1679_v46, %v1681_v47  ;;  %v1769_v25 = vpop.permute.xlu0 %1768  ;;  %vm4428_vm8 = vmmov %vm4408_vm2  ;;  %vm1806_vm12 = vcmask 302080  }
 0x2d4   :  { %v1656_v27 = vmul.f32 %v1651_v21, %v3090_v51  ;;  %v1657_v7 = vmul.f32 %v1650_v42, %v3093_v30  ;;  %v1690_v17 = vmul.f32 %v1688_v33, %v3096_v41  ;;  %v1773_v58 = vsel %vm4410_vm13, %v1769_v25, %v1763_v18  ;;  %v4423_v33 = vld [vmem:[#allocation29_spill] sm:$0xff]  ;;  %vm4429_vm13 = vmmov %vm4411_vm7 }
 0x2d5   :  { %v1777_v56 = vmul.f32 %v1773_v58, %v3449_v23 }
 0x2d6   :  { %v1664_v35 = vrot.slane %v1656_v27, 4  ;;  %v1665_v32 = vrot.slane %v1657_v7, 4  ;;  %v1698_v34 = vrot.slane %v1690_v17, 4  ;;  %v4424_v27 = vld [vmem:[#allocation28_spill] sm:$0xff] }
 0x2d7   :  { %1781 = vst [vmem:[#allocation3 + $0x98] sm:$0xf] %v1777_v56 }
 0x2d8   :  { %1672 = vst [vmem:[#allocation3 + $0x30] sm:$0xf0] %v1664_v35  ;;  %v4427_v35 = vld [vmem:[#allocation30_spill] sm:$0xff] }
 0x2d9   :  { %1673 = vst [vmem:[#allocation3 + $0x38] sm:$0xf0] %v1665_v32 }
 0x2da   :  { %1706 = vst [vmem:[#allocation3 + $0x40] sm:$0xf0] %v1698_v34  ;;  %v4031_v46 = vpop.permute.xlu1 %1714  ;;  %v1591_v29 = vpop.permute.xlu2 %1590 }
 0x2db   :  { %v1718_v51 = vsel %vm4411_vm7, %v4031_v46, %v1717_v13  ;;  %v1600_v30 = vsel %vm4412_vm0, %v1591_v29, %v1593_v26  ;;  %v1767_v41 = vpop.permute.xlu0 %1766  ;;  %v1797_v26 = vld [vmem:[#allocation3 + $0x58] sm:$0xff]  ;;  %v4417_v13 = vld [vmem:[#allocation32_spill] sm:$0xff] }
 0x2dc   :  { %v1724_v23 = vmul.f32 %v1718_v51, %v3338_v20  ;;  %v1603_v18 = vmul.f32 %v1600_v30, %v3742_v15  ;;  %v1770_v50 = vsel %vm4413_vm4, %v1767_v41, %v1769_v25  ;;  %v1771_v14 = vsel %vm4414_vm6, %v3982_v49, %v1767_v41  ;;  %v1801_v20 = vld [vmem:[#allocation3 + $0x78] sm:$0xff]  ;;  %vm4432_vm6 = vmmov %vm4415_vm14 }
 0x2dd   :  { %v1775_v3 = vmul.f32 %v1771_v14, %v3439_v38  ;;  %v1776_v61 = vmul.f32 %v1770_v50, %v3446_v37 }
 0x2de   :  { %1728 = vst [vmem:[#allocation3 + $0x70] sm:$0xf] %v1724_v23  ;;  %v1611_v44 = vrot.slane %v1603_v18, 4  ;;  %v1805_v28 = vld [vmem:[#allocation3 + $0x98] sm:$0x1f] }
 0x2df   :  { %1779 = vst [vmem:[#allocation3 + $0x88] sm:$0xf] %v1775_v3  ;;  %2283 = vmatpush.msk.msrb.mxu3 %vm1473_vm5, %v1805_v28 }
 0x2e0   :  { %1619 = vst [vmem:[#allocation3 + $0x8] sm:$0xf0] %v1611_v44 }
 0x2e1   :  { %1780 = vst [vmem:[#allocation3 + $0x90] sm:$0xf] %v1776_v61  ;;  %1894 = vmatpush.msrb.mxu3 %v1801_v20  ;;  %v1785_v61 = vld [vmem:[#allocation9] sm:$0xf] }
 0x2e2   :  { %v1627_v15 = vpop.permute.xlu1 %1626 }
 0x2e3   :  { %v1630_v49 = vsel %vm4415_vm14, %v1627_v15, %v3992_v4  ;;  %v1631_v38 = vsel %vm4416_vm15, %v3976_v63, %v1627_v15  ;;  %1895 = vmatpush.msrb.mxu3 %v1797_v26  ;;  %v1683_v37 = vpop.permute.xlu0 %1682  ;;  %vm4433_vm14 = vmmov %vm4432_vm6  ;;  %vm1915_vm15 = vcmask 1043456  }
 0x2e4   :  { %v1636_v12 = vmul.f32 %v1631_v38, %v4417_v13  ;;  %v1637_v0 = vmul.f32 %v1630_v49, %v4418_v5  ;;  %v1686_v43 = vsel %vm4419_vm1, %v1683_v37, %v3970_v6  ;;  %v1687_v8 = vsel %vm4420_vm10, %v1681_v47, %v1683_v37 }
 0x2e5   :  { %v1691_v53 = vmul.f32 %v1687_v8, %v3171_v39  ;;  %v1692_v36 = vmul.f32 %v1686_v43, %v3174_v1  ;;  %v1800_v6 = vld [vmem:[#allocation3 + $0x70] sm:$0xff]  ;;  %vm1912_vm1 = vcmask 31744  }
 0x2e6   :  { %1640 = vst [vmem:[#allocation3 + $0x30] sm:$0xf] %v1636_v12  ;;  %v1803_v19 = vld [vmem:[#allocation3 + $0x88] sm:$0x1f]  ;;  %v2503_v12 = vmov 4  }
 0x2e7   :  { %1641 = vst [vmem:[#allocation3 + $0x38] sm:$0xf] %v1637_v0  ;;  %v1699_v62 = vrot.slane %v1691_v53, 4  ;;  %v1700_v2 = vrot.slane %v1692_v36, 4  ;;  %2279 = vmatpush.msk.msrb.mxu1 %vm1473_vm5, %v1803_v19  ;;  %2327 = vset.pattern.permute.xlu2 %v2503_v12 }
 0x2e8   :  { %v1804_v42 = vld [vmem:[#allocation3 + $0x90] sm:$0x1f]  ;;  %2328 = vset.pattern.permute.xlu0 %v2503_v12 }
 0x2e9   :  { %1707 = vst [vmem:[#allocation3 + $0x48] sm:$0xf0] %v1699_v62  ;;  %2281 = vmatpush.msk.msrb.mxu2 %vm1473_vm5, %v1804_v42  ;;  %vm4425_vm5 = vmmov %vm4412_vm0 }
 0x2ea   :  { %1708 = vst [vmem:[#allocation3 + $0x50] sm:$0xf0] %v1700_v2  ;;  %v1575_v21 = vpop.permute.xlu1 %1574  ;;  %vm4430_vm0 = vmmov %vm4421_vm3  ;;  %v4434_v2 = vld [vmem:[#allocation17_spill] sm:$0xff] }
 0x2eb   :  { %1874 = vmatpush.msrb.mxu2 %v1800_v6  ;;  %v1578_v39 = vsel %vm4421_vm3, %v1575_v21, %v4005_v40  ;;  %v1579_v1 = vsel %vm4422_vm9, %v3968_v45, %v1575_v21  ;;  %v1597_v47 = vpop.permute.xlu0 %1596  ;;  %vm4431_vm4 = vmmov %vm4430_vm0  ;;  %v2294_v42 = vadd.f32 -1.0, %v4434_v2  ;;  %v2085_v6 = vmax.f32 %v4434_v2, 0.0 }
 0x2ec   :  { %v1584_v25 = vmul.f32 %v1579_v1, %v4423_v33  ;;  %v1585_v7 = vmul.f32 %v1578_v39, %v4424_v27  ;;  %v1598_v17 = vsel %vm4425_vm5, %v3984_v57, %v1597_v47  ;;  %v1601_v58 = vsel %vm4426_vm11, %v1597_v47, %v1591_v29  ;;  %v4435_v1 = vld [vmem:[#allocation18_spill] sm:$0xff] }
 0x2ed   :  { %v1602_v56 = vmul.f32 %v1601_v58, %v3737_v16  ;;  %v1605_v32 = vmul.f32 %v1598_v17, %v4427_v35  ;;  %v1792_v29 = vld [vmem:[#allocation3 + $0x30] sm:$0xff]  ;;  %v2089_v21 = vmax.f32 %v2294_v42, 0.0  ;;  %v2293_v47 = vadd.f32 -1.0, %v4435_v1 }
 0x2ee   :  { %1588 = vst [vmem:[#allocation3 + $0x10] sm:$0xf] %v1584_v25  ;;  %v1793_v34 = vld [vmem:[#allocation3 + $0x38] sm:$0xff]  ;;  %v2084_v33 = vmax.f32 %v4435_v1, 0.0 }
 0x2ef   :  { %1589 = vst [vmem:[#allocation3 + $0x18] sm:$0xf] %v1585_v7  ;;  %v1610_v51 = vrot.slane %v1602_v56, 4  ;;  %v1613_v30 = vrot.slane %v1605_v32, 4  ;;  %1896 = vmatpush.msrb.mxu3 %v1793_v34  ;;  %v4122_v39 = vsub.f32 %v2085_v6, %v2089_v21  ;;  %v2088_v25 = vmax.f32 %v2293_v47, 0.0 }
 0x2f1   :  { %1618 = vst [vmem:[#allocation3] sm:$0xf0] %v1610_v51  ;;  %v1796_v41 = vld [vmem:[#allocation3 + $0x50] sm:$0xff]  ;;  %v4127_v27 = vsub.f32 %v2084_v33, %v2088_v25  ;;  %v2114_v32 = vsub.f32 1.0, %v4122_v39 }
 0x2f2   :  { %1621 = vst [vmem:[#allocation3 + $0x18] sm:$0xf0] %v1613_v30  ;;  %1875 = vmatpush.msrb.mxu2 %v1796_v41  ;;  %v1643_v23 = vpop.permute.xlu1 %1642 }
 0x2f3   :  { %v1652_v57 = vsel %vm4428_vm8, %v1643_v23, %v3989_v9  ;;  %v1653_v16 = vsel %vm4408_vm2, %v3978_v22, %v1643_v23  ;;  %v1713_v18 = vpop.permute.xlu0 %1712  ;;  %2100 = vst [vmem:[#allocation1 + $0x10] ss:$2 sm:$0xff] %v4122_v39 }
 0x2f4   :  { %v1654_v50 = vmul.f32 %v1653_v16, %v3131_v11  ;;  %v1655_v14 = vmul.f32 %v1652_v57, %v3134_v54  ;;  %1876 = vmatpush.msrb.mxu2 %v1792_v29  ;;  %v1719_v3 = vsel %vm4429_vm13, %v1713_v18, %v4031_v46  ;;  %v1720_v9 = vsel %vm4411_vm7, %v3980_v24, %v1713_v18 }
 0x2f5   :  { %v1722_v44 = vmul.f32 %v1720_v9, %v3307_v60  ;;  %v1788_v22 = vld [vmem:[#allocation3 + $0x10] sm:$0xff]  ;;  %v1723_v15 = vmul.f32 %v1719_v3, %v3310_v52  ;;  %2098 = vst [vmem:[#allocation1] ss:$2 sm:$0xff] %v4127_v27  ;;  %v2113_v16 = vsub.f32 1.0, %v4127_v27 }
 0x2f6   :  { %v1662_v28 = vrot.slane %v1654_v50, 4  ;;  %v1663_v20 = vrot.slane %v1655_v14, 4  ;;  %1877 = vmatpush.msrb.mxu2 %v1788_v22 }
 0x2f7   :  { %1726 = vst [vmem:[#allocation3 + $0x60] sm:$0xf] %v1722_v44  ;;  %2282 = vmatmul.msk.f32.vlgmr.msrb.gmra.mxu2 %vm1806_vm12, %v1785_v61 }
 0x2f8   :  { %1670 = vst [vmem:[#allocation3 + $0x20] sm:$0xf0] %v1662_v28 }
 0x2f9   :  { %1671 = vst [vmem:[#allocation3 + $0x28] sm:$0xf0] %v1663_v20  ;;  %v1789_v11 = vld [vmem:[#allocation3 + $0x18] sm:$0xff] }
 0x2fa   :  { %1727 = vst [vmem:[#allocation3 + $0x68] sm:$0xf] %v1723_v15  ;;  %1897 = vmatpush.msrb.mxu3 %v1789_v11  ;;  %v1571_v54 = vpop.permute.xlu1 %1570  ;;  %v4130_v58 = vld.sshfl [vmem:[#allocation1 + $0x10] sm:$0xff pattern:$0x75316420] }
 0x2fb   :  { %2284 = vmatmul.msk.f32.vlgmr.msrb.gmra.mxu3 %vm1806_vm12, %v1785_v61  ;;  %v1580_v60 = vsel %vm4430_vm0, %v1571_v54, %v3968_v45  ;;  %v1581_v52 = vsel %vm4431_vm4, %v4005_v40, %v1571_v54  ;;  %v1623_v24 = vpop.permute.xlu0 %1622  ;;  %v1795_v40 = vld [vmem:[#allocation3 + $0x48] sm:$0xff]  ;;  %v4132_v56 = vld.sshfl [vmem:[#allocation1 + $0x18] sm:$0xff pattern:$0x75316420] }
 0x2fc   :  { %v1582_v46 = vmul.f32 %v1581_v52, %v3701_v31  ;;  %v1583_v26 = vmul.f32 %v1580_v60, %v3704_v48  ;;  %v1632_v49 = vsel %vm4432_vm6, %v1623_v24, %v3976_v63  ;;  %v1633_v38 = vsel %vm4433_vm14, %v3992_v4, %v1623_v24  ;;  %v1794_v31 = vld [vmem:[#allocation3 + $0x40] sm:$0xff]  ;;  %2119 = vst [vmem:[#allocation1 + $0x10] ss:$2 sm:$0xff] %v2114_v32  ;;  %v4135_v23 = vld.sshfl [vmem:[#allocation1] sm:$0xff pattern:$0x75316420] }
 0x2fd   :  { %v1634_v37 = vmul.f32 %v1633_v38, %v3622_v10  ;;  %v1635_v45 = vmul.f32 %v1632_v49, %v3625_v59  ;;  %v1906_v59 = vld [vmem:[#allocation10] sm:$0x7]  ;;  %v4138_v18 = vld.sshfl [vmem:[#allocation1 + $0x8] sm:$0xff pattern:$0x75316420] }
 0x2fe   :  { %1586 = vst [vmem:[#allocation3] sm:$0xf] %v1582_v46  ;;  %v1798_v13 = vld [vmem:[#allocation3 + $0x60] sm:$0xff]  ;;  %1909 = vperm.xlu2 %2327, %v1906_v59  }
 0x2ff   :  { %1587 = vst [vmem:[#allocation3 + $0x8] sm:$0xf] %v1583_v26  ;;  %1834 = vmatpush.msrb.mxu0 %v1798_v13 }
 0x300   :  { %1638 = vst [vmem:[#allocation3 + $0x20] sm:$0xf] %v1634_v37 }
 0x301   :  { %1639 = vst [vmem:[#allocation3 + $0x28] sm:$0xf] %v1635_v45  ;;  %v1799_v48 = vld [vmem:[#allocation3 + $0x68] sm:$0xff]  ;;  %1835 = vmatpush.msrb.mxu0 %v1794_v31 }
 0x302   :  { %1854 = vmatpush.msrb.mxu1 %v1799_v48  ;;  %2117 = vst [vmem:[#allocation1] ss:$2 sm:$0xff] %v2113_v16 }
 0x304   :  { %1855 = vmatpush.msrb.mxu1 %v1795_v40 }
 0x305   :  { %v1786_v4 = vld [vmem:[#allocation3] sm:$0xff] }
 0x306   :  { %v1787_v10 = vld [vmem:[#allocation3 + $0x8] sm:$0xff] }
 0x307   :  { %v1790_v63 = vld [vmem:[#allocation3 + $0x20] sm:$0xff] }
 0x308   :  { %1836 = vmatpush.msrb.mxu0 %v1790_v63  ;;  %v1791_v55 = vld [vmem:[#allocation3 + $0x28] sm:$0xff] }
 0x309   :  { %1856 = vmatpush.msrb.mxu1 %v1791_v55 }
 0x30a   :  { %1837 = vmatpush.msrb.mxu0 %v1786_v4 }
 0x30b   :  { %1857 = vmatpush.msrb.mxu1 %v1787_v10  ;;  %2278 = vmatmul.msk.f32.vlgmr.msrb.gmra.mxu0 %vm1806_vm12, %v1785_v61 }
 0x30c   :  { %2280 = vmatmul.msk.f32.vlgmr.msrb.gmra.mxu1 %vm1806_vm12, %v1785_v61 }
 0x358   :  { %v1910_v7 = vpop.permute.xlu2 %1909 }
 0x37a   :  { %v1879_v5 = vpop.f32.mrf.mxu2 }
 0x37b   :  { %v1904_v0 = vmax.f32 %v1879_v5, 0.0 }
 0x37d   :  { %2289 = vmatpush.msk.msra.mxu2 %vm1915_vm15, %v1904_v0 }
 0x37e   :  { %v1899_v43 = vpop.f32.mrf.mxu3  ;;  %2290 = vmatmul.msk.f32.vlgmr.msra.gmra.mxu2 %vm1912_vm1, %v1906_v59 }
 0x37f   :  { %v1905_v8 = vmax.f32 %v1899_v43, 0.0 }
 0x381   :  { %2291 = vmatpush.msk.msra.mxu3 %vm1915_vm15, %v1905_v8 }
 0x382   :  { %2292 = vmatmul.msk.f32.vlgmr.msra.gmra.mxu3 %vm1912_vm1, %v1906_v59 }
 0x388   :  { %v1839_v53 = vpop.f32.mrf.mxu0 }
 0x389   :  { %v1902_v36 = vmax.f32 %v1839_v53, 0.0  ;;  %v1859_v19 = vpop.f32.mrf.mxu1 }
 0x38a   :  { %v1903_v62 = vmax.f32 %v1859_v19, 0.0 }
 0x38b   :  { %2285 = vmatpush.msk.msra.mxu0 %vm1915_vm15, %v1902_v36 }
 0x38c   :  { %2287 = vmatpush.msk.msra.mxu1 %vm1915_vm15, %v1903_v62  ;;  %2286 = vmatmul.msk.f32.vlgmr.msra.gmra.mxu0 %vm1912_vm1, %v1906_v59 }
 0x38d   :  { %2288 = vmatmul.msk.f32.vlgmr.msra.gmra.mxu1 %vm1912_vm1, %v1906_v59 }
 0x401   :  { %v1985_v17 = vpop.f32.mrf.mxu2 }
 0x402   :  { %v1986_v35 = vadd.f32 %v1985_v17, %v1910_v7 }
 0x404   :  { %v2010_v34 = vsub.f32 0.0, %v1986_v35 }
 0x405   :  { %v2005_v51 = vpop.f32.mrf.mxu3 }
 0x406   :  { %v2016_v30 = vmul.f32 1.442695, %v2010_v34  ;;  %v2006_v41 = vadd.f32 %v2005_v51, %v1910_v7  ;;  %v2123_v51 = vld.sshfl [vmem:[#allocation1 + $0x18] sm:$0xff pattern:$0x75316420] }
 0x408   :  { %2329 = vpow2.f32 %v2016_v30  ;;  %v2011_v57 = vsub.f32 0.0, %v2006_v41 }
 0x409   :  { %v1945_v29 = vpop.f32.mrf.mxu0 }
 0x40a   :  { %v2018_v50 = vmul.f32 1.442695, %v2011_v57  ;;  %v1946_v14 = vadd.f32 %v1945_v29, %v1910_v7  ;;  %v1965_v3 = vpop.f32.mrf.mxu1 }
 0x40b   :  { %v1966_v9 = vadd.f32 %v1965_v3, %v1910_v7 }
 0x40c   :  { %2331 = vpow2.f32 %v2018_v50  ;;  %v2008_v61 = vsub.f32 0.0, %v1946_v14  ;;  %v2122_v50 = vld.sshfl [vmem:[#allocation1 + $0x10] sm:$0xff pattern:$0x75316420] }
 0x40d   :  { %v2009_v44 = vsub.f32 0.0, %v1966_v9 }
 0x40e   :  { %v2330_v22 = vpop.eup %2329  ;;  %v2012_v28 = vmul.f32 1.442695, %v2008_v61 }
 0x40f   :  { %v2022_v20 = vadd.f32 1.0, %v2330_v22  ;;  %v2014_v15 = vmul.f32 1.442695, %v2009_v44 }
 0x410   :  { %2333 = vpow2.f32 %v2012_v28  ;;  %v2121_v28 = vld.sshfl [vmem:[#allocation1 + $0x8] sm:$0xff pattern:$0x75316420] }
 0x411   :  { %2335 = vrcp.f32 %v2022_v20  ;;  %vm2059_vm10 = vweird.f32 %v2022_v20  ;;  %v2063_v45 = vand.u32 2147483647, %v2022_v20  ;;  %v2065_v13 = vand.u32 2147483648, %v2022_v20 }
 0x412   :  { %v2332_v11 = vpop.eup %2331  ;;  %2337 = vpow2.f32 %v2014_v15 }
 0x413   :  { %v2023_v54 = vadd.f32 1.0, %v2332_v11  ;;  %vm2064_vm5 = vcmp.eq.f32.partialorder %v2063_v45, 8.507059e+37  ;;  %v2066_v10 = vor.u32 1.1754944e-38, %v2065_v13 }
 0x415   :  { %2339 = vrcp.f32 %v2023_v54  ;;  %v2078_v55 = vand.u32 2147483647, %v2023_v54  ;;  %v2080_v59 = vand.u32 2147483648, %v2023_v54  ;;  %vm2074_vm8 = vweird.f32 %v2023_v54 }
 0x416   :  { %v2334_v60 = vpop.eup %2333 }
 0x417   :  { %v2336_v52 = vpop.eup %2335  ;;  %v2020_v24 = vadd.f32 1.0, %v2334_v60  ;;  %vm2079_vm2 = vcmp.eq.f32.partialorder %v2078_v55, 8.507059e+37  ;;  %v2081_v19 = vor.u32 1.1754944e-38, %v2080_v59  ;;  %v2120_v60 = vld.sshfl [vmem:[#allocation1] sm:$0xff pattern:$0x75316420] }
 0x418   :  { %v2338_v46 = vpop.eup %2337  ;;  %v2055_v26 = vmul.f32 %v2336_v52, %v2022_v20  ;;  %vm2060_vm3 = vweird.f32 %v2336_v52 }
 0x419   :  { %2341 = vrcp.f32 %v2020_v24  ;;  %v2021_v38 = vadd.f32 1.0, %v2338_v46  ;;  %vm2061_vm9 = vmor %vm2059_vm10, %vm2060_vm3  ;;  %v2033_v62 = vand.u32 2147483647, %v2020_v24  ;;  %v2035_v2 = vand.u32 2147483648, %v2020_v24 }
 0x41a   :  { %v2056_v49 = vsub.f32 1.0, %v2055_v26  ;;  %vm2029_vm7 = vweird.f32 %v2020_v24 }
 0x41b   :  { %v2340_v37 = vpop.eup %2339  ;;  %2343 = vrcp.f32 %v2021_v38  ;;  %v2050_v17 = vand.u32 2147483648, %v2021_v38  ;;  %v2036_v35 = vor.u32 1.1754944e-38, %v2035_v2  ;;  %v2048_v34 = vand.u32 2147483647, %v2021_v38 }
 0x41c   :  { %v2057_v31 = vmul.f32 %v2336_v52, %v2056_v49  ;;  %v2070_v48 = vmul.f32 %v2340_v37, %v2023_v54  ;;  %vm2075_vm11 = vweird.f32 %v2340_v37  ;;  %vm2034_vm6 = vcmp.eq.f32.partialorder %v2033_v62, 8.507059e+37 }
 0x41d   :  { %vm2076_vm12 = vmor %vm2074_vm8, %vm2075_vm11  ;;  %vm2044_vm14 = vweird.f32 %v2021_v38  ;;  %v2051_v14 = vor.u32 1.1754944e-38, %v2050_v17  ;;  %vm2049_vm10 = vcmp.eq.f32.partialorder %v2048_v34, 8.507059e+37 }
 0x41e   :  { %v2058_v40 = vadd.f32 %v2336_v52, %v2057_v31  ;;  %v2071_v63 = vsub.f32 1.0, %v2070_v48 }
 0x41f   :  { %v2342_v4 = vpop.eup %2341 }
 0x420   :  { %v2062_v12 = vsel %vm2061_vm9, %v2336_v52, %v2058_v40  ;;  %v2072_v5 = vmul.f32 %v2340_v37, %v2071_v63  ;;  %v2025_v0 = vmul.f32 %v2342_v4, %v2020_v24  ;;  %vm2030_vm13 = vweird.f32 %v2342_v4 }
 0x421   :  { %v4140_v43 = vsel %vm2064_vm5, %v2066_v10, %v2062_v12  ;;  %v2344_v8 = vpop.eup %2343  ;;  %vm2031_vm0 = vmor %vm2029_vm7, %vm2030_vm13 }
 0x422   :  { %v2073_v53 = vadd.f32 %v2340_v37, %v2072_v5  ;;  %v2026_v36 = vsub.f32 1.0, %v2025_v0  ;;  %v2040_v42 = vmul.f32 %v2344_v8, %v2021_v38  ;;  %v2094_v6 = vperm.slane %v4140_v43, 0 }
 0x423   :  { %vm2045_vm4 = vweird.f32 %v2344_v8  ;;  %v2198_v34 = vperm.slane %v4140_v43, 2 }
 0x424   :  { %v2077_v21 = vsel %vm2076_vm12, %v2340_v37, %v2073_v53  ;;  %v2027_v1 = vmul.f32 %v2342_v4, %v2026_v36  ;;  %v2041_v33 = vsub.f32 1.0, %v2040_v42  ;;  %v2111_v30 = vmul.f32 %v4130_v58, %v2094_v6  ;;  %vm2046_vm1 = vmor %vm2044_vm14, %vm2045_vm4 }
 0x425   :  { %v4143_v47 = vsel %vm2079_vm2, %v2081_v19, %v2077_v21 }
 0x426   :  { %v2095_v25 = vperm.slane %v4143_v47, 0  ;;  %v2028_v7 = vadd.f32 %v2342_v4, %v2027_v1  ;;  %v2042_v32 = vmul.f32 %v2344_v8, %v2041_v33  ;;  %v2130_v22 = vmul.f32 %v2122_v50, %v2111_v30 }
 0x428   :  { %v2112_v41 = vmul.f32 %v4132_v56, %v2095_v25  ;;  %v2032_v57 = vsel %vm2031_vm0, %v2342_v4, %v2028_v7  ;;  %v2043_v29 = vadd.f32 %v2344_v8, %v2042_v32  ;;  %v2199_v7 = vperm.slane %v4143_v47, 2 }
 0x429   :  { %v4148_v16 = vsel %vm2034_vm6, %v2036_v35, %v2032_v57 }
 0x42a   :  { %v2131_v3 = vmul.f32 %v2123_v51, %v2112_v41  ;;  %v2092_v9 = vperm.slane %v4148_v16, 0  ;;  %v2047_v61 = vsel %vm2046_vm1, %v2344_v8, %v2043_v29  ;;  %v2144_v12 = vperm.slane %v4148_v16, 1 }
 0x42b   :  { %v4151_v44 = vsel %vm2049_vm10, %v2051_v14, %v2047_v61 }
 0x42c   :  { %v2137_v58 = vrot.slane %v2131_v3, 4  ;;  %v2093_v56 = vperm.slane %v4151_v44, 0  ;;  %v2109_v15 = vmul.f32 %v4135_v23, %v2092_v9  ;;  %v2147_v23 = vperm.slane %v4143_v47, 1 }
 0x42d   :  { %v2197_v50 = vperm.slane %v4151_v44, 2  ;;  %v2196_v9 = vperm.slane %v4148_v16, 2 }
 0x42e   :  { %v2139_v20 = vsel %vm1915_vm15, %v2130_v22, %v2137_v58  ;;  %v2110_v11 = vmul.f32 %v4138_v18, %v2093_v56  ;;  %v2128_v24 = vmul.f32 %v2120_v60, %v2109_v15 }
 0x42f   :  { %v2143_v54 = vadd.f32 %v2139_v20, %v4122_v39  ;;  %v2146_v39 = vperm.slane %v4140_v43, 1 }
 0x430   :  { %v2129_v52 = vmul.f32 %v2121_v28, %v2110_v11 }
 0x431   :  { %2152 = vst [vmem:[#allocation1 + $0x10] ss:$2 sm:$0xff] %v2143_v54  ;;  %v2166_v37 = vsub.f32 1.0, %v2143_v54 }
 0x432   :  { %v2136_v46 = vrot.slane %v2129_v52, 4 }
 0x434   :  { %v2138_v26 = vsel %vm1915_vm15, %v2128_v24, %v2136_v46 }
 0x435   :  { %v2142_v49 = vadd.f32 %v2138_v26, %v4127_v27  ;;  %v2145_v27 = vperm.slane %v4151_v44, 1 }
 0x437   :  { %2150 = vst [vmem:[#allocation1] ss:$2 sm:$0xff] %v2142_v49  ;;  %v2165_v13 = vsub.f32 1.0, %v2142_v49 }
 0x438   :  { %v2155_v38 = vld.sshfl [vmem:[#allocation1 + $0x10] sm:$0xff pattern:$0x75316420]  ;;  %v2156_v45 = vld.sshfl [vmem:[#allocation1 + $0x18] sm:$0xff pattern:$0x75316420] }
 0x439   :  { %2171 = vst [vmem:[#allocation1 + $0x10] ss:$2 sm:$0xff] %v2166_v37  ;;  %v2164_v48 = vmul.f32 %v2156_v45, %v2147_v23  ;;  %v2163_v55 = vmul.f32 %v2155_v38, %v2146_v39 }
 0x43e   :  { %v2153_v18 = vld.sshfl [vmem:[#allocation1] sm:$0xff pattern:$0x75316420]  ;;  %v2154_v31 = vld.sshfl [vmem:[#allocation1 + $0x8] sm:$0xff pattern:$0x75316420] }
 0x43f   :  { %2169 = vst [vmem:[#allocation1] ss:$2 sm:$0xff] %v2165_v13  ;;  %v2162_v5 = vmul.f32 %v2154_v31, %v2145_v27  ;;  %v2161_v19 = vmul.f32 %v2153_v18, %v2144_v12 }
 0x440   :  { %v2174_v40 = vld.sshfl [vmem:[#allocation1 + $0x10] sm:$0xff pattern:$0x75316420]  ;;  %v2175_v63 = vld.sshfl [vmem:[#allocation1 + $0x18] sm:$0xff pattern:$0x75316420] }
 0x441   :  { %v2183_v4 = vmul.f32 %v2175_v63, %v2164_v48  ;;  %v2182_v10 = vmul.f32 %v2174_v40, %v2163_v55 }
 0x443   :  { %v2189_v59 = vrot.slane %v2183_v4, 4 }
 0x445   :  { %v2191_v0 = vsel %vm1915_vm15, %v2182_v10, %v2189_v59 }
 0x446   :  { %v2172_v8 = vld.sshfl [vmem:[#allocation1] sm:$0xff pattern:$0x75316420]  ;;  %v2173_v53 = vld.sshfl [vmem:[#allocation1 + $0x8] sm:$0xff pattern:$0x75316420]  ;;  %v2195_v36 = vadd.f32 %v2191_v0, %v2143_v54 }
 0x447   :  { %v2181_v62 = vmul.f32 %v2173_v53, %v2162_v5  ;;  %v2180_v2 = vmul.f32 %v2172_v8, %v2161_v19 }
 0x448   :  { %2204 = vst [vmem:[#allocation1 + $0x10] ss:$2 sm:$0xff] %v2195_v36  ;;  %v2218_v1 = vsub.f32 1.0, %v2195_v36 }
 0x449   :  { %v2188_v42 = vrot.slane %v2181_v62, 4 }
 0x44b   :  { %v2190_v6 = vsel %vm1915_vm15, %v2180_v2, %v2188_v42 }
 0x44c   :  { %v2194_v21 = vadd.f32 %v2190_v6, %v2142_v49 }
 0x44e   :  { %2202 = vst [vmem:[#allocation1] ss:$2 sm:$0xff] %v2194_v21  ;;  %v2217_v17 = vsub.f32 1.0, %v2194_v21 }
 0x44f   :  { %v2207_v33 = vld.sshfl [vmem:[#allocation1 + $0x10] sm:$0xff pattern:$0x75316420]  ;;  %v2208_v25 = vld.sshfl [vmem:[#allocation1 + $0x18] sm:$0xff pattern:$0x75316420] }
 0x450   :  { %2223 = vst [vmem:[#allocation1 + $0x10] ss:$2 sm:$0xff] %v2218_v1  ;;  %v2216_v51 = vmul.f32 %v2208_v25, %v2199_v7  ;;  %v2215_v57 = vmul.f32 %v2207_v33, %v2198_v34 }
 0x455   :  { %v2205_v35 = vld.sshfl [vmem:[#allocation1] sm:$0xff pattern:$0x75316420]  ;;  %v2206_v32 = vld.sshfl [vmem:[#allocation1 + $0x8] sm:$0xff pattern:$0x75316420] }
 0x456   :  { %2221 = vst [vmem:[#allocation1] ss:$2 sm:$0xff] %v2217_v17  ;;  %v2214_v61 = vmul.f32 %v2206_v32, %v2197_v50  ;;  %v2213_v28 = vmul.f32 %v2205_v35, %v2196_v9 }
 0x457   :  { %v2226_v30 = vld.sshfl [vmem:[#allocation1 + $0x10] sm:$0xff pattern:$0x75316420]  ;;  %v2227_v41 = vld.sshfl [vmem:[#allocation1 + $0x18] sm:$0xff pattern:$0x75316420] }
 0x458   :  { %v2235_v29 = vmul.f32 %v2227_v41, %v2216_v51  ;;  %v2234_v14 = vmul.f32 %v2226_v30, %v2215_v57 }
 0x45a   :  { %v2241_v3 = vrot.slane %v2235_v29, 4 }
 0x45c   :  { %v2243_v47 = vsel %vm1915_vm15, %v2234_v14, %v2241_v3 }
 0x45d   :  { %v2224_v22 = vld.sshfl [vmem:[#allocation1] sm:$0xff pattern:$0x75316420]  ;;  %v2225_v58 = vld.sshfl [vmem:[#allocation1 + $0x8] sm:$0xff pattern:$0x75316420]  ;;  %v2247_v56 = vadd.f32 %v2243_v47, %v2195_v36 }
 0x45e   :  { %v2233_v43 = vmul.f32 %v2225_v58, %v2214_v61  ;;  %v2232_v20 = vmul.f32 %v2224_v22, %v2213_v28 }
 0x45f   :  { %2249 = vst [vmem:[#allocation12 + $0x8] sm:$0xff] %v2247_v56 }
 0x460   :  { %v2240_v15 = vrot.slane %v2233_v43, 4 }
 0x462   :  { %v2242_v44 = vsel %vm1915_vm15, %v2232_v20, %v2240_v15 }
 0x463   :  { %v2246_v16 = vadd.f32 %v2242_v44, %v2194_v21 }
 0x465   :  { %2248 = vst [vmem:[#allocation12] sm:$0xff] %v2246_v16 }
 0x466   :  { %2260 = dma.vmem_to_hbm [thread:$0]  %s2256_s29, 256, %s2258_s0, [#allocation6]  }
 0x467   :  { %2471 = dma.done.wait [#allocation6], 256  }
 0x468   :  { %2472 = vsyncadd [#allocation6], 4294967040 }
 0x469   :  { %2265 = vsyncpa [#allocation5], 1 }
 0x46a   :  { %2266 = vsyncpa [#allocation8], 1 }
 0x46b   :  { %2267 = vsyncpa [#allocation11], 1 }
 0x46c   :  { %2268 = vsyncpa [#allocation6], 1 }

</bundles_post_ra>
